<compile_context>
chip_gen: v6e
topology: v6e:2x2x1
jax: 0.10.0
libtpu: 0.0.40
codegen_flags: <defaults>
</compile_context>

<pallas_src>
import jax
import jax.numpy as jnp
from jax.experimental import pallas as pl
from jax.experimental.pallas import tpu as pltpu


CIN_PAD = 8                 # channel pad (zero-padded channels contribute exactly 0)
CMID_PAD = 128              # lane-dense hidden width
KTAPS = 9                   # 3x3 conv taps
KDIM = KTAPS * CIN_PAD      # fused contraction depth (72)


def stem_pool_kernel(x_ref, w1_ref, b1_ref, out_ref):
    # x_ref  : [B, H+2, W+2, CIN_PAD]  bf16  (spatially padded block of images)
    # w1_ref : [KDIM, CMID_PAD]        bf16  (3x3 conv weight, (ki, kj, cin)-major rows)
    # b1_ref : [1, CMID_PAD]           f32
    # out_ref: [1, B, CMID_PAD]        f32   (per-image global-average-pooled features)
    b, hp, wp, cin = x_ref.shape
    h, w = hp - 2, wp - 2
    cmid = w1_ref.shape[-1]

    xp = x_ref[...]                                      # bf16, no f32 image copy

    # Lane-dense patch slab built once per block: 9 shifted bf16 slices concatenated
    # along the last axis -> [B, H, W, 72], flattened to the matmul LHS.
    taps = [xp[:, ki:ki + h, kj:kj + w, :] for ki in range(3) for kj in range(3)]
    slab = jnp.concatenate(taps, axis=-1)                # [B, H, W, 72]  bf16
    lhs = slab.reshape(b * h * w, KTAPS * cin)           # [B*H*W, 72]    bf16

    # Single fused MXU matmul (K=72), f32 accumulation.
    act = jnp.dot(lhs, w1_ref[...], preferred_element_type=jnp.float32)  # [B*H*W, 128]
    act = act + b1_ref[...]
    act = act * jax.nn.sigmoid(act)                      # SiLU in f32 (VPU + EUP)

    # Global average pool: reduction over the spatial axis (no pooling matmul).
    pooled = jnp.sum(act.reshape(b, h * w, cmid), axis=1) * (1.0 / (h * w))  # [B, 128]
    out_ref[0] = pooled.astype(out_ref.dtype)


def init_params(key, cin=3, cmid=32, num_classes=18, ksize=3):
    k1, k2, k3, k4 = jax.random.split(key, 4)
    fan_in = ksize * ksize * cin
    w1 = jax.random.normal(k1, (ksize, ksize, cin, cmid), jnp.float32) / jnp.sqrt(fan_in)
    b1 = 0.01 * jax.random.normal(k2, (1, cmid), jnp.float32)
    w2 = jax.random.normal(k3, (cmid, num_classes), jnp.float32) / jnp.sqrt(cmid)
    b2 = 0.01 * jax.random.normal(k4, (1, num_classes), jnp.float32)
    return w1, b1, w2, b2


def my_model_forward(x_nchw, params, *, images_per_block=None):
    w1, b1, w2, b2 = params          # w1:[3,3,Cin,Cmid] b1:[1,Cmid] w2:[Cmid,ncls] b2:[1,ncls]
    N, Cin, H, W = x_nchw.shape
    Cmid = w1.shape[-1]

    # Batch small images per grid step (whole batch here) to amortize per-step
    # overhead and MXU fill/drain.
    if images_per_block is None:
        images_per_block = N
    B = images_per_block
    assert N % B == 0, "images_per_block must divide the batch"
    num_blocks = N // B

    # NCHW -> NHWC, spatial 'same' pad, channel zero-pad, bf16 MXU operand stream.
    x_nhwc = jnp.transpose(x_nchw, (0, 2, 3, 1))
    xp = jnp.pad(x_nhwc, ((0, 0), (1, 1), (1, 1), (0, CIN_PAD - Cin)))
    xp = xp.astype(jnp.bfloat16)                                   # [N, H+2, W+2, CIN_PAD]

    # Conv weight: zero-pad Cin->CIN_PAD, Cmid->CMID_PAD, flatten taps into rows
    # ordered (ki, kj, cin) to match the in-kernel slab concatenation order.
    w1_p = jnp.zeros((3, 3, CIN_PAD, CMID_PAD), jnp.float32)
    w1_p = w1_p.at[:, :, :Cin, :Cmid].set(w1)
    w1_p = w1_p.reshape(KDIM, CMID_PAD).astype(jnp.bfloat16)
    b1_p = jnp.zeros((1, CMID_PAD), jnp.float32).at[:, :Cmid].set(b1)

    m = N * H * W
    cost = pl.CostEstimate(
        flops=2 * m * KDIM * CMID_PAD,
        transcendentals=m * CMID_PAD,
        bytes_accessed=(xp.size * 2 + w1_p.size * 2 + b1_p.size * 4
                        + N * CMID_PAD * 4),
    )

    pooled = pl.pallas_call(
        stem_pool_kernel,
        out_shape=jax.ShapeDtypeStruct((num_blocks, B, CMID_PAD), jnp.float32),
        grid=(num_blocks,),
        in_specs=[
            pl.BlockSpec((B, H + 2, W + 2, CIN_PAD), lambda n: (n, 0, 0, 0)),
            pl.BlockSpec((KDIM, CMID_PAD), lambda n: (0, 0)),
            pl.BlockSpec((1, CMID_PAD), lambda n: (0, 0)),
        ],
        out_specs=pl.BlockSpec((1, B, CMID_PAD), lambda n: (n, 0, 0)),
        compiler_params=pltpu.CompilerParams(
            dimension_semantics=("parallel",),
            vmem_limit_bytes=32 * 1024 * 1024,
        ),
        cost_estimate=cost,
    )(xp, w1_p, b1_p)

    # Tiny classifier head stays in XLA: one [N, Cmid] x [Cmid, ncls] matmul + bias.
    feats = pooled.reshape(N, CMID_PAD)[:, :Cmid]
    return feats @ w2 + b2                                          # [N, num_classes]


def reference_forward(x_nchw, params):
    """Pure-JAX reference (mimics the kernel's bf16 MXU operands, f32 accumulate)."""
    w1, b1, w2, b2 = params
    N, Cin, H, W = x_nchw.shape
    x_nhwc = jnp.transpose(x_nchw, (0, 2, 3, 1)).astype(jnp.float32)
    xp = jnp.pad(x_nhwc, ((0, 0), (1, 1), (1, 1), (0, 0)))
    cols = [xp[:, ki:ki + H, kj:kj + W, :] for ki in range(3) for kj in range(3)]
    patches = jnp.stack(cols, axis=3).reshape(N * H * W, 9 * Cin)   # (ki,kj,cin) order
    w1_flat = w1.reshape(9 * Cin, -1)
    p_b = patches.astype(jnp.bfloat16).astype(jnp.float32)
    w_b = w1_flat.astype(jnp.bfloat16).astype(jnp.float32)
    h = p_b @ w_b + b1
    h = h * jax.nn.sigmoid(h)
    pooled = h.reshape(N, H * W, -1).mean(axis=1)
    return pooled @ w2 + b2


if __name__ == "__main__":
    key = jax.random.PRNGKey(0)
    kx, kp = jax.random.split(key)

    N, Cin, H, W = 2, 3, 16, 16
    x = jax.random.normal(kx, (N, Cin, H, W), jnp.float32)
    params = init_params(kp, cin=Cin, cmid=32, num_classes=18)

    logits = jax.block_until_ready(my_model_forward(x, params))
    ref = reference_forward(x, params)

    assert logits.shape == (N, 18), logits.shape
    max_err = float(jnp.max(jnp.abs(logits - ref)))
    assert jnp.allclose(logits, ref, atol=2e-3, rtol=2e-3), f"mismatch vs reference: {max_err}"

    print("KERNEL_OK")
</pallas_src>

<mosaic_0001>
module attributes {stable_mosaic.version = 11 : i64} {
  func.func @stem_pool_kernel(%arg0: i32, %arg1: memref<2x18x18x8xbf16, #tpu.memory_space<vmem>>, %arg2: memref<72x128xbf16, #tpu.memory_space<vmem>>, %arg3: memref<1x128xf32, #tpu.memory_space<vmem>>, %arg4: memref<1x2x128xf32, #tpu.memory_space<vmem>>) attributes {dimension_semantics = [#tpu.dimension_semantics<parallel>], iteration_bounds = array<i64: 1>, scalar_prefetch = 0 : i64, scratch_operands = 0 : i64, tpu.core_type = #tpu.core_type<tc>, window_params = [{transform_indices = @transform_0, window_bounds = array<i64: 2, 18, 18, 8>}, {pipeline_mode = #tpu.pipeline_mode<synchronous>, transform_indices = @transform_1, window_bounds = array<i64: 72, 128>}, {pipeline_mode = #tpu.pipeline_mode<synchronous>, transform_indices = @transform_2, window_bounds = array<i64: 1, 128>}, {transform_indices = @transform_3, window_bounds = array<i64: 1, 2, 128>}]} {
    %c0 = arith.constant 0 : index
    %c0_0 = arith.constant 0 : index
    %c0_1 = arith.constant 0 : index
    %c0_2 = arith.constant 0 : index
    %0 = vector.load %arg1[%c0, %c0_0, %c0_1, %c0_2] : memref<2x18x18x8xbf16, #tpu.memory_space<vmem>>, vector<2x18x18x8xbf16>
    %1 = vector.extract_strided_slice %0 {offsets = [0, 0, 0, 0], sizes = [2, 16, 16, 8], strides = [1, 1, 1, 1]} : vector<2x18x18x8xbf16> to vector<2x16x16x8xbf16>
    %2 = vector.extract_strided_slice %0 {offsets = [0, 0, 1, 0], sizes = [2, 16, 16, 8], strides = [1, 1, 1, 1]} : vector<2x18x18x8xbf16> to vector<2x16x16x8xbf16>
    %3 = vector.extract_strided_slice %0 {offsets = [0, 0, 2, 0], sizes = [2, 16, 16, 8], strides = [1, 1, 1, 1]} : vector<2x18x18x8xbf16> to vector<2x16x16x8xbf16>
    %4 = vector.extract_strided_slice %0 {offsets = [0, 1, 0, 0], sizes = [2, 16, 16, 8], strides = [1, 1, 1, 1]} : vector<2x18x18x8xbf16> to vector<2x16x16x8xbf16>
    %5 = vector.extract_strided_slice %0 {offsets = [0, 1, 1, 0], sizes = [2, 16, 16, 8], strides = [1, 1, 1, 1]} : vector<2x18x18x8xbf16> to vector<2x16x16x8xbf16>
    %6 = vector.extract_strided_slice %0 {offsets = [0, 1, 2, 0], sizes = [2, 16, 16, 8], strides = [1, 1, 1, 1]} : vector<2x18x18x8xbf16> to vector<2x16x16x8xbf16>
    %7 = vector.extract_strided_slice %0 {offsets = [0, 2, 0, 0], sizes = [2, 16, 16, 8], strides = [1, 1, 1, 1]} : vector<2x18x18x8xbf16> to vector<2x16x16x8xbf16>
    %8 = vector.extract_strided_slice %0 {offsets = [0, 2, 1, 0], sizes = [2, 16, 16, 8], strides = [1, 1, 1, 1]} : vector<2x18x18x8xbf16> to vector<2x16x16x8xbf16>
    %9 = vector.extract_strided_slice %0 {offsets = [0, 2, 2, 0], sizes = [2, 16, 16, 8], strides = [1, 1, 1, 1]} : vector<2x18x18x8xbf16> to vector<2x16x16x8xbf16>
    %10 = tpu.concatenate %1, %2, %3, %4, %5, %6, %7, %8, %9 in 3 : vector<2x16x16x8xbf16>, vector<2x16x16x8xbf16>, vector<2x16x16x8xbf16>, vector<2x16x16x8xbf16>, vector<2x16x16x8xbf16>, vector<2x16x16x8xbf16>, vector<2x16x16x8xbf16>, vector<2x16x16x8xbf16>, vector<2x16x16x8xbf16> -> vector<2x16x16x72xbf16>
    %11 = vector.shape_cast %10 : vector<2x16x16x72xbf16> to vector<512x72xbf16>
    %c0_3 = arith.constant 0 : index
    %c0_4 = arith.constant 0 : index
    %12 = vector.load %arg2[%c0_3, %c0_4] : memref<72x128xbf16, #tpu.memory_space<vmem>>, vector<72x128xbf16>
    %cst = arith.constant dense<0.000000e+00> : vector<512x128xf32>
    %13 = tpu.matmul %11, %12, %cst {dimension_numbers = #tpu.dot_dimension_numbers<[1], [0], [0], [1], [0, 0, 1, 1], [], []>} : vector<512x72xbf16>, vector<72x128xbf16>, vector<512x128xf32> -> vector<512x128xf32>
    %c0_5 = arith.constant 0 : index
    %c0_6 = arith.constant 0 : index
    %14 = vector.load %arg3[%c0_5, %c0_6] : memref<1x128xf32, #tpu.memory_space<vmem>>, vector<1x128xf32>
    %15 = vector.broadcast %14 : vector<1x128xf32> to vector<512x128xf32>
    %16 = arith.addf %13, %15 : vector<512x128xf32>
    %17 = arith.negf %16 : vector<512x128xf32>
    %18 = math.exp %17 : vector<512x128xf32>
    %cst_7 = arith.constant 1.000000e+00 : f32
    %19 = vector.broadcast %cst_7 : f32 to vector<512x128xf32>
    %20 = arith.addf %19, %18 : vector<512x128xf32>
    %21 = arith.divf %19, %20 : vector<512x128xf32>
    %22 = arith.mulf %16, %21 : vector<512x128xf32>
    %23 = vector.shape_cast %22 : vector<512x128xf32> to vector<2x256x128xf32>
    %cst_8 = arith.constant dense<0.000000e+00> : vector<2x128xf32>
    %24 = vector.multi_reduction <add>, %23, %cst_8 [1] : vector<2x256x128xf32> to vector<2x128xf32>
    %cst_9 = arith.constant 3.906250e-03 : f32
    %25 = vector.broadcast %cst_9 : f32 to vector<2x128xf32>
    %26 = arith.mulf %24, %25 : vector<2x128xf32>
    %c0_10 = arith.constant 0 : index
    %c0_11 = arith.constant 0 : index
    %c0_12 = arith.constant 0 : index
    %27 = vector.load %arg4[%c0_10, %c0_11, %c0_12] : memref<1x2x128xf32, #tpu.memory_space<vmem>>, vector<1x2x128xf32>
    %28 = vector.shape_cast %27 : vector<1x2x128xf32> to vector<2x128xf32>
    %29 = vector.shape_cast %26 : vector<2x128xf32> to vector<1x2x128xf32>
    tpu.vector_store %arg4[%c0_10, %c0_11, %c0_12], %29 {strides = array<i32>} : memref<1x2x128xf32, #tpu.memory_space<vmem>>, vector<1x2x128xf32>,
    return
  }
  func.func @transform_0(%arg0: i32) -> (i32, i32, i32, i32) {
    %c0_i32 = arith.constant 0 : i32
    %c0_i32_0 = arith.constant 0 : i32
    %c0_i32_1 = arith.constant 0 : i32
    %c0_i32_2 = arith.constant 0 : i32
    return %arg0, %c0_i32, %c0_i32_0, %c0_i32_1 : i32, i32, i32, i32
  }
  func.func @transform_1(%arg0: i32) -> (i32, i32) {
    %c0_i32 = arith.constant 0 : i32
    %c0_i32_0 = arith.constant 0 : i32
    %c0_i32_1 = arith.constant 0 : i32
    return %c0_i32, %c0_i32_0 : i32, i32
  }
  func.func @transform_2(%arg0: i32) -> (i32, i32) {
    %c0_i32 = arith.constant 0 : i32
    %c0_i32_0 = arith.constant 0 : i32
    %c0_i32_1 = arith.constant 0 : i32
    return %c0_i32, %c0_i32_0 : i32, i32
  }
  func.func @transform_3(%arg0: i32) -> (i32, i32, i32) {
    %c0_i32 = arith.constant 0 : i32
    %c0_i32_0 = arith.constant 0 : i32
    %c0_i32_1 = arith.constant 0 : i32
    return %arg0, %c0_i32, %c0_i32_0 : i32, i32, i32
  }
}

</mosaic_0001>

<bundles_post_ra>
// kernel: tpu_custom_call.1
= control target key start
LH: loop header
LB: loop body
LE: loop exit
PB: predicated region body
PF: predicated region fallthrough
CT: control target
= control target key end

     0   :  { %vm380_vm0 = vsmask.f32 7424  ;;  %s3625_s30 = smov 8   ;;  %vm829_vm1 = vcmask 1046528   ;;  %s3626_s10 = smov 16   ;;  %s6055_s0 = inlined_call_operand.vmem [shape: bf16[2,18,18,8], index: 0, kind: input, shape index: {}]   ;;  %s6056_s1 = inlined_call_operand.vmem [shape: bf16[72,128], index: 1, kind: input, shape index: {}]   ;;  %s6057_s2 = inlined_call_operand.vmem [shape: f32[1,128], index: 2, kind: input, shape index: {}]   ;;  %s6058_s3 = inlined_call_operand.hbm [shape: f32[1,2,128], index: 3, kind: output, shape index: {}]  }
   0x1   :  { %v3657_v0 = vld [vmem:[%s6055_s0 + $0x18] sm:$0xff]   ;;  %v3662_v1 = vld [vmem:[%s6055_s0 + $0x20] ss:$0 sps:$4 sm:$0x11]   ;;  %v3675_v6 = vld [vmem:[%s6055_s0 + $0x24] sm:$0xff]  }
   0x2   :  { %v3667_v2 = vld [vmem:[%s6055_s0] sm:$0xff]   ;;  %v406_v3 = vshrl.u32 %v3657_v0, 16  ;;  %v408_v4 = vshll.u32 %v3657_v0, 16  ;;  %v413_v5 = vshll.u32 %v3662_v1, 16  ;;  %v3687_v10 = vld [vmem:[%s6055_s0 + $0xc] sm:$0xff]   ;;  %v418_v15 = vshrl.u32 %v3675_v6, 16 }
   0x3   :  { %v3680_v7 = vld [vmem:[%s6055_s0 + $0x8] ss:$0 sps:$4 sm:$0x11]   ;;  %v382_v8 = vshrl.u32 %v3667_v2, 16  ;;  %v384_v9 = vshll.u32 %v3667_v2, 16  ;;  %v420_v16 = vshll.u32 %v3675_v6, 16 }
   0x4   :  { %v410_v11 = vrot.slane %v408_v4, 1  ;;  %v415_v12 = vrot.slane %v413_v5, 1  ;;  %v389_v14 = vshll.u32 %v3680_v7, 16  ;;  %v3695_v18 = vld [vmem:[%s6055_s0 + $0x2c] ss:$0 sps:$4 sm:$0x11]  }
   0x5   :  { %v386_v13 = vrot.slane %v384_v9, 1  ;;  %v394_v19 = vshrl.u32 %v3687_v10, 16  ;;  %v422_v22 = vrot.slane %v420_v16, 1  ;;  %v425_v24 = vshll.u32 %v3695_v18, 16  ;;  %v3711_v27 = vld [vmem:[%s6055_s0 + $0x3c] sm:$0xff]   ;;  %v3732_v40 = vld [vmem:[%s6055_s0 + $0x30] sm:$0xff]  }
   0x6   :  { %v411_v17 = vor.u32 %v410_v11, %v406_v3  ;;  %v391_v21 = vrot.slane %v389_v14, 1  ;;  %v3705_v25 = vld [vmem:[%s6055_s0 + $0x14] ss:$0 sps:$4 sm:$0x11]   ;;  %v396_v26 = vshll.u32 %v3687_v10, 16  ;;  %v442_v34 = vshrl.u32 %v3711_v27, 16 }
   0x7   :  { %v387_v20 = vor.u32 %v386_v13, %v382_v8  ;;  %v423_v29 = vor.u32 %v422_v22, %v418_v15  ;;  %v427_v30 = vrot.slane %v425_v24, 1  ;;  %v401_v32 = vshll.u32 %v3705_v25, 16  ;;  %v3721_v33 = vld [vmem:[%s6055_s0 + $0x44] ss:$0 sps:$4 sm:$0x11]   ;;  %v3737_v41 = vld [vmem:[%s6055_s0 + $0x54] sm:$0xff]  }
   0x8   :  { %v3699_v23 = vsel %vm380_vm0, %v411_v17, %v415_v12  ;;  %v398_v31 = vrot.slane %v396_v26, 1  ;;  %v444_v35 = vshll.u32 %v3711_v27, 16  ;;  %v449_v39 = vshll.u32 %v3721_v33, 16  ;;  %v3744_v43 = vld [vmem:[%s6055_s0 + $0x38] ss:$0 sps:$4 sm:$0x11]  }
   0x9   :  { %6162 = vst [vmem:[#allocation5_spill] sm:$0xff] %v3699_v23  ;;  %769 = vrot.lane.b32.xlu1 %v3699_v23, %s3625_s30  ;;  %v392_v28 = vsel %vm380_vm0, %v387_v20, %v391_v21  ;;  %v3726_v36 = vsel %vm380_vm0, %v423_v29, %v427_v30  ;;  %v403_v38 = vrot.slane %v401_v32, 1  ;;  %v430_v46 = vshrl.u32 %v3732_v40, 16  ;;  %v3754_v48 = vld [vmem:[%s6055_s0 + $0x48] sm:$0xff]   ;;  %v3787_v4 = vld [vmem:[%s6055_s0 + $0x60] sm:$0xff]   ;;  %v3826_v30 = vld [vmem:[%s6055_s0 + $0x78] sm:$0xff]  }
   0xa   :  { %765 = vrot.lane.b32.xlu0 %v392_v28, %s3625_s30  ;;  %6163 = vst [vmem:[#allocation6_spill] sm:$0xff] %v3726_v36  ;;  %v399_v37 = vor.u32 %v398_v31, %v394_v19  ;;  %v446_v42 = vrot.slane %v444_v35, 1  ;;  %v451_v45 = vrot.slane %v449_v39, 1  ;;  %v432_v47 = vshll.u32 %v3732_v40, 16  ;;  %v3782_v63 = vld [vmem:[%s6055_s0 + $0x6c] sm:$0xff]   ;;  %v3818_v26 = vld [vmem:[%s6055_s0 + $0x84] sm:$0xff]  }
   0xb   :  { %v437_v50 = vshll.u32 %v3744_v43, 16  ;;  %v3762_v51 = vld [vmem:[%s6055_s0 + $0x5c] ss:$0 sps:$4 sm:$0x11]   ;;  %v466_v53 = vshrl.u32 %v3737_v41, 16  ;;  %v468_v54 = vshll.u32 %v3737_v41, 16 }
   0xc   :  { %v3747_v44 = vsel %vm380_vm0, %v399_v37, %v403_v38  ;;  %v447_v49 = vor.u32 %v446_v42, %v442_v34  ;;  %v434_v52 = vrot.slane %v432_v47, 1  ;;  %v454_v55 = vshrl.u32 %v3754_v48, 16  ;;  %v3776_v61 = vld [vmem:[%s6055_s0 + $0x50] ss:$0 sps:$4 sm:$0x11]   ;;  %v3835_v37 = vld [vmem:[%s6055_s0 + $0x9c] sm:$0xff]  }
   0xd   :  { %771 = vrot.lane.b32.xlu1 %v3726_v36, %s3625_s30  ;;  %6164 = vst [vmem:[#allocation7_spill] sm:$0xff] %v3747_v44  ;;  %v439_v57 = vrot.slane %v437_v50, 1  ;;  %v473_v58 = vshll.u32 %v3762_v51, 16  ;;  %v470_v60 = vrot.slane %v468_v54, 1  ;;  %v456_v62 = vshll.u32 %v3754_v48, 16 }
   0xe   :  { %767 = vrot.lane.b32.xlu0 %v3747_v44, %s3625_s30  ;;  %v3768_v56 = vsel %vm380_vm0, %v447_v49, %v451_v45  ;;  %v435_v59 = vor.u32 %v434_v52, %v430_v46  ;;  %v461_v11 = vshll.u32 %v3776_v61, 16  ;;  %v3798_v12 = vld [vmem:[%s6055_s0 + $0x74] ss:$0 sps:$4 sm:$0x11]   ;;  %v490_v13 = vshrl.u32 %v3782_v63, 16 }
   0xf   :  { %6165 = vst [vmem:[#allocation8_spill] sm:$0xff] %v3768_v56  ;;  %v475_v3 = vrot.slane %v473_v58, 1  ;;  %v471_v8 = vor.u32 %v470_v60, %v466_v53  ;;  %v458_v9 = vrot.slane %v456_v62, 1  ;;  %v492_v14 = vshll.u32 %v3782_v63, 16 }
  0x10   :  { %v3790_v5 = vsel %vm380_vm0, %v435_v59, %v439_v57  ;;  %v478_v15 = vshrl.u32 %v3787_v4, 16  ;;  %v463_v19 = vrot.slane %v461_v11, 1  ;;  %v480_v20 = vshll.u32 %v3787_v4, 16  ;;  %v3813_v24 = vld [vmem:[%s6055_s0 + $0x68] ss:$0 sps:$4 sm:$0x11]  }
  0x11   :  { %775 = vrot.lane.b32.xlu1 %v3768_v56, %s3625_s30  ;;  %6166 = vst [vmem:[#allocation9_spill] sm:$0xff] %v3790_v5  ;;  %v3804_v16 = vsel %vm380_vm0, %v471_v8, %v475_v3  ;;  %v459_v17 = vor.u32 %v458_v9, %v454_v55  ;;  %v494_v21 = vrot.slane %v492_v14, 1  ;;  %v497_v22 = vshll.u32 %v3798_v12, 16  ;;  %v3840_v39 = vld [vmem:[%s6055_s0 + $0x8c] ss:$0 sps:$4 sm:$0x11]  }
  0x12   :  { %773 = vrot.lane.b32.xlu0 %v3790_v5, %s3625_s30  ;;  %6167 = vst [vmem:[#allocation10_spill] sm:$0xff] %v3804_v16  ;;  %v482_v29 = vrot.slane %v480_v20, 1  ;;  %v485_v34 = vshll.u32 %v3813_v24, 16  ;;  %v514_v35 = vshrl.u32 %v3818_v26, 16  ;;  %v516_v42 = vshll.u32 %v3818_v26, 16  ;;  %v3876_v14 = vld [vmem:[%s6055_s0 + $0x90] sm:$0xff]  }
  0x13   :  { %v3821_v28 = vsel %vm380_vm0, %v459_v17, %v463_v19  ;;  %v495_v31 = vor.u32 %v494_v21, %v490_v13  ;;  %v499_v32 = vrot.slane %v497_v22, 1  ;;  %v502_v47 = vshrl.u32 %v3826_v30, 16  ;;  %v3853_v52 = vld [vmem:[%s6055_s0 + $0x80] ss:$0 sps:$4 sm:$0x11]  }
  0x14   :  { %6168 = vst [vmem:[#allocation11_spill] sm:$0xff] %v3821_v28  ;;  %v483_v38 = vor.u32 %v482_v29, %v478_v15  ;;  %v487_v46 = vrot.slane %v485_v34, 1  ;;  %v518_v49 = vrot.slane %v516_v42, 1  ;;  %v521_v50 = vshll.u32 %v3840_v39, 16  ;;  %v3881_v15 = vld [vmem:[%s6055_s0 + $0xb4] sm:$0xff]  }
  0x15   :  { %779 = vrot.lane.b32.xlu1 %v3804_v16, %s3625_s30  ;;  %v3844_v45 = vsel %vm380_vm0, %v495_v31, %v499_v32  ;;  %v504_v53 = vshll.u32 %v3826_v30, 16  ;;  %v509_v59 = vshll.u32 %v3853_v52, 16  ;;  %v3865_v60 = vld [vmem:[%s6055_s0 + $0xa4] ss:$0 sps:$4 sm:$0x11]   ;;  %v538_v62 = vshrl.u32 %v3835_v37, 16 }
  0x16   :  { %777 = vrot.lane.b32.xlu0 %v3821_v28, %s3625_s30  ;;  %6169 = vst [vmem:[#allocation12_spill] sm:$0xff] %v3844_v45  ;;  %v3857_v54 = vsel %vm380_vm0, %v483_v38, %v487_v46  ;;  %v519_v55 = vor.u32 %v518_v49, %v514_v35  ;;  %v523_v57 = vrot.slane %v521_v50, 1  ;;  %v540_v3 = vshll.u32 %v3835_v37, 16  ;;  %v3888_v19 = vld [vmem:[%s6055_s0 + $0x98] ss:$0 sps:$4 sm:$0x11]  }
  0x17   :  { %6170 = vst [vmem:[#allocation13_spill] sm:$0xff] %v3857_v54  ;;  %v506_v58 = vrot.slane %v504_v53, 1  ;;  %v511_v11 = vrot.slane %v509_v59, 1  ;;  %v545_v13 = vshll.u32 %v3865_v60, 16  ;;  %v526_v22 = vshrl.u32 %v3876_v14, 16  ;;  %v3898_v31 = vld [vmem:[%s6055_s0 + $0xa8] sm:$0xff]  }
  0x18   :  { %v3870_v8 = vsel %vm380_vm0, %v519_v55, %v523_v57  ;;  %v542_v17 = vrot.slane %v540_v3, 1  ;;  %v528_v29 = vshll.u32 %v3876_v14, 16  ;;  %v533_v34 = vshll.u32 %v3888_v19, 16  ;;  %v3906_v35 = vld [vmem:[%s6055_s0 + $0xbc] ss:$0 sps:$4 sm:$0x11]  }
  0x19   :  { %783 = vrot.lane.b32.xlu1 %v3844_v45, %s3625_s30  ;;  %6171 = vst [vmem:[#allocation14_spill] sm:$0xff] %v3870_v8  ;;  %v507_v9 = vor.u32 %v506_v58, %v502_v47  ;;  %v547_v21 = vrot.slane %v545_v13, 1  ;;  %v562_v42 = vshrl.u32 %v3881_v15, 16  ;;  %v564_v46 = vshll.u32 %v3881_v15, 16 }
  0x1a   :  { %781 = vrot.lane.b32.xlu0 %v3857_v54, %s3625_s30  ;;  %v543_v32 = vor.u32 %v542_v17, %v538_v62  ;;  %v530_v38 = vrot.slane %v528_v29, 1  ;;  %v550_v47 = vshrl.u32 %v3898_v31, 16  ;;  %v535_v50 = vrot.slane %v533_v34, 1  ;;  %v3920_v58 = vld [vmem:[%s6055_s0 + $0xb0] ss:$0 sps:$4 sm:$0x11]  }
  0x1b   :  { %v3891_v20 = vsel %vm380_vm0, %v507_v9, %v511_v11  ;;  %v569_v53 = vshll.u32 %v3906_v35, 16  ;;  %v566_v57 = vrot.slane %v564_v46, 1  ;;  %v552_v59 = vshll.u32 %v3898_v31, 16  ;;  %v3926_v62 = vld [vmem:[%s6055_s0 + $0xe4] sm:$0xff]   ;;  %v3931_v9 = vld [vmem:[%s6055_s0 + $0xd8] sm:$0xff]  }
  0x1c   :  { %6172 = vst [vmem:[#allocation15_spill] sm:$0xff] %v3891_v20  ;;  %v3912_v49 = vsel %vm380_vm0, %v543_v32, %v547_v21  ;;  %v531_v55 = vor.u32 %v530_v38, %v526_v22  ;;  %v557_v21 = vshll.u32 %v3920_v58, 16  ;;  %v3942_v22 = vld [vmem:[%s6055_s0 + $0xec] ss:$0 sps:$4 sm:$0x11]   ;;  %v586_v29 = vshrl.u32 %v3926_v62, 16 }
  0x1d   :  { %787 = vrot.lane.b32.xlu1 %v3870_v8, %s3625_s30  ;;  %6173 = vst [vmem:[#allocation16_spill] sm:$0xff] %v3912_v49  ;;  %v571_v3 = vrot.slane %v569_v53, 1  ;;  %v567_v13 = vor.u32 %v566_v57, %v562_v42  ;;  %v554_v17 = vrot.slane %v552_v59, 1  ;;  %v588_v32 = vshll.u32 %v3926_v62, 16  ;;  %v3962_v59 = vld [vmem:[%s6055_s0 + $0xfc] sm:$0xff]  }
  0x1e   :  { %785 = vrot.lane.b32.xlu0 %v3891_v20, %s3625_s30  ;;  %v3934_v11 = vsel %vm380_vm0, %v531_v55, %v535_v50  ;;  %v574_v34 = vshrl.u32 %v3931_v9, 16  ;;  %v559_v46 = vrot.slane %v557_v21, 1  ;;  %v576_v50 = vshll.u32 %v3931_v9, 16  ;;  %v3957_v57 = vld [vmem:[%s6055_s0 + $0xe0] ss:$0 sps:$4 sm:$0x11]  }
  0x1f   :  { %6174 = vst [vmem:[#allocation17_spill] sm:$0xff] %v3934_v11  ;;  %v3948_v38 = vsel %vm380_vm0, %v567_v13, %v571_v3  ;;  %v555_v42 = vor.u32 %v554_v17, %v550_v47  ;;  %v590_v53 = vrot.slane %v588_v32, 1  ;;  %v593_v55 = vshll.u32 %v3942_v22, 16  ;;  %v3970_v13 = vld [vmem:[%s6055_s0 + $0xf0] sm:$0xff]  }
  0x20   :  { %6175 = vst [vmem:[#allocation18_spill] sm:$0xff] %v3948_v38  ;;  %v578_v3 = vrot.slane %v576_v50, 1  ;;  %v581_v32 = vshll.u32 %v3957_v57, 16  ;;  %v3984_v50 = vld [vmem:[%s6055_s0 + $0x104] ss:$0 sps:$4 sm:$0x11]  }
  0x21   :  { %791 = vrot.lane.b32.xlu1 %v3912_v49, %s3625_s30  ;;  %v3965_v47 = vsel %vm380_vm0, %v555_v42, %v559_v46  ;;  %v591_v17 = vor.u32 %v590_v53, %v586_v29  ;;  %v595_v21 = vrot.slane %v593_v55, 1  ;;  %v3979_v42 = vld [vmem:[%s6055_s0 + $0x114] sm:$0xff]   ;;  %v612_v49 = vshll.u32 %v3962_v59, 16  ;;  %v4083_v23 = vld [vmem:[%s6055_s0 + $0x14c] ss:$0 sps:$4 sm:$0x11]  }
  0x22   :  { %789 = vrot.lane.b32.xlu0 %v3934_v11, %s3625_s30  ;;  %6176 = vst [vmem:[#allocation19_spill] sm:$0xff] %v3965_v47  ;;  %v579_v46 = vor.u32 %v578_v3, %v574_v34  ;;  %v583_v53 = vrot.slane %v581_v32, 1  ;;  %v598_v55 = vshrl.u32 %v3970_v13, 16  ;;  %v617_v11 = vshll.u32 %v3984_v50, 16  ;;  %6186 = vst [vmem:[#allocation29_spill] sm:$0xff] %v4083_v23 }
  0x23   :  { %v3988_v29 = vsel %vm380_vm0, %v591_v17, %v595_v21  ;;  %v3997_v34 = vld [vmem:[%s6055_s0 + $0xf8] ss:$0 sps:$4 sm:$0x11]   ;;  %v600_v3 = vshll.u32 %v3970_v13, 16  ;;  %v634_v45 = vshrl.u32 %v3979_v42, 16  ;;  %v636_v54 = vshll.u32 %v3979_v42, 16 }
  0x24   :  { %6177 = vst [vmem:[#allocation20_spill] sm:$0xff] %v3988_v29  ;;  %v584_v8 = vsel %vm380_vm0, %v579_v46, %v583_v53  ;;  %v619_v21 = vrot.slane %v617_v11, 1  ;;  %v605_v20 = vshll.u32 %v3997_v34, 16  ;;  %v4017_v11 = vld [vmem:[%s6055_s0 + $0x108] sm:$0xff]  }
  0x25   :  { %795 = vrot.lane.b32.xlu1 %v3948_v38, %s3625_s30  ;;  %v610_v38 = vshrl.u32 %v3962_v59, 16  ;;  %v602_v32 = vrot.slane %v600_v3, 1 }
  0x26   :  { %793 = vrot.lane.b32.xlu0 %v3965_v47, %s3625_s30  ;;  %v614_v47 = vrot.slane %v612_v49, 1  ;;  %v4006_v49 = vld [vmem:[%s6055_s0 + $0x11c] ss:$0 sps:$4 sm:$0x11]   ;;  %v607_v53 = vrot.slane %v605_v20, 1 }
  0x27   :  { %v603_v46 = vor.u32 %v602_v32, %v598_v55  ;;  %v4029_v20 = vld [vmem:[%s6055_s0 + $0x110] ss:$0 sps:$4 sm:$0x11]   ;;  %v4039_v32 = vld [vmem:[%s6055_s0 + $0x120] sm:$0xff]  }
  0x28   :  { %v615_v17 = vor.u32 %v614_v47, %v610_v38  ;;  %v4022_v38 = vld [vmem:[%s6055_s0 + $0x12c] sm:$0xff]   ;;  %v638_v47 = vrot.slane %v636_v54, 1  ;;  %6180 = vst [vmem:[#allocation23_spill] sm:$0xff] %v4039_v32  ;;  %v629_v28 = vshll.u32 %v4029_v20, 16  ;;  %v646_v5 = vshrl.u32 %v4039_v32, 16 }
  0x29   :  { %799 = vrot.lane.b32.xlu1 %v3988_v29, %s3625_s30  ;;  %v4032_v55 = vsel %vm380_vm0, %v603_v46, %v607_v53  ;;  %v4047_v46 = vld [vmem:[%s6055_s0 + $0x134] ss:$0 sps:$4 sm:$0x11]   ;;  %v660_v56 = vshll.u32 %v4022_v38, 16  ;;  %v648_v29 = vshll.u32 %v4039_v32, 16 }
  0x2a   :  { %797 = vrot.lane.b32.xlu0 %v584_v8, %s3625_s30  ;;  %v4011_v16 = vsel %vm380_vm0, %v615_v17, %v619_v21  ;;  %v641_v8 = vshll.u32 %v4006_v49, 16  ;;  %6179 = vst [vmem:[#allocation22_spill] sm:$0xff] %v4032_v55  ;;  %v622_v17 = vshrl.u32 %v4017_v11, 16  ;;  %v624_v21 = vshll.u32 %v4017_v11, 16 }
  0x2b   :  { %6178 = vst [vmem:[#allocation21_spill] sm:$0xff] %v4011_v16  ;;  %v639_v54 = vor.u32 %v638_v47, %v634_v45  ;;  %v631_v36 = vrot.slane %v629_v28, 1  ;;  %v665_v45 = vshll.u32 %v4047_v46, 16 }
  0x2c   :  { %v643_v3 = vrot.slane %v641_v8, 1  ;;  %v626_v53 = vrot.slane %v624_v21, 1  ;;  %v658_v8 = vshrl.u32 %v4022_v38, 16  ;;  %v4061_v21 = vld [vmem:[%s6055_s0 + $0x128] ss:$0 sps:$4 sm:$0x11]  }
  0x2d   :  { %803 = vrot.lane.b32.xlu1 %v4011_v16, %s3625_s30  ;;  %6182 = vst [vmem:[#allocation25_spill] sm:$0xff] %v4061_v21  ;;  %v667_v28 = vrot.slane %v665_v45, 1 }
  0x2e   :  { %801 = vrot.lane.b32.xlu0 %v4032_v55, %s3625_s30  ;;  %v4053_v16 = vsel %vm380_vm0, %v639_v54, %v643_v3  ;;  %v627_v47 = vor.u32 %v626_v53, %v622_v17  ;;  %v662_v55 = vrot.slane %v660_v56, 1  ;;  %v4067_v3 = vld [vmem:[%s6055_s0 + $0x144] sm:$0xff]   ;;  %v4072_v54 = vld [vmem:[%s6055_s0 + $0x138] sm:$0xff]   ;;  %v650_v53 = vrot.slane %v648_v29, 1 }
  0x2f   :  { %6181 = vst [vmem:[#allocation24_spill] sm:$0xff] %v4053_v16  ;;  %6183 = vst [vmem:[#allocation26_spill] sm:$0xff] %v4067_v3  ;;  %v682_v45 = vshrl.u32 %v4067_v3, 16  ;;  %v684_v44 = vshll.u32 %v4067_v3, 16  ;;  %v670_v32 = vshrl.u32 %v4072_v54, 16 }
  0x30   :  { %6184 = vst [vmem:[#allocation27_spill] sm:$0xff] %v4072_v54  ;;  %v4075_v56 = vsel %vm380_vm0, %v627_v47, %v631_v36  ;;  %v663_v17 = vor.u32 %v662_v55, %v658_v8  ;;  %v651_v29 = vor.u32 %v650_v53, %v646_v5  ;;  %v672_v8 = vshll.u32 %v4072_v54, 16 }
  0x31   :  { %807 = vrot.lane.b32.xlu1 %v4053_v16, %s3625_s30  ;;  %6185 = vst [vmem:[#allocation28_spill] sm:$0xff] %v4075_v56  ;;  %v653_v16 = vshll.u32 %v4061_v21, 16  ;;  %v686_v47 = vrot.slane %v684_v44, 1  ;;  %v4098_v21 = vld [vmem:[%s6055_s0 + $0x140] ss:$0 sps:$4 sm:$0x11]  }
  0x32   :  { %805 = vrot.lane.b32.xlu0 %v4075_v56, %s3625_s30  ;;  %v4089_v36 = vsel %vm380_vm0, %v663_v17, %v667_v28  ;;  %v689_v56 = vshll.u32 %v4083_v23, 16  ;;  %6188 = vst [vmem:[#allocation31_spill] sm:$0xff] %v4098_v21  ;;  %v4103_v28 = vld [vmem:[%s6055_s0 + $0x15c] sm:$0xff]   ;;  %v4111_v44 = vld [vmem:[%s6055_s0 + $0x150] sm:$0xff]  }
  0x33   :  { %6187 = vst [vmem:[#allocation30_spill] sm:$0xff] %v4089_v36  ;;  %v655_v55 = vrot.slane %v653_v16, 1  ;;  %6189 = vst [vmem:[#allocation32_spill] sm:$0xff] %v4103_v28  ;;  %v674_v16 = vrot.slane %v672_v8, 1  ;;  %v687_v17 = vor.u32 %v686_v47, %v682_v45  ;;  %v706_v54 = vshrl.u32 %v4103_v28, 16 }
  0x34   :  { %6191 = vst [vmem:[#allocation34_spill] sm:$0xff] %v4111_v44  ;;  %v691_v53 = vrot.slane %v689_v56, 1  ;;  %v4125_v8 = vld [vmem:[%s6055_s0 + $0x164] ss:$0 sps:$4 sm:$0x11]   ;;  %v708_v23 = vshll.u32 %v4103_v28, 16 }
  0x35   :  { %811 = vrot.lane.b32.xlu1 %v4089_v36, %s3625_s30  ;;  %v4106_v5 = vsel %vm380_vm0, %v651_v29, %v655_v55  ;;  %v677_v36 = vshll.u32 %v4098_v21, 16  ;;  %v4120_v29 = vld [vmem:[%s6055_s0 + $0x174] sm:$0xff]   ;;  %v675_v55 = vor.u32 %v674_v16, %v670_v32  ;;  %6193 = vst [vmem:[#allocation36_spill] sm:$0xff] %v4125_v8  ;;  %v694_v47 = vshrl.u32 %v4111_v44, 16 }
  0x36   :  { %6190 = vst [vmem:[#allocation33_spill] sm:$0xff] %v4106_v5  ;;  %809 = vrot.lane.b32.xlu0 %v4106_v5, %s3625_s30  ;;  %6192 = vst [vmem:[#allocation35_spill] sm:$0xff] %v4120_v29  ;;  %v4129_v45 = vsel %vm380_vm0, %v687_v17, %v691_v53  ;;  %v710_v5 = vrot.slane %v708_v23, 1  ;;  %v713_v21 = vshll.u32 %v4125_v8, 16  ;;  %v696_v16 = vshll.u32 %v4111_v44, 16 }
  0x37   :  { %6194 = vst [vmem:[#allocation37_spill] sm:$0xff] %v4129_v45  ;;  %v679_v56 = vrot.slane %v677_v36, 1  ;;  %v4138_v32 = vld [vmem:[%s6055_s0 + $0x158] ss:$0 sps:$4 sm:$0x11]   ;;  %v730_v8 = vshrl.u32 %v4120_v29, 16 }
  0x38   :  { %6195 = vst [vmem:[#allocation38_spill] sm:$0xff] %v4138_v32  ;;  %v711_v36 = vor.u32 %v710_v5, %v706_v54  ;;  %v715_v17 = vrot.slane %v713_v21, 1  ;;  %v698_v53 = vrot.slane %v696_v16, 1  ;;  %v701_v23 = vshll.u32 %v4138_v32, 16  ;;  %v4161_v21 = vld [vmem:[%s6055_s0 + $0x168] sm:$0xff]  }
  0x39   :  { %815 = vrot.lane.b32.xlu1 %v4129_v45, %s3625_s30  ;;  %v4142_v28 = vsel %vm380_vm0, %v675_v55, %v679_v56  ;;  %v4150_v45 = vld [vmem:[%s6055_s0 + $0x17c] ss:$0 sps:$4 sm:$0x11]   ;;  %v732_v44 = vshll.u32 %v4120_v29, 16  ;;  %6199 = vst [vmem:[#allocation42_spill] sm:$0xff] %v4161_v21  ;;  %v4166_v5 = vld [vmem:[%s6055_s0 + $0x18c] sm:$0xff]  }
  0x3a   :  { %6196 = vst [vmem:[#allocation39_spill] sm:$0xff] %v4142_v28  ;;  %813 = vrot.lane.b32.xlu0 %v4142_v28, %s3625_s30  ;;  %6197 = vst [vmem:[#allocation40_spill] sm:$0xff] %v4150_v45  ;;  %v4155_v55 = vsel %vm380_vm0, %v711_v36, %v715_v17  ;;  %v699_v56 = vor.u32 %v698_v53, %v694_v47  ;;  %v703_v3 = vrot.slane %v701_v23, 1  ;;  %v737_v54 = vshll.u32 %v4150_v45, 16  ;;  %v4183_v28 = vld [vmem:[%s6055_s0 + $0x180] sm:$0xff]  }
  0x3b   :  { %6198 = vst [vmem:[#allocation41_spill] sm:$0xff] %v4155_v55  ;;  %6200 = vst [vmem:[#allocation43_spill] sm:$0xff] %v4166_v5  ;;  %v734_v16 = vrot.slane %v732_v44, 1  ;;  %v4173_v47 = vld [vmem:[%s6055_s0 + $0x170] ss:$0 sps:$4 sm:$0x11]  }
  0x3c   :  { %6201 = vst [vmem:[#allocation44_spill] sm:$0xff] %v4173_v47  ;;  %v4176_v36 = vsel %vm380_vm0, %v699_v56, %v703_v3  ;;  %v739_v17 = vrot.slane %v737_v54, 1  ;;  %v718_v53 = vshrl.u32 %v4161_v21, 16  ;;  %v720_v23 = vshll.u32 %v4161_v21, 16  ;;  %6203 = vst [vmem:[#allocation46_spill] sm:$0xff] %v4183_v28 }
  0x3d   :  { %819 = vrot.lane.b32.xlu1 %v4155_v55, %s3625_s30  ;;  %6202 = vst [vmem:[#allocation45_spill] sm:$0xff] %v4176_v36  ;;  %v735_v44 = vor.u32 %v734_v16, %v730_v8  ;;  %v725_v55 = vshll.u32 %v4173_v47, 16  ;;  %v4191_v3 = vld [vmem:[%s6055_s0 + $0x194] ss:$0 sps:$4 sm:$0x11]   ;;  %v754_v54 = vshrl.u32 %v4166_v5, 16 }
  0x3e   :  { %817 = vrot.lane.b32.xlu0 %v4176_v36, %s3625_s30  ;;  %v722_v56 = vrot.slane %v720_v23, 1  ;;  %v756_v21 = vshll.u32 %v4166_v5, 16  ;;  %v761_v32 = vshll.u32 %v4191_v3, 16  ;;  %v4204_v36 = vld [vmem:[%s6055_s0 + $0x188] ss:$0 sps:$4 sm:$0x11]  }
  0x3f   :  { %v4196_v45 = vsel %vm380_vm0, %v735_v44, %v739_v17  ;;  %v727_v29 = vrot.slane %v725_v55, 1  ;;  %v742_v23 = vshrl.u32 %v4183_v28, 16  ;;  %v744_v5 = vshll.u32 %v4183_v28, 16 }
  0x40   :  { %6204 = vst [vmem:[#allocation47_spill] sm:$0xff] %v4196_v45  ;;  %v723_v8 = vor.u32 %v722_v56, %v718_v53  ;;  %v758_v16 = vrot.slane %v756_v21, 1  ;;  %v763_v47 = vrot.slane %v761_v32, 1  ;;  %v833_v17 = vrot.slane %v3687_v10, 1 }
  0x41   :  { %823 = vrot.lane.b32.xlu1 %v4196_v45, %s3625_s30  ;;  %v834_v55 = vrot.slane %v3705_v25, 1  ;;  %v746_v53 = vrot.slane %v744_v5, 1  ;;  %v749_v21 = vshll.u32 %v4204_v36, 16  ;;  %v830_v56 = vrot.slane %v3667_v2, 1 }
  0x42   :  { %v4211_v44 = vsel %vm380_vm0, %v723_v8, %v727_v29  ;;  %v759_v45 = vor.u32 %v758_v16, %v754_v54  ;;  %v831_v25 = vrot.slane %v3680_v7, 1  ;;  %v839_v54 = vrot.slane %v3675_v6, 1 }
  0x43   :  { %6205 = vst [vmem:[#allocation48_spill] sm:$0xff] %v4211_v44  ;;  %821 = vrot.lane.b32.xlu0 %v4211_v44, %s3625_s30  ;;  %v747_v32 = vor.u32 %v746_v53, %v742_v23  ;;  %v751_v10 = vrot.slane %v749_v21, 1  ;;  %v4227_v5 = vsel %vm829_vm1, %v833_v17, %v834_v55  ;;  %v840_v2 = vrot.slane %v3695_v18, 1 }
  0x44   :  { %v4218_v28 = vsel %vm380_vm0, %v759_v45, %v763_v47  ;;  %v832_v45 = vsel %vm829_vm1, %v830_v56, %v831_v25  ;;  %v836_v7 = vrot.slane %v3657_v0, 1  ;;  %v837_v47 = vrot.slane %v3662_v1, 1 }
  0x45   :  { %6206 = vst [vmem:[#allocation49_spill] sm:$0xff] %v4218_v28  ;;  %827 = vrot.lane.b32.xlu1 %v4218_v28, %s3625_s30  ;;  %v4224_v29 = vsel %vm380_vm0, %v747_v32, %v751_v10  ;;  %v4239_v8 = vsel %vm829_vm1, %v839_v54, %v840_v2  ;;  %v845_v6 = vrot.slane %v3711_v27, 1  ;;  %v846_v18 = vrot.slane %v3721_v33, 1 }
  0x46   :  { %6207 = vst [vmem:[#allocation50_spill] sm:$0xff] %v4224_v29  ;;  %v4245_v16 = vsel %vm829_vm1, %v836_v7, %v837_v47  ;;  %v842_v0 = vrot.slane %v3732_v40, 1  ;;  %v843_v1 = vrot.slane %v3744_v43, 1  ;;  %v851_v17 = vrot.slane %v3737_v41, 1 }
  0x47   :  { %825 = vrot.lane.b32.xlu0 %v4224_v29, %s3625_s30  ;;  %v4252_v23 = vsel %vm829_vm1, %v845_v6, %v846_v18  ;;  %v852_v27 = vrot.slane %v3762_v51, 1  ;;  %v848_v40 = vrot.slane %v3754_v48, 1  ;;  %v849_v43 = vrot.slane %v3776_v61, 1 }
  0x48   :  { %v4259_v33 = vsel %vm829_vm1, %v842_v0, %v843_v1  ;;  %v857_v41 = vrot.slane %v3782_v63, 1  ;;  %v858_v51 = vrot.slane %v3798_v12, 1 }
  0x49   :  { %928 = vrot.lane.b32.xlu1 %v4227_v5, %s3626_s10  ;;  %v4266_v55 = vsel %vm829_vm1, %v851_v17, %v852_v27 }
  0x4b   :  { %926 = vrot.lane.b32.xlu0 %v832_v45, %s3626_s10 }
  0x4d   :  { %932 = vrot.lane.b32.xlu1 %v4239_v8, %s3626_s10 }
  0x4f   :  { %930 = vrot.lane.b32.xlu0 %v4245_v16, %s3626_s10 }
  0x51   :  { %936 = vrot.lane.b32.xlu1 %v4252_v23, %s3626_s10 }
  0x53   :  { %934 = vrot.lane.b32.xlu0 %v4259_v33, %s3626_s10 }
  0x54   :  { %8 = vsyncpa [#allocation3], 0  ;;  %v4273_v53 = vsel %vm829_vm1, %v848_v40, %v849_v43  ;;  %v854_v48 = vrot.slane %v3787_v4, 1  ;;  %v855_v61 = vrot.slane %v3813_v24, 1  ;;  %v4280_v21 = vsel %vm829_vm1, %v857_v41, %v858_v51  ;;  %s3627_s12 = smov 24   ;;  %s3628_s17 = smov 32  }
  0x55   :  { %940 = vrot.lane.b32.xlu1 %v4266_v55, %s3626_s10  ;;  %v863_v63 = vrot.slane %v3818_v26, 1  ;;  %v864_v12 = vrot.slane %v3840_v39, 1  ;;  %v860_v4 = vrot.slane %v3826_v30, 1  ;;  %v861_v24 = vrot.slane %v3853_v52, 1  ;;  %s3629_s20 = smov 40   ;;  %s3630_s25 = smov 48  }
  0x56   :  { %v4287_v56 = vsel %vm829_vm1, %v854_v48, %v855_v61  ;;  %v869_v26 = vrot.slane %v3835_v37, 1  ;;  %v870_v39 = vrot.slane %v3865_v60, 1  ;;  %v866_v30 = vrot.slane %v3876_v14, 1  ;;  %v6213_v61 = vld [vmem:[#allocation25_spill] sm:$0xff]  ;;  %s3631_s4 = smov 56  }
  0x57   :  { %938 = vrot.lane.b32.xlu0 %v4273_v53, %s3626_s10  ;;  %v4294_v32 = vsel %vm829_vm1, %v863_v63, %v864_v12  ;;  %v4301_v10 = vsel %vm829_vm1, %v860_v4, %v861_v24  ;;  %v867_v52 = vrot.slane %v3888_v19, 1  ;;  %v875_v37 = vrot.slane %v3881_v15, 1 }
  0x58   :  { %v4308_v25 = vsel %vm829_vm1, %v869_v26, %v870_v39  ;;  %v876_v60 = vrot.slane %v3906_v35, 1  ;;  %v872_v14 = vrot.slane %v3898_v31, 1  ;;  %v873_v19 = vrot.slane %v3920_v58, 1  ;;  %v6215_v26 = vld [vmem:[#allocation29_spill] sm:$0xff] }
  0x59   :  { %944 = vrot.lane.b32.xlu1 %v4280_v21, %s3626_s10  ;;  %6208 = vst [vmem:[#allocation51_spill] sm:$0xff] %v4308_v25  ;;  %v4315_v54 = vsel %vm829_vm1, %v866_v30, %v867_v52  ;;  %v881_v15 = vrot.slane %v3926_v62, 1  ;;  %v882_v35 = vrot.slane %v3942_v22, 1  ;;  %v878_v31 = vrot.slane %v3931_v9, 1 }
  0x5a   :  { %6209 = vst [vmem:[#allocation52_spill] sm:$0xff] %v4315_v54  ;;  %v4322_v2 = vsel %vm829_vm1, %v875_v37, %v876_v60  ;;  %v4329_v45 = vsel %vm829_vm1, %v872_v14, %v873_v19  ;;  %v879_v58 = vrot.slane %v3957_v57, 1  ;;  %v887_v47 = vrot.slane %v3962_v59, 1  ;;  %v6216_v37 = vld [vmem:[#allocation27_spill] sm:$0xff] }
  0x5b   :  { %942 = vrot.lane.b32.xlu0 %v4287_v56, %s3626_s10  ;;  %6210 = vst [vmem:[#allocation53_spill] sm:$0xff] %v4322_v2  ;;  %6211 = vst [vmem:[#allocation54_spill] sm:$0xff] %v4329_v45  ;;  %v4336_v7 = vsel %vm829_vm1, %v881_v15, %v882_v35  ;;  %v888_v22 = vrot.slane %v3984_v50, 1  ;;  %v884_v18 = vrot.slane %v3970_v13, 1  ;;  %v885_v9 = vrot.slane %v3997_v34, 1  ;;  %v6217_v14 = vld [vmem:[#allocation31_spill] sm:$0xff] }
  0x5c   :  { %v880_v6 = vsel %vm829_vm1, %v878_v31, %v879_v58  ;;  %v893_v0 = vrot.slane %v3979_v42, 1  ;;  %v894_v1 = vrot.slane %v4006_v49, 1  ;;  %v890_v17 = vrot.slane %v4017_v11, 1  ;;  %v6218_v35 = vld [vmem:[#allocation32_spill] sm:$0xff] }
  0x5d   :  { %948 = vrot.lane.b32.xlu1 %v4294_v32, %s3626_s10  ;;  %v4348_v57 = vsel %vm829_vm1, %v887_v47, %v888_v22  ;;  %v4354_v50 = vsel %vm829_vm1, %v884_v18, %v885_v9  ;;  %v891_v27 = vrot.slane %v4029_v20, 1  ;;  %v899_v43 = vrot.slane %v4022_v38, 1  ;;  %v6212_v20 = vld [vmem:[#allocation23_spill] sm:$0xff]  ;;  %v6219_v58 = vld [vmem:[#allocation36_spill] sm:$0xff]  ;;  %v6220_v18 = vld [vmem:[#allocation34_spill] sm:$0xff] }
  0x5e   :  { %v4363_v40 = vsel %vm829_vm1, %v893_v0, %v894_v1  ;;  %v900_v49 = vrot.slane %v4047_v46, 1  ;;  %v896_v48 = vrot.slane %v6212_v20, 1  ;;  %v897_v63 = vrot.slane %v6213_v61, 1  ;;  %v6214_v46 = vld [vmem:[#allocation26_spill] sm:$0xff] }
  0x5f   :  { %946 = vrot.lane.b32.xlu0 %v4301_v10, %s3626_s10  ;;  %v4372_v51 = vsel %vm829_vm1, %v890_v17, %v891_v27  ;;  %v905_v24 = vrot.slane %v6214_v46, 1  ;;  %v906_v39 = vrot.slane %v6215_v26, 1  ;;  %v902_v60 = vrot.slane %v6216_v37, 1  ;;  %v6221_v0 = vld [vmem:[#allocation38_spill] sm:$0xff] }
  0x60   :  { %v4381_v4 = vsel %vm829_vm1, %v899_v43, %v900_v49  ;;  %v4390_v52 = vsel %vm829_vm1, %v896_v48, %v897_v63  ;;  %v903_v19 = vrot.slane %v6217_v14, 1  ;;  %v911_v31 = vrot.slane %v6218_v35, 1  ;;  %v6222_v43 = vld [vmem:[#allocation35_spill] sm:$0xff]  ;;  %v6223_v48 = vld [vmem:[#allocation40_spill] sm:$0xff] }
  0x61   :  { %952 = vrot.lane.b32.xlu1 %v4308_v25, %s3626_s10  ;;  %v4397_v15 = vsel %vm829_vm1, %v905_v24, %v906_v39  ;;  %v912_v47 = vrot.slane %v6219_v58, 1  ;;  %v908_v9 = vrot.slane %v6220_v18, 1  ;;  %v909_v1 = vrot.slane %v6221_v0, 1  ;;  %v6225_v24 = vld [vmem:[#allocation42_spill] sm:$0xff]  ;;  %v6226_v39 = vld [vmem:[#allocation44_spill] sm:$0xff]  ;;  %v6229_v35 = vld [vmem:[#allocation43_spill] sm:$0xff] }
  0x62   :  { %v917_v49 = vrot.slane %v6222_v43, 1  ;;  %v918_v61 = vrot.slane %v6223_v48, 1  ;;  %v914_v26 = vrot.slane %v6225_v24, 1  ;;  %v924_v58 = vrot.slane %v4191_v3, 1  ;;  %v6231_v18 = vld [vmem:[#allocation46_spill] sm:$0xff] }
  0x63   :  { %950 = vrot.lane.b32.xlu0 %v4315_v54, %s3626_s10  ;;  %v4415_v27 = vsel %vm829_vm1, %v911_v31, %v912_v47  ;;  %v4424_v46 = vsel %vm829_vm1, %v908_v9, %v909_v1  ;;  %v923_v31 = vrot.slane %v6229_v35, 1  ;;  %v920_v9 = vrot.slane %v6231_v18, 1  ;;  %v6243_v18 = vld [vmem:[#allocation5_spill] sm:$0xff] }
  0x64   :  { %v921_v0 = vrot.slane %v4204_v36, 1  ;;  %vm2094_vm2 = vcmask 1043456   ;;  %vm1466_vm3 = vcmask 64512   ;;  %vm1531_vm4 = vcmask 130048  }
  0x65   :  { %956 = vrot.lane.b32.xlu1 %v4322_v2, %s3626_s10  ;;  %v4449_v43 = vsel %vm829_vm1, %v923_v31, %v924_v58  ;;  %v6241_v31 = vld [vmem:[#allocation7_spill] sm:$0xff]  ;;  %vm1596_vm5 = vcmask 195584   ;;  %vm1661_vm6 = vcmask 261120   ;;  %vm1726_vm7 = vcmask 326656  }
  0x66   :  { %6233 = vst [vmem:[#allocation31_spill] sm:$0xff] %v4449_v43  ;;  %v4456_v3 = vsel %vm829_vm1, %v920_v9, %v921_v0  ;;  %v3301_v9 = vld [vmem:[%s6056_s1 + $0x20] ss:$0 sps:$4 sm:$0xff]   ;;  %vm1791_vm8 = vcmask 392192   ;;  %vm1856_vm9 = vcmask 457728   ;;  %vm1921_vm10 = vcmask 523264  }
  0x67   :  { %954 = vrot.lane.b32.xlu0 %v4329_v45, %s3626_s10  ;;  %6235 = vst [vmem:[#allocation36_spill] sm:$0xff] %v4456_v3  ;;  %3226 = vmatprep.subr.msk.bf16.mxu0 %vm2094_vm2, %v3301_v9  ;;  %vm2029_vm11 = vcmask 588800   ;;  %vm2913_vm12 = vcmask 1041409  }
  0x68   :  { %3227 = vmatprep.subr.msk.bf16.mxu1 %vm2094_vm2, %v3301_v9 }
  0x69   :  { %960 = vrot.lane.b32.xlu1 %v4336_v7, %s3626_s10 }
  0x6b   :  { %958 = vrot.lane.b32.xlu0 %v880_v6, %s3626_s10  ;;  %v4406_v6 = vsel %vm829_vm1, %v902_v60, %v903_v19  ;;  %v915_v60 = vrot.slane %v6226_v39, 1  ;;  %v4433_v19 = vsel %vm829_vm1, %v917_v49, %v918_v61  ;;  %v4469_v61 = vld [vmem:[%s6055_s0 + $0x18] sm:$0xff]  }
  0x6c   :  { %6228 = vst [vmem:[#allocation26_spill] sm:$0xff] %v4433_v19 }
  0x6d   :  { %964 = vrot.lane.b32.xlu1 %v4348_v57, %s3626_s10  ;;  %v4440_v47 = vsel %vm829_vm1, %v914_v26, %v915_v60  ;;  %v4478_v26 = vld [vmem:[%s6055_s0 + $0xc] sm:$0xff]   ;;  %v4489_v60 = vld [vmem:[%s6055_s0 + $0x24] sm:$0xff]  }
  0x6e   :  { %6230 = vst [vmem:[#allocation29_spill] sm:$0xff] %v4440_v47 }
  0x6f   :  { %962 = vrot.lane.b32.xlu0 %v4354_v50, %s3626_s10 }
  0x71   :  { %968 = vrot.lane.b32.xlu1 %v4363_v40, %s3626_s10 }
  0x73   :  { %966 = vrot.lane.b32.xlu0 %v4372_v51, %s3626_s10 }
  0x75   :  { %972 = vrot.lane.b32.xlu1 %v4381_v4, %s3626_s10 }
  0x77   :  { %970 = vrot.lane.b32.xlu0 %v4390_v52, %s3626_s10 }
  0x79   :  { %976 = vrot.lane.b32.xlu1 %v4397_v15, %s3626_s10 }
  0x7b   :  { %v4360_v34 = vpop.permute.xlu1 %769  ;;  %974 = vrot.lane.b32.xlu0 %v4406_v6, %s3626_s10 }
  0x7c   :  { %v4367_v41 = vpop.permute.xlu0 %765 }
  0x7d   :  { %980 = vrot.lane.b32.xlu1 %v4415_v27, %s3626_s10 }
  0x7f   :  { %v4378_v12 = vpop.permute.xlu1 %771  ;;  %978 = vrot.lane.b32.xlu0 %v4424_v46, %s3626_s10 }
  0x80   :  { %v4387_v30 = vpop.permute.xlu0 %767 }
  0x81   :  { %984 = vrot.lane.b32.xlu1 %v4433_v19, %s3626_s10 }
  0x83   :  { %v4401_v22 = vpop.permute.xlu1 %775  ;;  %982 = vrot.lane.b32.xlu0 %v4440_v47, %s3626_s10 }
  0x84   :  { %v4412_v17 = vpop.permute.xlu0 %773 }
  0x85   :  { %988 = vrot.lane.b32.xlu1 %v4449_v43, %s3626_s10 }
  0x87   :  { %v4421_v63 = vpop.permute.xlu1 %779  ;;  %986 = vrot.lane.b32.xlu0 %v4456_v3, %s3626_s10 }
  0x88   :  { %6224 = vst [vmem:[#allocation23_spill] sm:$0xff] %v4421_v63  ;;  %v4430_v14 = vpop.permute.xlu0 %777 }
  0x89   :  { %6227 = vst [vmem:[#allocation25_spill] sm:$0xff] %v4430_v14  ;;  %1002 = vrot.lane.b32.xlu1 %v4469_v61, %s3627_s12  ;;  %v6287_v14 = vld [vmem:[#allocation30_spill] sm:$0xff] }
  0x8b   :  { %v4444_v1 = vpop.permute.xlu1 %783  ;;  %1000 = vrot.lane.b32.xlu0 %v4478_v26, %s3627_s12 }
  0x8c   :  { %6232 = vst [vmem:[#allocation27_spill] sm:$0xff] %v4444_v1  ;;  %v4451_v49 = vpop.permute.xlu0 %781 }
  0x8d   :  { %6234 = vst [vmem:[#allocation32_spill] sm:$0xff] %v4451_v49  ;;  %1032 = vrot.lane.b32.xlu1 %v3926_v62, %s3627_s12 }
  0x8f   :  { %v4460_v36 = vpop.permute.xlu1 %787  ;;  %1004 = vrot.lane.b32.xlu0 %v4489_v60, %s3627_s12 }
  0x90   :  { %6236 = vst [vmem:[#allocation34_spill] sm:$0xff] %v4460_v36  ;;  %v4464_v48 = vpop.permute.xlu0 %785 }
  0x91   :  { %6237 = vst [vmem:[#allocation38_spill] sm:$0xff] %v4464_v48  ;;  %1094 = vrot.lane.b32.xlu1 %v6241_v31, %s3628_s17  ;;  %v2096_v31 = vsel %vm2094_vm2, %v3301_v9, 0  ;;  %v3305_v48 = vld [vmem:[%s6056_s1] sm:$0xff]  }
  0x92   :  { %3143 = vmatpush3.bf16.msra.mxu0 %v2096_v31  ;;  %3221 = vmatpush3.bf16.msra.mxu1 %v2096_v31  ;;  %v3304_v31 = vld [vmem:[%s6056_s1 + $0x8] sm:$0xff]  }
  0x93   :  { %v4473_v24 = vpop.permute.xlu1 %791  ;;  %1034 = vrot.lane.b32.xlu0 %v3970_v13, %s3627_s12 }
  0x94   :  { %6238 = vst [vmem:[#allocation35_spill] sm:$0xff] %v4473_v24  ;;  %v4484_v39 = vpop.permute.xlu0 %789  ;;  %v3302_v24 = vld [vmem:[%s6056_s1 + $0x18] sm:$0xff]  }
  0x95   :  { %6239 = vst [vmem:[#allocation40_spill] sm:$0xff] %v4484_v39  ;;  %1096 = vrot.lane.b32.xlu1 %v6243_v18, %s3628_s17  ;;  %v6245_v39 = vld [vmem:[#allocation22_spill] sm:$0xff]  ;;  %3144 = vmatprep.subr.bf16.mxu0 %v3302_v24 }
  0x96   :  { %3145 = vmatpush3.bf16.msra.mxu0 %v3302_v24  ;;  %3217 = vmatprep.subr.bf16.mxu1 %v3302_v24 }
  0x97   :  { %v4493_v35 = vpop.permute.xlu1 %795  ;;  %3222 = vmatpush3.bf16.msra.mxu1 %v3302_v24 }
  0x98   :  { %6240 = vst [vmem:[#allocation42_spill] sm:$0xff] %v4493_v35  ;;  %v4497_v58 = vpop.permute.xlu0 %793  ;;  %v6244_v35 = vld [vmem:[#allocation20_spill] sm:$0xff] }
  0x99   :  { %6242 = vst [vmem:[#allocation44_spill] sm:$0xff] %v4497_v58  ;;  %1126 = vrot.lane.b32.xlu0 %v6244_v35, %s3628_s17  ;;  %1164 = vrot.lane.b32.xlu1 %v4227_v5, %s3629_s20  ;;  %v3303_v5 = vld [vmem:[%s6056_s1 + $0x10] sm:$0xff]   ;;  %s3632_s1 = smov 64  }
  0x9a   :  { %3146 = vmatprep.subr.bf16.mxu0 %v3303_v5  ;;  %3218 = vmatprep.subr.bf16.mxu1 %v3303_v5 }
  0x9b   :  { %v4501_v62 = vpop.permute.xlu1 %799  ;;  %3147 = vmatpush3.bf16.msra.mxu0 %v3303_v5  ;;  %3223 = vmatpush3.bf16.msra.mxu1 %v3303_v5 }
  0x9c   :  { %v4508_v0 = vpop.permute.xlu0 %797  ;;  %3148 = vmatprep.subr.bf16.mxu0 %v3304_v31  ;;  %3219 = vmatprep.subr.bf16.mxu1 %v3304_v31 }
  0x9d   :  { %1128 = vrot.lane.b32.xlu0 %v6245_v39, %s3628_s17  ;;  %1166 = vrot.lane.b32.xlu1 %v4245_v16, %s3629_s20 }
  0x9f   :  { %v4514_v58 = vpop.permute.xlu1 %803  ;;  %3149 = vmatpush3.bf16.msra.mxu0 %v3304_v31  ;;  %3224 = vmatpush3.bf16.msra.mxu1 %v3304_v31  ;;  %v6250_v31 = vld [vmem:[#allocation6_spill] sm:$0xff] }
  0xa0   :  { %v4521_v36 = vpop.permute.xlu0 %801  ;;  %3150 = vmatprep.subr.bf16.mxu0 %v3305_v48  ;;  %3220 = vmatprep.subr.bf16.mxu1 %v3305_v48 }
  0xa1   :  { %1196 = vrot.lane.b32.xlu0 %v4336_v7, %s3629_s20  ;;  %1238 = vrot.lane.b32.xlu1 %v4469_v61, %s3630_s25 }
  0xa3   :  { %v4528_v35 = vpop.permute.xlu1 %807  ;;  %3151 = vmatpush3.bf16.msra.mxu0 %v3305_v48  ;;  %3225 = vmatpush3.bf16.msra.mxu1 %v3305_v48 }
  0xa4   :  { %v4534_v9 = vpop.permute.xlu0 %805 }
  0xa5   :  { %1198 = vrot.lane.b32.xlu0 %v4354_v50, %s3629_s20  ;;  %1240 = vrot.lane.b32.xlu1 %v4489_v60, %s3630_s25 }
  0xa7   :  { %v4541_v24 = vpop.permute.xlu1 %811 }
  0xa8   :  { %6246 = vst [vmem:[#allocation43_spill] sm:$0xff] %v4541_v24  ;;  %v4545_v7 = vpop.permute.xlu0 %809  ;;  %v6283_v24 = vld [vmem:[#allocation11_spill] sm:$0xff] }
  0xa9   :  { %6247 = vst [vmem:[#allocation46_spill] sm:$0xff] %v4545_v7  ;;  %1270 = vrot.lane.b32.xlu0 %v3970_v13, %s3630_s25  ;;  %1332 = vrot.lane.b32.xlu1 %v6243_v18, %s3631_s4  ;;  %v6254_v18 = vld [vmem:[#allocation21_spill] sm:$0xff] }
  0xab   :  { %v4552_v5 = vpop.permute.xlu1 %815 }
  0xac   :  { %6248 = vst [vmem:[#allocation7_spill] sm:$0xff] %v4552_v5  ;;  %v4556_v1 = vpop.permute.xlu0 %813 }
  0xad   :  { %6249 = vst [vmem:[#allocation5_spill] sm:$0xff] %v4556_v1  ;;  %1272 = vrot.lane.b32.xlu0 %v3962_v59, %s3630_s25  ;;  %1334 = vrot.lane.b32.xlu1 %v6250_v31, %s3631_s4  ;;  %v6260_v1 = vld [vmem:[#allocation9_spill] sm:$0xff] }
  0xaf   :  { %v4562_v49 = vpop.permute.xlu1 %819 }
  0xb0   :  { %6251 = vst [vmem:[#allocation20_spill] sm:$0xff] %v4562_v49  ;;  %v4566_v13 = vpop.permute.xlu0 %817 }
  0xb1   :  { %1364 = vrot.lane.b32.xlu0 %v6245_v39, %s3631_s4  ;;  %6252 = vst [vmem:[#allocation22_spill] sm:$0xff] %v4566_v13  ;;  %1402 = vrot.lane.b32.xlu1 %v4245_v16, %s3632_s1  ;;  %v6259_v13 = vld [vmem:[#allocation28_spill] sm:$0xff] }
  0xb3   :  { %v4570_v48 = vpop.permute.xlu1 %823 }
  0xb4   :  { %6253 = vst [vmem:[#allocation6_spill] sm:$0xff] %v4570_v48 }
  0xb5   :  { %1366 = vrot.lane.b32.xlu0 %v6254_v18, %s3631_s4  ;;  %v4574_v5 = vpop.permute.xlu0 %821  ;;  %1404 = vrot.lane.b32.xlu1 %v4239_v8, %s3632_s1 }
  0xb6   :  { %6255 = vst [vmem:[#allocation21_spill] sm:$0xff] %v4574_v5 }
  0xb7   :  { %v4580_v39 = vpop.permute.xlu1 %827 }
  0xb8   :  { %6256 = vst [vmem:[#allocation55_spill] sm:$0xff] %v4580_v39 }
  0xb9   :  { %1434 = vrot.lane.b32.xlu0 %v4354_v50, %s3632_s1  ;;  %v4582_v49 = vpop.permute.xlu0 %825  ;;  %1036 = vrot.lane.b32.xlu1 %v3962_v59, %s3627_s12  ;;  %v4597_v50 = vld [vmem:[%s6055_s0 + $0x30] sm:$0xff]  }
  0xba   :  { %6257 = vst [vmem:[#allocation56_spill] sm:$0xff] %v4582_v49 }
  0xbb   :  { %v4588_v16 = vpop.permute.xlu1 %928 }
  0xbd   :  { %1436 = vrot.lane.b32.xlu0 %v4348_v57, %s3632_s1  ;;  %v4590_v48 = vpop.permute.xlu0 %926  ;;  %1038 = vrot.lane.b32.xlu1 %v4017_v11, %s3627_s12 }
  0xbf   :  { %v4601_v39 = vpop.permute.xlu1 %932 }
  0xc1   :  { %1006 = vrot.lane.b32.xlu0 %v4597_v50, %s3627_s12  ;;  %v4603_v59 = vpop.permute.xlu0 %930  ;;  %1130 = vrot.lane.b32.xlu1 %v6254_v18, %s3628_s17 }
  0xc3   :  { %v4609_v49 = vpop.permute.xlu1 %936 }
  0xc4   :  { %6258 = vst [vmem:[#allocation57_spill] sm:$0xff] %v4609_v49  ;;  %v4791_v49 = vld [vmem:[%s6055_s0 + $0x60] sm:$0xff]  }
  0xc5   :  { %1098 = vrot.lane.b32.xlu0 %v6250_v31, %s3628_s17  ;;  %v4611_v5 = vpop.permute.xlu0 %934  ;;  %1132 = vrot.lane.b32.xlu1 %v6259_v13, %s3628_s17 }
  0xc7   :  { %v4617_v2 = vpop.permute.xlu1 %940 }
  0xc8   :  { %6261 = vst [vmem:[#allocation28_spill] sm:$0xff] %v4617_v2  ;;  %v4703_v2 = vld [vmem:[%s6055_s0 + $0x48] sm:$0xff]  }
  0xc9   :  { %1100 = vrot.lane.b32.xlu0 %v6260_v1, %s3628_s17  ;;  %v4619_v43 = vpop.permute.xlu0 %938  ;;  %1200 = vrot.lane.b32.xlu1 %v4348_v57, %s3629_s20  ;;  %6277 = vst [vmem:[#allocation68_spill] sm:$0xff] %v4703_v2 }
  0xca   :  { %6262 = vst [vmem:[#allocation9_spill] sm:$0xff] %v4619_v43 }
  0xcb   :  { %v4625_v31 = vpop.permute.xlu1 %944 }
  0xcc   :  { %6263 = vst [vmem:[#allocation58_spill] sm:$0xff] %v4625_v31  ;;  %v4650_v31 = vld [vmem:[%s6055_s0 + $0x3c] sm:$0xff]  }
  0xcd   :  { %1168 = vrot.lane.b32.xlu0 %v4239_v8, %s3629_s20  ;;  %v4627_v18 = vpop.permute.xlu0 %942  ;;  %1202 = vrot.lane.b32.xlu1 %v4372_v51, %s3629_s20 }
  0xce   :  { %6264 = vst [vmem:[#allocation59_spill] sm:$0xff] %v4627_v18  ;;  %v6272_v18 = vld [vmem:[#allocation8_spill] sm:$0xff] }
  0xcf   :  { %v4633_v28 = vpop.permute.xlu1 %948 }
  0xd0   :  { %6265 = vst [vmem:[#allocation60_spill] sm:$0xff] %v4633_v28 }
  0xd1   :  { %1170 = vrot.lane.b32.xlu0 %v4259_v33, %s3629_s20  ;;  %v4635_v45 = vpop.permute.xlu0 %946  ;;  %1274 = vrot.lane.b32.xlu1 %v4017_v11, %s3630_s25 }
  0xd2   :  { %6266 = vst [vmem:[#allocation61_spill] sm:$0xff] %v4635_v45  ;;  %v6271_v45 = vld [vmem:[#allocation24_spill] sm:$0xff] }
  0xd3   :  { %v4641_v8 = vpop.permute.xlu1 %952 }
  0xd4   :  { %6267 = vst [vmem:[#allocation62_spill] sm:$0xff] %v4641_v8 }
  0xd5   :  { %1242 = vrot.lane.b32.xlu0 %v4597_v50, %s3630_s25  ;;  %v4643_v57 = vpop.permute.xlu0 %950  ;;  %1276 = vrot.lane.b32.xlu1 %v3979_v42, %s3630_s25 }
  0xd6   :  { %6268 = vst [vmem:[#allocation63_spill] sm:$0xff] %v4643_v57 }
  0xd7   :  { %v4654_v28 = vpop.permute.xlu1 %956 }
  0xd8   :  { %6269 = vst [vmem:[#allocation64_spill] sm:$0xff] %v4654_v28 }
  0xd9   :  { %1244 = vrot.lane.b32.xlu0 %v4650_v31, %s3630_s25  ;;  %v4656_v11 = vpop.permute.xlu0 %954  ;;  %1368 = vrot.lane.b32.xlu1 %v6259_v13, %s3631_s4 }
  0xda   :  { %6270 = vst [vmem:[#allocation65_spill] sm:$0xff] %v4656_v11 }
  0xdb   :  { %v4662_v8 = vpop.permute.xlu1 %960 }
  0xdd   :  { %1336 = vrot.lane.b32.xlu0 %v6260_v1, %s3631_s4  ;;  %v4664_v57 = vpop.permute.xlu0 %958  ;;  %1370 = vrot.lane.b32.xlu1 %v6271_v45, %s3631_s4 }
  0xdf   :  { %v4670_v3 = vpop.permute.xlu1 %964 }
  0xe1   :  { %1338 = vrot.lane.b32.xlu0 %v6272_v18, %s3631_s4  ;;  %v4672_v28 = vpop.permute.xlu0 %962  ;;  %1438 = vrot.lane.b32.xlu1 %v4372_v51, %s3632_s1 }
  0xe3   :  { %v4678_v1 = vpop.permute.xlu1 %968 }
  0xe5   :  { %1406 = vrot.lane.b32.xlu0 %v4259_v33, %s3632_s1  ;;  %v4680_v13 = vpop.permute.xlu0 %966  ;;  %1440 = vrot.lane.b32.xlu1 %v4363_v40, %s3632_s1 }
  0xe7   :  { %v4686_v11 = vpop.permute.xlu1 %972 }
  0xe8   :  { %6273 = vst [vmem:[#allocation24_spill] sm:$0xff] %v4686_v11  ;;  %v6282_v11 = vld [vmem:[#allocation33_spill] sm:$0xff] }
  0xe9   :  { %1408 = vrot.lane.b32.xlu0 %v4252_v23, %s3632_s1  ;;  %v4688_v29 = vpop.permute.xlu0 %970  ;;  %1040 = vrot.lane.b32.xlu1 %v3979_v42, %s3627_s12 }
  0xea   :  { %6274 = vst [vmem:[#allocation8_spill] sm:$0xff] %v4688_v29  ;;  %v6288_v29 = vld [vmem:[#allocation10_spill] sm:$0xff] }
  0xeb   :  { %v4694_v33 = vpop.permute.xlu1 %976 }
  0xec   :  { %6275 = vst [vmem:[#allocation66_spill] sm:$0xff] %v4694_v33 }
  0xed   :  { %1008 = vrot.lane.b32.xlu0 %v4650_v31, %s3627_s12  ;;  %v4696_v51 = vpop.permute.xlu0 %974  ;;  %1042 = vrot.lane.b32.xlu1 %v6212_v20, %s3627_s12 }
  0xee   :  { %6276 = vst [vmem:[#allocation67_spill] sm:$0xff] %v4696_v51 }
  0xef   :  { %v4707_v63 = vpop.permute.xlu1 %980 }
  0xf0   :  { %6278 = vst [vmem:[#allocation69_spill] sm:$0xff] %v4707_v63 }
  0xf1   :  { %1010 = vrot.lane.b32.xlu0 %v4703_v2, %s3627_s12  ;;  %v4709_v42 = vpop.permute.xlu0 %978  ;;  %1134 = vrot.lane.b32.xlu1 %v6271_v45, %s3628_s17 }
  0xf2   :  { %6279 = vst [vmem:[#allocation70_spill] sm:$0xff] %v4709_v42 }
  0xf3   :  { %v4715_v33 = vpop.permute.xlu1 %984 }
  0xf4   :  { %6280 = vst [vmem:[#allocation71_spill] sm:$0xff] %v4715_v33 }
  0xf5   :  { %1102 = vrot.lane.b32.xlu0 %v6272_v18, %s3628_s17  ;;  %v4717_v51 = vpop.permute.xlu0 %982  ;;  %1136 = vrot.lane.b32.xlu1 %v6282_v11, %s3628_s17 }
  0xf6   :  { %6281 = vst [vmem:[#allocation72_spill] sm:$0xff] %v4717_v51 }
  0xf7   :  { %v4723_v43 = vpop.permute.xlu1 %988 }
  0xf8   :  { %6284 = vst [vmem:[#allocation33_spill] sm:$0xff] %v4723_v43  ;;  %v4750_v43 = vld [vmem:[%s6055_s0 + $0x54] sm:$0xff]  }
  0xf9   :  { %1104 = vrot.lane.b32.xlu0 %v6283_v24, %s3628_s17  ;;  %v4725_v63 = vpop.permute.xlu0 %986  ;;  %1204 = vrot.lane.b32.xlu1 %v4363_v40, %s3629_s20  ;;  %6286 = vst [vmem:[#allocation73_spill] sm:$0xff] %v4750_v43 }
  0xfa   :  { %6285 = vst [vmem:[#allocation11_spill] sm:$0xff] %v4725_v63 }
  0xfb   :  { %v1003_v45 = vpop.permute.xlu1 %1002 }
  0xfd   :  { %1172 = vrot.lane.b32.xlu0 %v4252_v23, %s3629_s20  ;;  %v1001_v18 = vpop.permute.xlu0 %1000  ;;  %1206 = vrot.lane.b32.xlu1 %v4390_v52, %s3629_s20 }
  0xff   :  { %v4735_v33 = vpop.permute.xlu1 %1032 }
 0x101   :  { %1174 = vrot.lane.b32.xlu0 %v4273_v53, %s3629_s20  ;;  %v4737_v51 = vpop.permute.xlu0 %1004  ;;  %1278 = vrot.lane.b32.xlu1 %v6212_v20, %s3630_s25 }
 0x103   :  { %v1095_v40 = vpop.permute.xlu1 %1094 }
 0x105   :  { %1246 = vrot.lane.b32.xlu0 %v4703_v2, %s3630_s25  ;;  %v4743_v23 = vpop.permute.xlu0 %1034  ;;  %1280 = vrot.lane.b32.xlu1 %v4022_v38, %s3630_s25 }
 0x107   :  { %v1097_v63 = vpop.permute.xlu1 %1096 }
 0x109   :  { %1248 = vrot.lane.b32.xlu0 %v4750_v43, %s3630_s25  ;;  %1372 = vrot.lane.b32.xlu1 %v6282_v11, %s3631_s4 }
 0x10b   :  { %v1127_v42 = vpop.permute.xlu0 %1126  ;;  %v1165_v20 = vpop.permute.xlu1 %1164 }
 0x10d   :  { %1340 = vrot.lane.b32.xlu0 %v6283_v24, %s3631_s4  ;;  %1374 = vrot.lane.b32.xlu1 %v6287_v14, %s3631_s4 }
 0x10f   :  { %v4758_v2 = vpop.permute.xlu0 %1128  ;;  %v1167_v7 = vpop.permute.xlu1 %1166 }
 0x111   :  { %1342 = vrot.lane.b32.xlu0 %v6288_v29, %s3631_s4  ;;  %1442 = vrot.lane.b32.xlu1 %v4390_v52, %s3632_s1  ;;  %v3577_v52 = vld [vmem:[%s6055_s0] sm:$0xff]  }
 0x112   :  { %v1468_v47 = vsel %vm1466_vm3, %v3577_v52, %v4367_v41 }
 0x113   :  { %v1197_v25 = vpop.permute.xlu0 %1196  ;;  %v1239_v11 = vpop.permute.xlu1 %1238 }
 0x115   :  { %1410 = vrot.lane.b32.xlu0 %v4273_v53, %s3632_s1  ;;  %1444 = vrot.lane.b32.xlu1 %v4381_v4, %s3632_s1 }
 0x117   :  { %v4768_v19 = vpop.permute.xlu0 %1198  ;;  %v1241_v24 = vpop.permute.xlu1 %1240 }
 0x119   :  { %1412 = vrot.lane.b32.xlu0 %v4266_v55, %s3632_s1  ;;  %1044 = vrot.lane.b32.xlu1 %v4022_v38, %s3627_s12  ;;  %v1533_v38 = vsel %vm1531_vm4, %v1468_v47, %v4590_v48 }
 0x11b   :  { %v1271_v54 = vpop.permute.xlu0 %1270  ;;  %v1333_v53 = vpop.permute.xlu1 %1332 }
 0x11d   :  { %1012 = vrot.lane.b32.xlu0 %v4750_v43, %s3627_s12  ;;  %1046 = vrot.lane.b32.xlu1 %v6216_v37, %s3627_s12  ;;  %v1598_v43 = vsel %vm1596_vm5, %v1533_v38, %v1001_v18  ;;  %v1470_v37 = vsel %vm1466_vm3, %v4478_v26, %v4387_v30 }
 0x11e   :  { %v1663_v52 = vsel %vm1661_vm6, %v1598_v43, %v1095_v40  ;;  %v1535_v18 = vsel %vm1531_vm4, %v1470_v37, %v4588_v16  ;;  %v3579_v43 = vld [vmem:[%s6055_s0 + $0xd8] sm:$0xff]  }
 0x11f   :  { %v1273_v44 = vpop.permute.xlu0 %1272  ;;  %v1335_v41 = vpop.permute.xlu1 %1334  ;;  %v1728_v47 = vsel %vm1726_vm7, %v1663_v52, %v1165_v20  ;;  %v1500_v30 = vsel %vm1466_vm3, %v3579_v43, %v4508_v0  ;;  %v1600_v26 = vsel %vm1596_vm5, %v1535_v18, %v1003_v45  ;;  %v6289_v45 = vld [vmem:[#allocation39_spill] sm:$0xff] }
 0x120   :  { %v1793_v38 = vsel %vm1791_vm8, %v1728_v47, %v1239_v11  ;;  %v1565_v16 = vsel %vm1531_vm4, %v1500_v30, %v4664_v57  ;;  %v1665_v20 = vsel %vm1661_vm6, %v1600_v26, %v1097_v63  ;;  %v3580_v63 = vld [vmem:[%s6055_s0 + $0xe4] sm:$0xff]  }
 0x121   :  { %1014 = vrot.lane.b32.xlu0 %v4791_v49, %s3627_s12  ;;  %1138 = vrot.lane.b32.xlu1 %v6287_v14, %s3628_s17  ;;  %v1858_v40 = vsel %vm1856_vm9, %v1793_v38, %v1333_v53  ;;  %v1630_v52 = vsel %vm1596_vm5, %v1565_v16, %v4735_v33  ;;  %v1730_v0 = vsel %vm1726_vm7, %v1665_v20, %v1167_v7  ;;  %v6290_v47 = vld [vmem:[#allocation13_spill] sm:$0xff]  ;;  %v4882_v16 = vld [vmem:[%s6055_s0 + $0x6c] sm:$0xff]  }
 0x122   :  { %v1795_v53 = vsel %vm1791_vm8, %v1730_v0, %v1241_v24  ;;  %v1502_v57 = vsel %vm1466_vm3, %v3580_v63, %v4501_v62 }
 0x123   :  { %v1365_v48 = vpop.permute.xlu0 %1364  ;;  %v1403_v14 = vpop.permute.xlu1 %1402  ;;  %v1860_v7 = vsel %vm1856_vm9, %v1795_v53, %v1335_v41 }
 0x124   :  { %v1923_v11 = vsel %vm1921_vm10, %v1858_v40, %v1403_v14  ;;  %v4875_v14 = vld [vmem:[%s6055_s0 + $0x144] sm:$0xff]  }
 0x125   :  { %1106 = vrot.lane.b32.xlu0 %v6288_v29, %s3628_s17  ;;  %1140 = vrot.lane.b32.xlu1 %v6289_v45, %s3628_s17  ;;  %v1695_v29 = vsel %vm1661_vm6, %v1630_v52, %v1127_v42  ;;  %v1567_v42 = vsel %vm1531_vm4, %v1502_v57, %v4662_v8 }
 0x126   :  { %3152 = vmatprep.mubr.msk.bf16.mxu0 %vm2029_vm11, %v1923_v11  ;;  %v1760_v33 = vsel %vm1726_vm7, %v1695_v29, %v1197_v25  ;;  %v1632_v43 = vsel %vm1596_vm5, %v1567_v42, %v4743_v23  ;;  %v6292_v29 = vld [vmem:[#allocation12_spill] sm:$0xff]  ;;  %v4914_v42 = vld [vmem:[%s6055_s0 + $0x150] sm:$0xff]  }
 0x127   :  { %v1367_v37 = vpop.permute.xlu0 %1366  ;;  %v1405_v18 = vpop.permute.xlu1 %1404  ;;  %v1825_v24 = vsel %vm1791_vm8, %v1760_v33, %v1271_v54  ;;  %v1697_v25 = vsel %vm1661_vm6, %v1632_v43, %v4758_v2 }
 0x128   :  { %v1925_v38 = vsel %vm1921_vm10, %v1860_v7, %v1405_v18  ;;  %v1890_v62 = vsel %vm1856_vm9, %v1825_v24, %v1365_v48  ;;  %v1762_v54 = vsel %vm1726_vm7, %v1697_v25, %v4768_v19 }
 0x129   :  { %1108 = vrot.lane.b32.xlu0 %v6290_v47, %s3628_s17  ;;  %1208 = vrot.lane.b32.xlu1 %v4381_v4, %s3629_s20  ;;  %v1827_v41 = vsel %vm1791_vm8, %v1762_v54, %v1273_v44  ;;  %v4866_v44 = vld [vmem:[%s6055_s0 + $0x138] sm:$0xff]  }
 0x12a   :  { %3153 = vmatmul.mubr.msk.bf16.vlgmr.msra.gmra.mxu0 %vm2029_vm11, %v1925_v38  ;;  %v1892_v4 = vsel %vm1856_vm9, %v1827_v41, %v1367_v37  ;;  %v6291_v37 = vld [vmem:[#allocation37_spill] sm:$0xff]  ;;  %v1472_v38 = vsel %vm1466_vm3, %v4469_v61, %v4360_v34 }
 0x12b   :  { %v1435_v30 = vpop.permute.xlu0 %1434  ;;  %v1037_v23 = vpop.permute.xlu1 %1036  ;;  %v3587_v34 = vld [vmem:[%s6055_s0 + $0xfc] sm:$0xff]  }
 0x12c   :  { %v1955_v8 = vsel %vm1921_vm10, %v1890_v62, %v1435_v30  ;;  %v1537_v30 = vsel %vm1531_vm4, %v1472_v38, %v4603_v59  ;;  %v1506_v61 = vsel %vm1466_vm3, %v3587_v34, %v4514_v58  ;;  %v1474_v58 = vsel %vm1466_vm3, %v4489_v60, %v4378_v12  ;;  %v4999_v38 = vld [vmem:[%s6055_s0 + $0x15c] sm:$0xff]  }
 0x12d   :  { %1176 = vrot.lane.b32.xlu0 %v4266_v55, %s3629_s20  ;;  %3184 = vmatprep.mubr.msk.bf16.mxu1 %vm2029_vm11, %v1955_v8  ;;  %v1602_v25 = vsel %vm1596_vm5, %v1537_v30, %v4737_v51  ;;  %v1571_v59 = vsel %vm1531_vm4, %v1506_v61, %v4670_v3  ;;  %v1539_v3 = vsel %vm1531_vm4, %v1474_v58, %v4601_v39  ;;  %v6295_v61 = vld [vmem:[#allocation41_spill] sm:$0xff] }
 0x12e   :  { %1210 = vrot.lane.b32.xlu1 %v4406_v6, %s3629_s20 }
 0x12f   :  { %v1437_v48 = vpop.permute.xlu0 %1436  ;;  %v1039_v19 = vpop.permute.xlu1 %1038 }
 0x130   :  { %v1957_v2 = vsel %vm1921_vm10, %v1892_v4, %v1437_v48  ;;  %v1636_v4 = vsel %vm1596_vm5, %v1571_v59, %v1039_v19 }
 0x131   :  { %1178 = vrot.lane.b32.xlu0 %v4287_v56, %s3629_s20  ;;  %3185 = vmatmul.mubr.msk.bf16.vlgmr.msra.gmra.mxu1 %vm2029_vm11, %v1957_v2 }
 0x132   :  { %1282 = vrot.lane.b32.xlu1 %v4866_v44, %s3630_s25 }
 0x133   :  { %v4861_v55 = vpop.permute.xlu0 %1006  ;;  %v1131_v26 = vpop.permute.xlu1 %1130 }
 0x134   :  { %v1604_v12 = vsel %vm1596_vm5, %v1539_v3, %v4861_v55  ;;  %v1476_v3 = vsel %vm1466_vm3, %v4597_v50, %v4412_v17  ;;  %v3593_v17 = vld [vmem:[%s6055_s0 + $0x114] sm:$0xff]  }
 0x135   :  { %1250 = vrot.lane.b32.xlu0 %v4791_v49, %s3630_s25  ;;  %v1510_v50 = vsel %vm1466_vm3, %v3593_v17, %v4528_v35 }
 0x136   :  { %1284 = vrot.lane.b32.xlu1 %v4875_v14, %s3630_s25 }
 0x137   :  { %v1099_v40 = vpop.permute.xlu0 %1098  ;;  %v1133_v20 = vpop.permute.xlu1 %1132 }
 0x139   :  { %1252 = vrot.lane.b32.xlu0 %v4882_v16, %s3630_s25 }
 0x13a   :  { %1376 = vrot.lane.b32.xlu1 %v6289_v45, %s3631_s4 }
 0x13b   :  { %v1101_v11 = vpop.permute.xlu0 %1100  ;;  %v1201_v52 = vpop.permute.xlu1 %1200 }
 0x13c   :  { %v1669_v39 = vsel %vm1661_vm6, %v1604_v12, %v1101_v11 }
 0x13d   :  { %1344 = vrot.lane.b32.xlu0 %v6290_v47, %s3631_s4 }
 0x13e   :  { %1378 = vrot.lane.b32.xlu1 %v6291_v37, %s3631_s4 }
 0x13f   :  { %v1169_v0 = vpop.permute.xlu0 %1168  ;;  %v1203_v53 = vpop.permute.xlu1 %1202 }
 0x141   :  { %1346 = vrot.lane.b32.xlu0 %v6292_v29, %s3631_s4 }
 0x142   :  { %1446 = vrot.lane.b32.xlu1 %v4406_v6, %s3632_s1 }
 0x143   :  { %v1171_v63 = vpop.permute.xlu0 %1170  ;;  %v1275_v45 = vpop.permute.xlu1 %1274 }
 0x145   :  { %1414 = vrot.lane.b32.xlu0 %v4287_v56, %s3632_s1  ;;  %v3584_v56 = vld [vmem:[%s6055_s0 + $0xf0] sm:$0xff]  }
 0x146   :  { %1448 = vrot.lane.b32.xlu1 %v4397_v15, %s3632_s1  ;;  %v1504_v47 = vsel %vm1466_vm3, %v3584_v56, %v4521_v36  ;;  %v4927_v36 = vld [vmem:[%s6055_s0 + $0x78] sm:$0xff]  }
 0x147   :  { %v1243_v57 = vpop.permute.xlu0 %1242  ;;  %v1277_v33 = vpop.permute.xlu1 %1276  ;;  %v1569_v24 = vsel %vm1531_vm4, %v1504_v47, %v4672_v28 }
 0x148   :  { %v1634_v43 = vsel %vm1596_vm5, %v1569_v24, %v1037_v23  ;;  %v1667_v23 = vsel %vm1661_vm6, %v1602_v25, %v1099_v40  ;;  %v6296_v25 = vld [vmem:[#allocation14_spill] sm:$0xff] }
 0x149   :  { %1416 = vrot.lane.b32.xlu0 %v4280_v21, %s3632_s1  ;;  %v1699_v28 = vsel %vm1661_vm6, %v1634_v43, %v1131_v26  ;;  %v1732_v51 = vsel %vm1726_vm7, %v1667_v23, %v1169_v0  ;;  %v1701_v26 = vsel %vm1661_vm6, %v1636_v4, %v1133_v20  ;;  %v5006_v43 = vld [vmem:[%s6055_s0 + $0x84] sm:$0xff]  }
 0x14a   :  { %1048 = vrot.lane.b32.xlu1 %v4875_v14, %s3627_s12  ;;  %v1764_v8 = vsel %vm1726_vm7, %v1699_v28, %v1201_v52  ;;  %v1797_v40 = vsel %vm1791_vm8, %v1732_v51, %v1243_v57  ;;  %v1766_v60 = vsel %vm1726_vm7, %v1701_v26, %v1203_v53  ;;  %v6294_v53 = vld [vmem:[#allocation15_spill] sm:$0xff] }
 0x14b   :  { %v1245_v7 = vpop.permute.xlu0 %1244  ;;  %v1369_v6 = vpop.permute.xlu1 %1368  ;;  %v1829_v41 = vsel %vm1791_vm8, %v1764_v8, %v1275_v45  ;;  %v1831_v20 = vsel %vm1791_vm8, %v1766_v60, %v1277_v33  ;;  %v1734_v45 = vsel %vm1726_vm7, %v1669_v39, %v1171_v63  ;;  %v1478_v39 = vsel %vm1466_vm3, %v4650_v31, %v4401_v22 }
 0x14c   :  { %v1894_v48 = vsel %vm1856_vm9, %v1829_v41, %v1369_v6  ;;  %v1799_v6 = vsel %vm1791_vm8, %v1734_v45, %v1245_v7 }
 0x14d   :  { %1016 = vrot.lane.b32.xlu0 %v4882_v16, %s3627_s12 }
 0x14e   :  { %1050 = vrot.lane.b32.xlu1 %v4914_v42, %s3627_s12 }
 0x14f   :  { %v1337_v18 = vpop.permute.xlu0 %1336  ;;  %v1371_v62 = vpop.permute.xlu1 %1370 }
 0x150   :  { %v1862_v19 = vsel %vm1856_vm9, %v1797_v40, %v1337_v18  ;;  %v1896_v55 = vsel %vm1856_vm9, %v1831_v20, %v1371_v62 }
 0x151   :  { %1018 = vrot.lane.b32.xlu0 %v4927_v36, %s3627_s12 }
 0x152   :  { %1142 = vrot.lane.b32.xlu1 %v6291_v37, %s3628_s17  ;;  %v6293_v37 = vld [vmem:[#allocation45_spill] sm:$0xff] }
 0x153   :  { %v1339_v54 = vpop.permute.xlu0 %1338  ;;  %v1439_v2 = vpop.permute.xlu1 %1438 }
 0x154   :  { %v1959_v52 = vsel %vm1921_vm10, %v1894_v48, %v1439_v2  ;;  %v1864_v11 = vsel %vm1856_vm9, %v1799_v6, %v1339_v54  ;;  %v5038_v48 = vld [vmem:[%s6055_s0 + $0x168] sm:$0xff]  }
 0x155   :  { %1110 = vrot.lane.b32.xlu0 %v6292_v29, %s3628_s17  ;;  %3188 = vmatprep.mubr.msk.bf16.mxu1 %vm2029_vm11, %v1959_v52  ;;  %v1541_v52 = vsel %vm1531_vm4, %v1476_v3, %v4611_v5  ;;  %v1575_v5 = vsel %vm1531_vm4, %v1510_v50, %v4678_v1  ;;  %v6302_v3 = vld [vmem:[#allocation47_spill] sm:$0xff]  ;;  %v6304_v50 = vld [vmem:[#allocation26_spill] sm:$0xff] }
 0x156   :  { %1144 = vrot.lane.b32.xlu1 %v6293_v37, %s3628_s17 }
 0x157   :  { %v1407_v0 = vpop.permute.xlu0 %1406  ;;  %v1441_v57 = vpop.permute.xlu1 %1440 }
 0x158   :  { %v1927_v29 = vsel %vm1921_vm10, %v1862_v19, %v1407_v0  ;;  %v1961_v56 = vsel %vm1921_vm10, %v1896_v55, %v1441_v57  ;;  %v6297_v55 = vld [vmem:[#allocation57_spill] sm:$0xff] }
 0x159   :  { %1112 = vrot.lane.b32.xlu0 %v6294_v53, %s3628_s17  ;;  %3156 = vmatprep.mubr.msk.bf16.mxu0 %vm2029_vm11, %v1927_v29  ;;  %v1543_v1 = vsel %vm1531_vm4, %v1478_v39, %v6297_v55  ;;  %v6308_v55 = vld [vmem:[#allocation25_spill] sm:$0xff] }
 0x15a   :  { %1212 = vrot.lane.b32.xlu1 %v4397_v15, %s3629_s20  ;;  %3189 = vmatmul.mubr.msk.bf16.gmra.mxu1 %vm2029_vm11, %v1961_v56 }
 0x15b   :  { %v1409_v47 = vpop.permute.xlu0 %1408  ;;  %v1041_v33 = vpop.permute.xlu1 %1040 }
 0x15c   :  { %v1929_v63 = vsel %vm1921_vm10, %v1864_v11, %v1409_v47  ;;  %v6298_v47 = vld [vmem:[#allocation48_spill] sm:$0xff] }
 0x15d   :  { %1180 = vrot.lane.b32.xlu0 %v4280_v21, %s3629_s20  ;;  %3157 = vmatmul.mubr.msk.bf16.gmra.mxu0 %vm2029_vm11, %v1929_v63 }
 0x15e   :  { %1214 = vrot.lane.b32.xlu1 %v4424_v46, %s3629_s20 }
 0x15f   :  { %v1009_v18 = vpop.permute.xlu0 %1008  ;;  %v1043_v7 = vpop.permute.xlu1 %1042 }
 0x160   :  { %v1606_v12 = vsel %vm1596_vm5, %v1541_v52, %v1009_v18  ;;  %v1640_v35 = vsel %vm1596_vm5, %v1575_v5, %v1043_v7 }
 0x161   :  { %1182 = vrot.lane.b32.xlu0 %v4301_v10, %s3629_s20 }
 0x162   :  { %1286 = vrot.lane.b32.xlu1 %v4914_v42, %s3630_s25 }
 0x163   :  { %v4990_v24 = vpop.permute.xlu0 %1010  ;;  %v1135_v21 = vpop.permute.xlu1 %1134 }
 0x164   :  { %v1608_v22 = vsel %vm1596_vm5, %v1543_v1, %v4990_v24  ;;  %v6309_v1 = vld [vmem:[#allocation68_spill] sm:$0xff] }
 0x165   :  { %1254 = vrot.lane.b32.xlu0 %v4927_v36, %s3630_s25 }
 0x166   :  { %1288 = vrot.lane.b32.xlu1 %v4999_v38, %s3630_s25 }
 0x167   :  { %v1103_v15 = vpop.permute.xlu0 %1102  ;;  %v1137_v62 = vpop.permute.xlu1 %1136 }
 0x168   :  { %v1671_v0 = vsel %vm1661_vm6, %v1606_v12, %v1103_v15  ;;  %v6305_v12 = vld [vmem:[#allocation51_spill] sm:$0xff] }
 0x169   :  { %1256 = vrot.lane.b32.xlu0 %v5006_v43, %s3630_s25 }
 0x16a   :  { %1380 = vrot.lane.b32.xlu1 %v6293_v37, %s3631_s4 }
 0x16b   :  { %v1105_v30 = vpop.permute.xlu0 %1104  ;;  %v1205_v28 = vpop.permute.xlu1 %1204 }
 0x16c   :  { %v1673_v63 = vsel %vm1661_vm6, %v1608_v22, %v1105_v30 }
 0x16d   :  { %1348 = vrot.lane.b32.xlu0 %v6294_v53, %s3631_s4  ;;  %v1705_v53 = vsel %vm1661_vm6, %v1640_v35, %v1137_v62 }
 0x16e   :  { %1382 = vrot.lane.b32.xlu1 %v6295_v61, %s3631_s4 }
 0x16f   :  { %v1173_v34 = vpop.permute.xlu0 %1172  ;;  %v1207_v8 = vpop.permute.xlu1 %1206 }
 0x170   :  { %v1736_v20 = vsel %vm1726_vm7, %v1671_v0, %v1173_v34  ;;  %v1770_v31 = vsel %vm1726_vm7, %v1705_v53, %v1207_v8  ;;  %v3596_v0 = vld [vmem:[%s6055_s0 + $0x120] sm:$0xff]   ;;  %v1480_v53 = vsel %vm1466_vm3, %v6309_v1, %v6308_v55 }
 0x171   :  { %1350 = vrot.lane.b32.xlu0 %v6296_v25, %s3631_s4 }
 0x172   :  { %1450 = vrot.lane.b32.xlu1 %v4424_v46, %s3632_s1 }
 0x173   :  { %v1175_v54 = vpop.permute.xlu0 %1174  ;;  %v1279_v59 = vpop.permute.xlu1 %1278 }
 0x174   :  { %v1738_v7 = vsel %vm1726_vm7, %v1673_v63, %v1175_v54  ;;  %v6300_v54 = vld [vmem:[#allocation29_spill] sm:$0xff]  ;;  %v6311_v63 = vld [vmem:[#allocation43_spill] sm:$0xff] }
 0x175   :  { %1418 = vrot.lane.b32.xlu0 %v4301_v10, %s3632_s1  ;;  %v3590_v10 = vld [vmem:[%s6055_s0 + $0x108] sm:$0xff]  }
 0x176   :  { %1452 = vrot.lane.b32.xlu1 %v4415_v27, %s3632_s1  ;;  %v1508_v4 = vsel %vm1466_vm3, %v3590_v10, %v4534_v9  ;;  %v5051_v9 = vld [vmem:[%s6055_s0 + $0x90] sm:$0xff]  }
 0x177   :  { %v1247_v23 = vpop.permute.xlu0 %1246  ;;  %v1281_v41 = vpop.permute.xlu1 %1280  ;;  %v1573_v2 = vsel %vm1531_vm4, %v1508_v4, %v4680_v13 }
 0x178   :  { %v1638_v26 = vsel %vm1596_vm5, %v1573_v2, %v1041_v33  ;;  %v1801_v57 = vsel %vm1791_vm8, %v1736_v20, %v1247_v23  ;;  %v1835_v33 = vsel %vm1791_vm8, %v1770_v31, %v1281_v41  ;;  %v5161_v20 = vld [vmem:[%s6055_s0 + $0x180] sm:$0xff]  }
 0x179   :  { %1420 = vrot.lane.b32.xlu0 %v4294_v32, %s3632_s1  ;;  %v1703_v13 = vsel %vm1661_vm6, %v1638_v26, %v1135_v21  ;;  %v6299_v21 = vld [vmem:[#allocation17_spill] sm:$0xff]  ;;  %v6303_v26 = vld [vmem:[#allocation16_spill] sm:$0xff] }
 0x17a   :  { %1052 = vrot.lane.b32.xlu1 %v4999_v38, %s3627_s12  ;;  %v1768_v60 = vsel %vm1726_vm7, %v1703_v13, %v1205_v28  ;;  %v6310_v31 = vld [vmem:[#allocation9_spill] sm:$0xff] }
 0x17b   :  { %v1249_v58 = vpop.permute.xlu0 %1248  ;;  %v1373_v46 = vpop.permute.xlu1 %1372  ;;  %v1833_v37 = vsel %vm1791_vm8, %v1768_v60, %v1279_v59  ;;  %v6301_v59 = vld [vmem:[#allocation52_spill] sm:$0xff] }
 0x17c   :  { %v1898_v29 = vsel %vm1856_vm9, %v1833_v37, %v1373_v46  ;;  %v1803_v62 = vsel %vm1791_vm8, %v1738_v7, %v1249_v58  ;;  %v5122_v58 = vld [vmem:[%s6055_s0 + $0x174] sm:$0xff]   ;;  %v5129_v46 = vld [vmem:[%s6055_s0 + $0x9c] sm:$0xff]   ;;  %v6306_v37 = vld [vmem:[#allocation46_spill] sm:$0xff] }
 0x17d   :  { %1020 = vrot.lane.b32.xlu0 %v5006_v43, %s3627_s12  ;;  %v1512_v39 = vsel %vm1466_vm3, %v3596_v0, %v6306_v37 }
 0x17e   :  { %1054 = vrot.lane.b32.xlu1 %v5038_v48, %s3627_s12 }
 0x17f   :  { %v1341_v51 = vpop.permute.xlu0 %1340  ;;  %v1375_v40 = vpop.permute.xlu1 %1374 }
 0x180   :  { %v1866_v56 = vsel %vm1856_vm9, %v1801_v57, %v1341_v51  ;;  %v1900_v24 = vsel %vm1856_vm9, %v1835_v33, %v1375_v40 }
 0x181   :  { %1022 = vrot.lane.b32.xlu0 %v5051_v9, %s3627_s12 }
 0x182   :  { %1146 = vrot.lane.b32.xlu1 %v6295_v61, %s3628_s17 }
 0x183   :  { %v1343_v19 = vpop.permute.xlu0 %1342  ;;  %v1443_v45 = vpop.permute.xlu1 %1442 }
 0x184   :  { %v1963_v6 = vsel %vm1921_vm10, %v1898_v29, %v1443_v45  ;;  %v1868_v30 = vsel %vm1856_vm9, %v1803_v62, %v1343_v19  ;;  %v6307_v29 = vld [vmem:[#allocation8_spill] sm:$0xff] }
 0x185   :  { %1114 = vrot.lane.b32.xlu0 %v6296_v25, %s3628_s17  ;;  %3192 = vmatprep.mubr.msk.bf16.mxu1 %vm2029_vm11, %v1963_v6  ;;  %v1577_v45 = vsel %vm1531_vm4, %v1512_v39, %v6307_v29  ;;  %v5174_v6 = vld [vmem:[%s6055_s0 + $0xa8] sm:$0xff]  }
 0x186   :  { %1148 = vrot.lane.b32.xlu1 %v6298_v47, %s3628_s17 }
 0x187   :  { %v1411_v11 = vpop.permute.xlu0 %1410  ;;  %v1445_v15 = vpop.permute.xlu1 %1444 }
 0x188   :  { %v1931_v18 = vsel %vm1921_vm10, %v1866_v56, %v1411_v11  ;;  %v1965_v28 = vsel %vm1921_vm10, %v1900_v24, %v1445_v15  ;;  %v1545_v56 = vsel %vm1531_vm4, %v1480_v53, %v6310_v31  ;;  %v6319_v53 = vld [vmem:[#allocation54_spill] sm:$0xff] }
 0x189   :  { %1116 = vrot.lane.b32.xlu0 %v6299_v21, %s3628_s17  ;;  %3160 = vmatprep.mubr.msk.bf16.mxu0 %vm2029_vm11, %v1931_v18  ;;  %v5249_v31 = vld [vmem:[%s6055_s0 + $0x18c] sm:$0xff]  }
 0x18a   :  { %1216 = vrot.lane.b32.xlu1 %v4415_v27, %s3629_s20  ;;  %3193 = vmatmul.mubr.msk.bf16.gmra.mxu1 %vm2029_vm11, %v1965_v28 }
 0x18b   :  { %v1413_v34 = vpop.permute.xlu0 %1412  ;;  %v1045_v25 = vpop.permute.xlu1 %1044 }
 0x18c   :  { %v1933_v61 = vsel %vm1921_vm10, %v1868_v30, %v1413_v34  ;;  %v1642_v57 = vsel %vm1596_vm5, %v1577_v45, %v1045_v25  ;;  %v6313_v30 = vld [vmem:[#allocation23_spill] sm:$0xff]  ;;  %v6314_v34 = vld [vmem:[#allocation73_spill] sm:$0xff] }
 0x18d   :  { %1184 = vrot.lane.b32.xlu0 %v4294_v32, %s3629_s20  ;;  %3161 = vmatmul.mubr.msk.bf16.gmra.mxu0 %vm2029_vm11, %v1933_v61  ;;  %v1482_v61 = vsel %vm1466_vm3, %v6314_v34, %v6313_v30  ;;  %v6322_v34 = vld [vmem:[#allocation31_spill] sm:$0xff] }
 0x18e   :  { %1218 = vrot.lane.b32.xlu1 %v6300_v54, %s3629_s20 }
 0x18f   :  { %v1013_v8 = vpop.permute.xlu0 %1012  ;;  %v1047_v23 = vpop.permute.xlu1 %1046 }
 0x190   :  { %v1610_v18 = vsel %vm1596_vm5, %v1545_v56, %v1013_v8  ;;  %v5256_v56 = vld [vmem:[%s6055_s0 + $0xb4] sm:$0xff]  }
 0x191   :  { %1186 = vrot.lane.b32.xlu0 %v6301_v59, %s3629_s20 }
 0x192   :  { %1290 = vrot.lane.b32.xlu1 %v5038_v48, %s3630_s25 }
 0x193   :  { %v5113_v41 = vpop.permute.xlu0 %1014  ;;  %v1139_v32 = vpop.permute.xlu1 %1138 }
 0x194   :  { %v1707_v11 = vsel %vm1661_vm6, %v1642_v57, %v1139_v32  ;;  %v6315_v32 = vld [vmem:[#allocation28_spill] sm:$0xff] }
 0x195   :  { %1258 = vrot.lane.b32.xlu0 %v5051_v9, %s3630_s25 }
 0x196   :  { %1292 = vrot.lane.b32.xlu1 %v5122_v58, %s3630_s25 }
 0x197   :  { %v1107_v27 = vpop.permute.xlu0 %1106  ;;  %v1141_v10 = vpop.permute.xlu1 %1140 }
 0x198   :  { %v1675_v62 = vsel %vm1661_vm6, %v1610_v18, %v1107_v27  ;;  %v6320_v18 = vld [vmem:[#allocation49_spill] sm:$0xff] }
 0x199   :  { %1260 = vrot.lane.b32.xlu0 %v5129_v46, %s3630_s25 }
 0x19a   :  { %1384 = vrot.lane.b32.xlu1 %v6298_v47, %s3631_s4  ;;  %v3599_v47 = vld [vmem:[%s6055_s0 + $0x12c] sm:$0xff]  }
 0x19b   :  { %v1109_v4 = vpop.permute.xlu0 %1108  ;;  %v1209_v51 = vpop.permute.xlu1 %1208  ;;  %v1514_v33 = vsel %vm1466_vm3, %v3599_v47, %v6311_v63 }
 0x19c   :  { %v1772_v7 = vsel %vm1726_vm7, %v1707_v11, %v1209_v51  ;;  %v1547_v51 = vsel %vm1531_vm4, %v1482_v61, %v6315_v32  ;;  %v5293_v61 = vld [vmem:[%s6055_s0 + $0x1a0] ss:$0 sps:$4 sm:$0x11]  }
 0x19d   :  { %1352 = vrot.lane.b32.xlu0 %v6299_v21, %s3631_s4  ;;  %v6312_v21 = vld [vmem:[#allocation24_spill] sm:$0xff] }
 0x19e   :  { %1386 = vrot.lane.b32.xlu1 %v6302_v3, %s3631_s4  ;;  %v1579_v15 = vsel %vm1531_vm4, %v1514_v33, %v6312_v21 }
 0x19f   :  { %v1177_v2 = vpop.permute.xlu0 %1176  ;;  %v1644_v25 = vsel %vm1596_vm5, %v1579_v15, %v1047_v23  ;;  %v1612_v23 = vsel %vm1596_vm5, %v1547_v51, %v5113_v41  ;;  %v5279_v15 = vld [vmem:[%s6055_s0 + $0x198] sm:$0xff]  }
 0x1a0   :  { %v1211_v40 = vpop.permute.xlu1 %1210  ;;  %v1740_v8 = vsel %vm1726_vm7, %v1675_v62, %v1177_v2  ;;  %v1709_v27 = vsel %vm1661_vm6, %v1644_v25, %v1141_v10  ;;  %v1677_v37 = vsel %vm1661_vm6, %v1612_v23, %v1109_v4  ;;  %v1085_v25 = vshll.u32 %v5279_v15, 16 }
 0x1a1   :  { %1354 = vrot.lane.b32.xlu0 %v6303_v26, %s3631_s4  ;;  %v1774_v2 = vsel %vm1726_vm7, %v1709_v27, %v1211_v40  ;;  %v6317_v40 = vld [vmem:[#allocation19_spill] sm:$0xff]  ;;  %v1083_v27 = vshrl.u32 %v5279_v15, 16 }
 0x1a2   :  { %1454 = vrot.lane.b32.xlu1 %v6300_v54, %s3632_s1 }
 0x1a3   :  { %v1179_v52 = vpop.permute.xlu0 %1178 }
 0x1a4   :  { %v1283_v13 = vpop.permute.xlu1 %1282  ;;  %v1742_v39 = vsel %vm1726_vm7, %v1677_v37, %v1179_v52 }
 0x1a5   :  { %1422 = vrot.lane.b32.xlu0 %v6301_v59, %s3632_s1  ;;  %v1837_v28 = vsel %vm1791_vm8, %v1772_v7, %v1283_v13  ;;  %v6321_v7 = vld [vmem:[#allocation18_spill] sm:$0xff] }
 0x1a6   :  { %1456 = vrot.lane.b32.xlu1 %v6304_v50, %s3632_s1 }
 0x1a7   :  { %v1251_v17 = vpop.permute.xlu0 %1250 }
 0x1a8   :  { %v1285_v60 = vpop.permute.xlu1 %1284 }
 0x1a9   :  { %1424 = vrot.lane.b32.xlu0 %v6305_v12, %s3632_s1  ;;  %v1839_v10 = vsel %vm1791_vm8, %v1774_v2, %v1285_v60 }
 0x1aa   :  { %1056 = vrot.lane.b32.xlu1 %v5122_v58, %s3627_s12 }
 0x1ab   :  { %v1253_v19 = vpop.permute.xlu0 %1252 }
 0x1ac   :  { %v1377_v5 = vpop.permute.xlu1 %1376  ;;  %v1807_v29 = vsel %vm1791_vm8, %v1742_v39, %v1253_v19  ;;  %v6318_v19 = vld [vmem:[#allocation36_spill] sm:$0xff] }
 0x1ad   :  { %1024 = vrot.lane.b32.xlu0 %v5129_v46, %s3627_s12  ;;  %v1902_v54 = vsel %vm1856_vm9, %v1837_v28, %v1377_v5  ;;  %v5286_v28 = vld [vmem:[%s6055_s0 + $0xc0] sm:$0xff]  }
 0x1ae   :  { %1058 = vrot.lane.b32.xlu1 %v5161_v20, %s3627_s12  ;;  %v1073_v32 = vshll.u32 %v5286_v28, 16  ;;  %v1071_v2 = vshrl.u32 %v5286_v28, 16 }
 0x1af   :  { %v1345_v35 = vpop.permute.xlu0 %1344 }
 0x1b0   :  { %v1379_v22 = vpop.permute.xlu1 %1378 }
 0x1b1   :  { %1026 = vrot.lane.b32.xlu0 %v5174_v6, %s3627_s12  ;;  %v1904_v41 = vsel %vm1856_vm9, %v1839_v10, %v1379_v22 }
 0x1b2   :  { %1150 = vrot.lane.b32.xlu1 %v6302_v3, %s3628_s17  ;;  %v1805_v3 = vsel %vm1791_vm8, %v1740_v8, %v1251_v17  ;;  %v6323_v8 = vld [vmem:[#allocation53_spill] sm:$0xff] }
 0x1b3   :  { %v1347_v24 = vpop.permute.xlu0 %1346  ;;  %v1870_v5 = vsel %vm1856_vm9, %v1805_v3, %v1345_v35  ;;  %v1087_v3 = vrot.slane %v1085_v25, 1  ;;  %v6328_v25 = vld [vmem:[#allocation27_spill] sm:$0xff] }
 0x1b4   :  { %v1447_v59 = vpop.permute.xlu1 %1446  ;;  %v1872_v4 = vsel %vm1856_vm9, %v1807_v29, %v1347_v24 }
 0x1b5   :  { %1118 = vrot.lane.b32.xlu0 %v6303_v26, %s3628_s17  ;;  %v1967_v13 = vsel %vm1921_vm10, %v1902_v54, %v1447_v59  ;;  %v6316_v26 = vld [vmem:[#allocation50_spill] sm:$0xff]  ;;  %v5301_v59 = vld [vmem:[%s6055_s0 + $0xc8] ss:$0 sps:$4 sm:$0x11]  }
 0x1b6   :  { %1152 = vrot.lane.b32.xlu1 %v6316_v26, %s3628_s17  ;;  %3196 = vmatprep.mubr.msk.bf16.mxu1 %vm2029_vm11, %v1967_v13  ;;  %v1090_v13 = vshll.u32 %v5293_v61, 16 }
 0x1b7   :  { %v1415_v0 = vpop.permute.xlu0 %1414 }
 0x1b8   :  { %v1935_v17 = vsel %vm1921_vm10, %v1870_v5, %v1415_v0  ;;  %v1449_v35 = vpop.permute.xlu1 %1448  ;;  %v1075_v5 = vrot.slane %v1073_v32, 1  ;;  %v1078_v0 = vshll.u32 %v5301_v59, 16  ;;  %v1486_v32 = vsel %vm1466_vm3, %v4882_v16, %v6328_v25  ;;  %v3313_v25 = vld [vmem:[%s6055_s0 + $0xd4] ss:$0 sps:$4 sm:$0x11]  }
 0x1b9   :  { %1120 = vrot.lane.b32.xlu0 %v6317_v40, %s3628_s17  ;;  %3164 = vmatprep.mubr.msk.bf16.mxu0 %vm2029_vm11, %v1935_v17  ;;  %v1969_v45 = vsel %vm1921_vm10, %v1904_v41, %v1449_v35  ;;  %v6325_v17 = vld [vmem:[#allocation67_spill] sm:$0xff]  ;;  %v1088_v41 = vor.u32 %v1087_v3, %v1083_v27  ;;  %v6326_v35 = vld [vmem:[#allocation32_spill] sm:$0xff] }
 0x1ba   :  { %1220 = vrot.lane.b32.xlu1 %v6304_v50, %s3629_s20  ;;  %3197 = vmatmul.mubr.msk.bf16.gmra.mxu1 %vm2029_vm11, %v1969_v45  ;;  %v1484_v29 = vsel %vm1466_vm3, %v4791_v49, %v6326_v35  ;;  %v6329_v27 = vld [vmem:[#allocation7_spill] sm:$0xff] }
 0x1bb   :  { %v1417_v55 = vpop.permute.xlu0 %1416  ;;  %v1518_v49 = vsel %vm1466_vm3, %v4875_v14, %v6329_v27  ;;  %v6331_v14 = vld [vmem:[#allocation58_spill] sm:$0xff] }
 0x1bc   :  { %v1937_v52 = vsel %vm1921_vm10, %v1872_v4, %v1417_v55  ;;  %v1049_v60 = vpop.permute.xlu1 %1048 }
 0x1bd   :  { %1188 = vrot.lane.b32.xlu0 %v6305_v12, %s3629_s20  ;;  %3165 = vmatmul.mubr.msk.bf16.gmra.mxu0 %vm2029_vm11, %v1937_v52 }
 0x1be   :  { %1222 = vrot.lane.b32.xlu1 %v6318_v19, %s3629_s20 }
 0x1bf   :  { %v5232_v1 = vpop.permute.xlu0 %1016 }
 0x1c0   :  { %v5238_v57 = vpop.permute.xlu1 %1050 }
 0x1c1   :  { %1190 = vrot.lane.b32.xlu0 %v6319_v53, %s3629_s20 }
 0x1c2   :  { %1294 = vrot.lane.b32.xlu1 %v5161_v20, %s3630_s25 }
 0x1c3   :  { %v5240_v50 = vpop.permute.xlu0 %1018 }
 0x1c4   :  { %v1143_v12 = vpop.permute.xlu1 %1142 }
 0x1c5   :  { %1262 = vrot.lane.b32.xlu0 %v5174_v6, %s3630_s25 }
 0x1c6   :  { %1296 = vrot.lane.b32.xlu1 %v5249_v31, %s3630_s25 }
 0x1c7   :  { %v1111_v22 = vpop.permute.xlu0 %1110 }
 0x1c8   :  { %v5260_v11 = vpop.permute.xlu1 %1144 }
 0x1c9   :  { %1264 = vrot.lane.b32.xlu0 %v5256_v56, %s3630_s25 }
 0x1ca   :  { %1388 = vrot.lane.b32.xlu1 %v6316_v26, %s3631_s4  ;;  %v6324_v26 = vld [vmem:[#allocation5_spill] sm:$0xff] }
 0x1cb   :  { %v5262_v47 = vpop.permute.xlu0 %1112  ;;  %v1516_v37 = vsel %vm1466_vm3, %v4866_v44, %v6324_v26  ;;  %v6327_v44 = vld [vmem:[#allocation59_spill] sm:$0xff]  ;;  %v1551_v26 = vsel %vm1531_vm4, %v1486_v32, %v6331_v14 }
 0x1cc   :  { %v1213_v63 = vpop.permute.xlu1 %1212  ;;  %v1581_v39 = vsel %vm1531_vm4, %v1516_v37, %v6325_v17  ;;  %v1549_v55 = vsel %vm1531_vm4, %v1484_v29, %v6327_v44 }
 0x1cd   :  { %1356 = vrot.lane.b32.xlu0 %v6317_v40, %s3631_s4  ;;  %v1092_v40 = vrot.slane %v1090_v13, 1  ;;  %v1646_v45 = vsel %vm1596_vm5, %v1581_v39, %v1049_v60  ;;  %v1614_v60 = vsel %vm1596_vm5, %v1549_v55, %v5232_v1 }
 0x1ce   :  { %1390 = vrot.lane.b32.xlu1 %v6320_v18, %s3631_s4  ;;  %v1711_v52 = vsel %vm1661_vm6, %v1646_v45, %v1143_v12  ;;  %v6330_v12 = vld [vmem:[#allocation66_spill] sm:$0xff]  ;;  %v1159_v45 = vrot.slane %v5301_v59, 1 }
 0x1cf   :  { %v1181_v33 = vpop.permute.xlu0 %1180  ;;  %v1776_v3 = vsel %vm1726_vm7, %v1711_v52, %v1213_v63 }
 0x1d0   :  { %v1215_v24 = vpop.permute.xlu1 %1214 }
 0x1d1   :  { %1358 = vrot.lane.b32.xlu0 %v6321_v7, %s3631_s4 }
 0x1d2   :  { %1458 = vrot.lane.b32.xlu1 %v6318_v19, %s3632_s1  ;;  %v1076_v19 = vor.u32 %v1075_v5, %v1071_v2  ;;  %v1583_v2 = vsel %vm1531_vm4, %v1518_v49, %v6330_v12  ;;  %v1679_v5 = vsel %vm1661_vm6, %v1614_v60, %v1111_v22 }
 0x1d3   :  { %v5272_v21 = vpop.permute.xlu0 %1182  ;;  %v1648_v1 = vsel %vm1596_vm5, %v1583_v2, %v5238_v57  ;;  %v1744_v63 = vsel %vm1726_vm7, %v1679_v5, %v1181_v33  ;;  %v1616_v57 = vsel %vm1596_vm5, %v1551_v26, %v5240_v50  ;;  %v1162_v50 = vrot.slane %v5293_v61, 1 }
 0x1d4   :  { %v1287_v62 = vpop.permute.xlu1 %1286  ;;  %v1713_v22 = vsel %vm1661_vm6, %v1648_v1, %v5260_v11  ;;  %v1161_v11 = vrot.slane %v5279_v15, 1  ;;  %v1316_v5 = vshll.u32 %v3313_v25, 16 }
 0x1d5   :  { %1426 = vrot.lane.b32.xlu0 %v6319_v53, %s3632_s1  ;;  %v1080_v53 = vrot.slane %v1078_v0, 1  ;;  %v1841_v16 = vsel %vm1791_vm8, %v1776_v3, %v1287_v62  ;;  %v5344_v0 = vsel %vm380_vm0, %v1088_v41, %v1092_v40  ;;  %v1778_v33 = vsel %vm1726_vm7, %v1713_v22, %v1215_v24 }
 0x1d6   :  { %1460 = vrot.lane.b32.xlu1 %v6322_v34, %s3632_s1 }
 0x1d7   :  { %v1255_v30 = vpop.permute.xlu0 %1254  ;;  %v5359_v39 = vsel %vm380_vm0, %v1076_v19, %v1080_v53  ;;  %v3312_v19 = vld [vmem:[%s6055_s0 + $0x1ac] ss:$0 sps:$4 sm:$0x11]  }
 0x1d8   :  { %v1289_v54 = vpop.permute.xlu1 %1288  ;;  %v1809_v62 = vsel %vm1791_vm8, %v1744_v63, %v1255_v30  ;;  %v1328_v3 = vshll.u32 %v3312_v19, 16 }
 0x1d9   :  { %1428 = vrot.lane.b32.xlu0 %v6323_v8, %s3632_s1  ;;  %v1843_v30 = vsel %vm1791_vm8, %v1778_v33, %v1289_v54  ;;  %v1158_v54 = vrot.slane %v5286_v28, 1 }
 0x1da   :  { %1060 = vrot.lane.b32.xlu1 %v5249_v31, %s3627_s12  ;;  %v1330_v26 = vrot.slane %v1328_v3, 1 }
 0x1db   :  { %v1257_v51 = vpop.permute.xlu0 %1256  ;;  %v1160_v55 = vsel %vm829_vm1, %v1158_v54, %v1159_v45  ;;  %v6334_v45 = vld [vmem:[#allocation38_spill] sm:$0xff] }
 0x1dc   :  { %v1381_v23 = vpop.permute.xlu1 %1380 }
 0x1dd   :  { %1028 = vrot.lane.b32.xlu0 %v5256_v56, %s3627_s12 }
 0x1de   :  { %1062 = vrot.lane.b32.xlu1 %v5279_v15, %s3627_s12 }
 0x1df   :  { %v1349_v10 = vpop.permute.xlu0 %1348 }
 0x1e0   :  { %v1383_v4 = vpop.permute.xlu1 %1382 }
 0x1e1   :  { %1030 = vrot.lane.b32.xlu0 %v5286_v28, %s3627_s12 }
 0x1e2   :  { %1154 = vrot.lane.b32.xlu1 %v6320_v18, %s3628_s17  ;;  %v1906_v18 = vsel %vm1856_vm9, %v1841_v16, %v1381_v23  ;;  %v1874_v23 = vsel %vm1856_vm9, %v1809_v62, %v1349_v10  ;;  %v1908_v10 = vsel %vm1856_vm9, %v1843_v30, %v1383_v4  ;;  %v1163_v4 = vsel %vm829_vm1, %v1161_v11, %v1162_v50 }
 0x1e3   :  { %v1351_v13 = vpop.permute.xlu0 %1350 }
 0x1e4   :  { %v1451_v37 = vpop.permute.xlu1 %1450 }
 0x1e5   :  { %1122 = vrot.lane.b32.xlu0 %v6321_v7, %s3628_s17  ;;  %v1971_v17 = vsel %vm1921_vm10, %v1906_v18, %v1451_v37  ;;  %v1681_v7 = vsel %vm1661_vm6, %v1616_v57, %v5262_v47  ;;  %v1400_v57 = vrot.slane %v3312_v19, 1 }
 0x1e6   :  { %1156 = vrot.lane.b32.xlu1 %v5344_v0, %s3628_s17  ;;  %3200 = vmatprep.mubr.msk.bf16.mxu1 %vm2029_vm11, %v1971_v17  ;;  %v1746_v24 = vsel %vm1726_vm7, %v1681_v7, %v5272_v21 }
 0x1e7   :  { %v1419_v41 = vpop.permute.xlu0 %1418  ;;  %v1811_v29 = vsel %vm1791_vm8, %v1746_v24, %v1257_v51  ;;  %v3310_v51 = vld [vmem:[%s6055_s0 + $0x1a4] sm:$0xff]  }
 0x1e8   :  { %v1939_v40 = vsel %vm1921_vm10, %v1874_v23, %v1419_v41  ;;  %v1453_v35 = vpop.permute.xlu1 %1452  ;;  %v1876_v61 = vsel %vm1856_vm9, %v1811_v29, %v1351_v13  ;;  %v1323_v53 = vshll.u32 %v3310_v51, 16  ;;  %v1321_v49 = vshrl.u32 %v3310_v51, 16 }
 0x1e9   :  { %1124 = vrot.lane.b32.xlu0 %v5359_v39, %s3628_s17  ;;  %3168 = vmatprep.mubr.msk.bf16.mxu0 %vm2029_vm11, %v1939_v40  ;;  %v1973_v47 = vsel %vm1921_vm10, %v1908_v10, %v1453_v35  ;;  %v1399_v17 = vrot.slane %v3310_v51, 1  ;;  %v1397_v41 = vrot.slane %v3313_v25, 1  ;;  %v6332_v10 = vld [vmem:[#allocation22_spill] sm:$0xff] }
 0x1ea   :  { %1224 = vrot.lane.b32.xlu1 %v6322_v34, %s3629_s20  ;;  %3201 = vmatmul.mubr.msk.bf16.gmra.mxu1 %vm2029_vm11, %v1973_v47  ;;  %v3311_v34 = vld [vmem:[%s6055_s0 + $0xcc] sm:$0xff]   ;;  %v1325_v60 = vrot.slane %v1323_v53, 1  ;;  %v1520_v35 = vsel %vm1466_vm3, %v4914_v42, %v6332_v10 }
 0x1eb   :  { %v1421_v44 = vpop.permute.xlu0 %1420  ;;  %v1311_v32 = vshll.u32 %v3311_v34, 16  ;;  %v1309_v12 = vshrl.u32 %v3311_v34, 16  ;;  %v1396_v23 = vrot.slane %v3311_v34, 1  ;;  %v6333_v47 = vld [vmem:[#allocation70_spill] sm:$0xff] }
 0x1ec   :  { %v1941_v21 = vsel %vm1921_vm10, %v1876_v61, %v1421_v44  ;;  %v1053_v59 = vpop.permute.xlu1 %1052  ;;  %v1326_v14 = vor.u32 %v1325_v60, %v1321_v49  ;;  %v1585_v54 = vsel %vm1531_vm4, %v1520_v35, %v6333_v47  ;;  %v1488_v61 = vsel %vm1466_vm3, %v4927_v36, %v6334_v45  ;;  %v6338_v60 = vld [vmem:[#allocation34_spill] sm:$0xff] }
 0x1ed   :  { %1192 = vrot.lane.b32.xlu0 %v6323_v8, %s3629_s20  ;;  %3169 = vmatmul.mubr.msk.bf16.gmra.mxu0 %vm2029_vm11, %v1941_v21  ;;  %v1313_v2 = vrot.slane %v1311_v32, 1  ;;  %v1398_v7 = vsel %vm829_vm1, %v1396_v23, %v1397_v41  ;;  %v1650_v44 = vsel %vm1596_vm5, %v1585_v54, %v1053_v59  ;;  %v6337_v32 = vld [vmem:[#allocation69_spill] sm:$0xff]  ;;  %v1490_v3 = vsel %vm1466_vm3, %v5006_v43, %v6338_v60 }
 0x1ee   :  { %1226 = vrot.lane.b32.xlu1 %v1163_v4, %s3629_s20 }
 0x1ef   :  { %v1021_v52 = vpop.permute.xlu0 %1020  ;;  %v1314_v63 = vor.u32 %v1313_v2, %v1309_v12  ;;  %v6339_v2 = vld [vmem:[#allocation60_spill] sm:$0xff] }
 0x1f0   :  { %v5405_v8 = vpop.permute.xlu1 %1054 }
 0x1f1   :  { %1194 = vrot.lane.b32.xlu0 %v1160_v55, %s3629_s20 }
 0x1f2   :  { %1298 = vrot.lane.b32.xlu1 %v5279_v15, %s3630_s25  ;;  %v1318_v15 = vrot.slane %v1316_v5, 1  ;;  %v1555_v5 = vsel %vm1531_vm4, %v1490_v3, %v6339_v2  ;;  %v6346_v2 = vld [vmem:[#allocation35_spill] sm:$0xff] }
 0x1f3   :  { %v5410_v27 = vpop.permute.xlu0 %1022 }
 0x1f4   :  { %v1147_v13 = vpop.permute.xlu1 %1146  ;;  %v1319_v22 = vsel %vm380_vm0, %v1314_v63, %v1318_v15  ;;  %v1620_v43 = vsel %vm1596_vm5, %v1555_v5, %v5410_v27  ;;  %v1494_v5 = vsel %vm1466_vm3, %v5129_v46, %v6346_v2 }
 0x1f5   :  { %1266 = vrot.lane.b32.xlu0 %v5286_v28, %s3630_s25  ;;  %v1331_v28 = vsel %vm380_vm0, %v1326_v14, %v1330_v26 }
 0x1f6   :  { %1300 = vrot.lane.b32.xlu1 %v3310_v51, %s3630_s25 }
 0x1f7   :  { %v1115_v16 = vpop.permute.xlu0 %1114 }
 0x1f8   :  { %v1149_v1 = vpop.permute.xlu1 %1148 }
 0x1f9   :  { %1268 = vrot.lane.b32.xlu0 %v3311_v34, %s3630_s25  ;;  %v6336_v34 = vld [vmem:[#allocation20_spill] sm:$0xff] }
 0x1fa   :  { %1392 = vrot.lane.b32.xlu1 %v5344_v0, %s3631_s4  ;;  %v1401_v0 = vsel %vm829_vm1, %v1399_v17, %v1400_v57  ;;  %v1522_v42 = vsel %vm1466_vm3, %v4999_v38, %v6336_v34 }
 0x1fb   :  { %v1117_v18 = vpop.permute.xlu0 %1116  ;;  %v1587_v36 = vsel %vm1531_vm4, %v1522_v42, %v6337_v32  ;;  %v6342_v42 = vld [vmem:[#allocation40_spill] sm:$0xff]  ;;  %v6343_v32 = vld [vmem:[#allocation63_spill] sm:$0xff] }
 0x1fc   :  { %v1217_v37 = vpop.permute.xlu1 %1216 }
 0x1fd   :  { %1360 = vrot.lane.b32.xlu0 %v5359_v39, %s3631_s4 }
 0x1fe   :  { %1394 = vrot.lane.b32.xlu1 %v1331_v28, %s3631_s4  ;;  %v1685_v28 = vsel %vm1661_vm6, %v1620_v43, %v1117_v18  ;;  %v6347_v43 = vld [vmem:[#allocation62_spill] sm:$0xff] }
 0x1ff   :  { %v1185_v62 = vpop.permute.xlu0 %1184 }
 0x200   :  { %v1219_v33 = vpop.permute.xlu1 %1218 }
 0x201   :  { %1362 = vrot.lane.b32.xlu0 %v1319_v22, %s3631_s4 }
 0x202   :  { %1462 = vrot.lane.b32.xlu1 %v1163_v4, %s3632_s1  ;;  %v6335_v4 = vld [vmem:[#allocation61_spill] sm:$0xff] }
 0x203   :  { %v1187_v11 = vpop.permute.xlu0 %1186  ;;  %v1553_v51 = vsel %vm1531_vm4, %v1488_v61, %v6335_v4 }
 0x204   :  { %v1291_v39 = vpop.permute.xlu1 %1290  ;;  %v1618_v19 = vsel %vm1596_vm5, %v1553_v51, %v1021_v52  ;;  %v1750_v22 = vsel %vm1726_vm7, %v1685_v28, %v1187_v11 }
 0x205   :  { %1430 = vrot.lane.b32.xlu0 %v1160_v55, %s3632_s1  ;;  %v1715_v55 = vsel %vm1661_vm6, %v1650_v44, %v1147_v13  ;;  %v1683_v59 = vsel %vm1661_vm6, %v1618_v19, %v1115_v16  ;;  %v1652_v13 = vsel %vm1596_vm5, %v1587_v36, %v5405_v8  ;;  %v1492_v19 = vsel %vm1466_vm3, %v5051_v9, %v6342_v42 }
 0x206   :  { %1464 = vrot.lane.b32.xlu1 %v1401_v0, %s3632_s1  ;;  %v1780_v53 = vsel %vm1726_vm7, %v1715_v55, %v1217_v37  ;;  %v1748_v38 = vsel %vm1726_vm7, %v1683_v59, %v1185_v62  ;;  %v1717_v14 = vsel %vm1661_vm6, %v1652_v13, %v1149_v1  ;;  %v6341_v55 = vld [vmem:[#allocation72_spill] sm:$0xff]  ;;  %v1557_v36 = vsel %vm1531_vm4, %v1492_v19, %v6343_v32 }
 0x207   :  { %v1259_v30 = vpop.permute.xlu0 %1258  ;;  %v1845_v49 = vsel %vm1791_vm8, %v1780_v53, %v1291_v39  ;;  %v1782_v63 = vsel %vm1726_vm7, %v1717_v14, %v1219_v33  ;;  %v6350_v32 = vld [vmem:[#allocation44_spill] sm:$0xff] }
 0x208   :  { %v1293_v40 = vpop.permute.xlu1 %1292  ;;  %v1813_v16 = vsel %vm1791_vm8, %v1748_v38, %v1259_v30  ;;  %v6345_v38 = vld [vmem:[#allocation71_spill] sm:$0xff] }
 0x209   :  { %1432 = vrot.lane.b32.xlu0 %v1398_v7, %s3632_s1  ;;  %v1847_v37 = vsel %vm1791_vm8, %v1782_v63, %v1293_v40  ;;  %v1559_v63 = vsel %vm1531_vm4, %v1494_v5, %v6347_v43 }
 0x20b   :  { %v1261_v50 = vpop.permute.xlu0 %1260 }
 0x20c   :  { %v1385_v24 = vpop.permute.xlu1 %1384  ;;  %v1815_v17 = vsel %vm1791_vm8, %v1750_v22, %v1261_v50 }
 0x20d   :  { %v1910_v52 = vsel %vm1856_vm9, %v1845_v49, %v1385_v24  ;;  %v6344_v49 = vld [vmem:[#allocation6_spill] sm:$0xff] }
 0x20f   :  { %v1353_v29 = vpop.permute.xlu0 %1352 }
 0x210   :  { %v1387_v21 = vpop.permute.xlu1 %1386  ;;  %v1878_v8 = vsel %vm1856_vm9, %v1813_v16, %v1353_v29 }
 0x211   :  { %v1912_v62 = vsel %vm1856_vm9, %v1847_v37, %v1387_v21  ;;  %v6340_v21 = vld [vmem:[#allocation21_spill] sm:$0xff] }
 0x212   :  { %v1524_v4 = vsel %vm1466_vm3, %v5038_v48, %v6340_v21  ;;  %v1526_v48 = vsel %vm1466_vm3, %v5122_v58, %v6344_v49 }
 0x213   :  { %v1355_v25 = vpop.permute.xlu0 %1354  ;;  %v1589_v34 = vsel %vm1531_vm4, %v1524_v4, %v6341_v55  ;;  %v1591_v9 = vsel %vm1531_vm4, %v1526_v48, %v6345_v38  ;;  %v6351_v48 = vld [vmem:[#allocation65_spill] sm:$0xff] }
 0x214   :  { %v1455_v12 = vpop.permute.xlu1 %1454  ;;  %v1880_v33 = vsel %vm1856_vm9, %v1815_v17, %v1355_v25 }
 0x215   :  { %v1975_v26 = vsel %vm1921_vm10, %v1910_v52, %v1455_v12 }
 0x216   :  { %3204 = vmatprep.mubr.msk.bf16.mxu1 %vm2029_vm11, %v1975_v26 }
 0x217   :  { %v1423_v15 = vpop.permute.xlu0 %1422 }
 0x218   :  { %v1943_v1 = vsel %vm1921_vm10, %v1878_v8, %v1423_v15  ;;  %v1457_v27 = vpop.permute.xlu1 %1456 }
 0x219   :  { %3172 = vmatprep.mubr.msk.bf16.mxu0 %vm2029_vm11, %v1943_v1  ;;  %v1977_v57 = vsel %vm1921_vm10, %v1912_v62, %v1457_v27 }
 0x21a   :  { %3205 = vmatmul.mubr.msk.bf16.gmra.mxu1 %vm2029_vm11, %v1977_v57 }
 0x21b   :  { %v1425_v23 = vpop.permute.xlu0 %1424 }
 0x21c   :  { %v1945_v18 = vsel %vm1921_vm10, %v1880_v33, %v1425_v23  ;;  %v1057_v41 = vpop.permute.xlu1 %1056 }
 0x21d   :  { %3173 = vmatmul.mubr.msk.bf16.gmra.mxu0 %vm2029_vm11, %v1945_v18  ;;  %v1654_v53 = vsel %vm1596_vm5, %v1589_v34, %v1057_v41  ;;  %v6348_v34 = vld [vmem:[#allocation56_spill] sm:$0xff] }
 0x21e   :  { %v1528_v42 = vsel %vm1466_vm3, %v5161_v20, %v6348_v34 }
 0x21f   :  { %v1025_v11 = vpop.permute.xlu0 %1024 }
 0x220   :  { %v1059_v0 = vpop.permute.xlu1 %1058  ;;  %v1622_v60 = vsel %vm1596_vm5, %v1557_v36, %v1025_v11  ;;  %v1496_v36 = vsel %vm1466_vm3, %v5174_v6, %v6350_v32 }
 0x221   :  { %v1656_v14 = vsel %vm1596_vm5, %v1591_v9, %v1059_v0 }
 0x223   :  { %v1027_v39 = vpop.permute.xlu0 %1026 }
 0x224   :  { %v1151_v7 = vpop.permute.xlu1 %1150  ;;  %v1624_v37 = vsel %vm1596_vm5, %v1559_v63, %v1027_v39  ;;  %v6355_v63 = vld [vmem:[#allocation64_spill] sm:$0xff] }
 0x225   :  { %v1719_v59 = vsel %vm1661_vm6, %v1654_v53, %v1151_v7  ;;  %v6349_v53 = vld [vmem:[#allocation11_spill] sm:$0xff] }
 0x227   :  { %v1119_v30 = vpop.permute.xlu0 %1118 }
 0x228   :  { %v1153_v40 = vpop.permute.xlu1 %1152  ;;  %v1687_v52 = vsel %vm1661_vm6, %v1622_v60, %v1119_v30  ;;  %v1561_v60 = vsel %vm1531_vm4, %v1496_v36, %v6351_v48 }
 0x229   :  { %v1721_v8 = vsel %vm1661_vm6, %v1656_v14, %v1153_v40  ;;  %v6354_v14 = vld [vmem:[#allocation42_spill] sm:$0xff] }
 0x22b   :  { %v1121_v24 = vpop.permute.xlu0 %1120 }
 0x22c   :  { %v1221_v50 = vpop.permute.xlu1 %1220  ;;  %v1689_v62 = vsel %vm1661_vm6, %v1624_v37, %v1121_v24 }
 0x22d   :  { %v1784_v3 = vsel %vm1726_vm7, %v1719_v59, %v1221_v50 }
 0x22f   :  { %v1189_v10 = vpop.permute.xlu0 %1188 }
 0x230   :  { %v1223_v35 = vpop.permute.xlu1 %1222  ;;  %v1752_v58 = vsel %vm1726_vm7, %v1687_v52, %v1189_v10 }
 0x231   :  { %v1786_v46 = vsel %vm1726_vm7, %v1721_v8, %v1223_v35 }
 0x233   :  { %v1191_v29 = vpop.permute.xlu0 %1190 }
 0x234   :  { %v1295_v47 = vpop.permute.xlu1 %1294  ;;  %v1754_v57 = vsel %vm1726_vm7, %v1689_v62, %v1191_v29 }
 0x235   :  { %v1849_v12 = vsel %vm1791_vm8, %v1784_v3, %v1295_v47 }
 0x237   :  { %v1263_v54 = vpop.permute.xlu0 %1262 }
 0x238   :  { %v1297_v45 = vpop.permute.xlu1 %1296  ;;  %v1817_v15 = vsel %vm1791_vm8, %v1752_v58, %v1263_v54  ;;  %v1498_v58 = vsel %vm1466_vm3, %v5256_v56, %v6354_v14 }
 0x239   :  { %v1851_v27 = vsel %vm1791_vm8, %v1786_v46, %v1297_v45  ;;  %v1563_v8 = vsel %vm1531_vm4, %v1498_v58, %v6355_v63 }
 0x23b   :  { %v1265_v61 = vpop.permute.xlu0 %1264 }
 0x23c   :  { %v1389_v44 = vpop.permute.xlu1 %1388  ;;  %v1819_v18 = vsel %vm1791_vm8, %v1754_v57, %v1265_v61 }
 0x23d   :  { %v1914_v16 = vsel %vm1856_vm9, %v1849_v12, %v1389_v44  ;;  %v6353_v12 = vld [vmem:[#allocation33_spill] sm:$0xff] }
 0x23f   :  { %v1357_v51 = vpop.permute.xlu0 %1356 }
 0x240   :  { %v1391_v25 = vpop.permute.xlu1 %1390  ;;  %v1882_v1 = vsel %vm1856_vm9, %v1817_v15, %v1357_v51 }
 0x241   :  { %v1916_v33 = vsel %vm1856_vm9, %v1851_v27, %v1391_v25  ;;  %v1593_v25 = vsel %vm1531_vm4, %v1528_v42, %v6349_v53 }
 0x243   :  { %v1359_v13 = vpop.permute.xlu0 %1358 }
 0x244   :  { %v1459_v26 = vpop.permute.xlu1 %1458  ;;  %v1884_v11 = vsel %vm1856_vm9, %v1819_v18, %v1359_v13  ;;  %v6352_v13 = vld [vmem:[#allocation55_spill] sm:$0xff] }
 0x245   :  { %v1979_v28 = vsel %vm1921_vm10, %v1914_v16, %v1459_v26  ;;  %v1530_v20 = vsel %vm1466_vm3, %v5249_v31, %v6352_v13 }
 0x246   :  { %3208 = vmatprep.mubr.msk.bf16.mxu1 %vm2029_vm11, %v1979_v28  ;;  %v1595_v6 = vsel %vm1531_vm4, %v1530_v20, %v6353_v12 }
 0x247   :  { %v1427_v22 = vpop.permute.xlu0 %1426 }
 0x248   :  { %v1947_v17 = vsel %vm1921_vm10, %v1882_v1, %v1427_v22  ;;  %v1461_v23 = vpop.permute.xlu1 %1460 }
 0x249   :  { %3176 = vmatprep.mubr.msk.bf16.mxu0 %vm2029_vm11, %v1947_v17  ;;  %v1981_v41 = vsel %vm1921_vm10, %v1916_v33, %v1461_v23 }
 0x24a   :  { %3209 = vmatmul.mubr.msk.bf16.gmra.mxu1 %vm2029_vm11, %v1981_v41 }
 0x24b   :  { %v1429_v0 = vpop.permute.xlu0 %1428 }
 0x24c   :  { %v1949_v39 = vsel %vm1921_vm10, %v1884_v11, %v1429_v0  ;;  %v1061_v7 = vpop.permute.xlu1 %1060 }
 0x24d   :  { %3177 = vmatmul.mubr.msk.bf16.gmra.mxu0 %vm2029_vm11, %v1949_v39  ;;  %v1658_v59 = vsel %vm1596_vm5, %v1593_v25, %v1061_v7  ;;  %v3154_v7 = vpop.f32.mrf.mxu0 }
 0x24f   :  { %v1029_v30 = vpop.permute.xlu0 %1028 }
 0x250   :  { %v1063_v40 = vpop.permute.xlu1 %1062  ;;  %v1626_v38 = vsel %vm1596_vm5, %v1561_v60, %v1029_v30  ;;  %v3186_v30 = vpop.f32.mrf.mxu1 }
 0x251   :  { %v1660_v16 = vsel %vm1596_vm5, %v1595_v6, %v1063_v40  ;;  %v2132_v40 = vpop.f32.mrf.mxu0 }
 0x253   :  { %v1031_v24 = vpop.permute.xlu0 %1030 }
 0x254   :  { %v1155_v50 = vpop.permute.xlu1 %1154  ;;  %v1628_v46 = vsel %vm1596_vm5, %v1563_v8, %v1031_v24  ;;  %v2260_v24 = vpop.f32.mrf.mxu1 }
 0x255   :  { %v1723_v3 = vsel %vm1661_vm6, %v1658_v59, %v1155_v50  ;;  %v5581_v50 = vld [vmem:[%s6057_s2] ss:$0 sm:$0xff] }
 0x257   :  { %v1123_v10 = vpop.permute.xlu0 %1122 }
 0x258   :  { %v1157_v35 = vpop.permute.xlu1 %1156  ;;  %v1691_v2 = vsel %vm1661_vm6, %v1626_v38, %v1123_v10  ;;  %v3155_v10 = vpop.f32.mrf.mxu0 }
 0x259   :  { %v1725_v15 = vsel %vm1661_vm6, %v1660_v16, %v1157_v35  ;;  %v5584_v35 = vadd.f32 %v3154_v7, %v5581_v50 }
 0x25b   :  { %v1125_v29 = vpop.permute.xlu0 %1124 }
 0x25c   :  { %v1225_v47 = vpop.permute.xlu1 %1224  ;;  %v1693_v62 = vsel %vm1661_vm6, %v1628_v46, %v1125_v29  ;;  %v3187_v29 = vpop.f32.mrf.mxu1 }
 0x25d   :  { %v1788_v9 = vsel %vm1726_vm7, %v1723_v3, %v1225_v47  ;;  %v5587_v47 = vadd.f32 %v5581_v50, %v2132_v40  ;;  %v5605_v42 = vadd.f32 %v3187_v29, %v5581_v50 }
 0x25f   :  { %v1193_v54 = vpop.permute.xlu0 %1192 }
 0x260   :  { %v1227_v45 = vpop.permute.xlu1 %1226  ;;  %v1756_v31 = vsel %vm1726_vm7, %v1691_v2, %v1193_v54  ;;  %v2135_v54 = vpop.f32.mrf.mxu0 }
 0x261   :  { %v1790_v56 = vsel %vm1726_vm7, %v1725_v15, %v1227_v45  ;;  %v5590_v45 = vadd.f32 %v3155_v10, %v5581_v50 }
 0x262   :  { %v3158_v36 = vpop.f32.mrf.mxu0 }
 0x263   :  { %v1195_v61 = vpop.permute.xlu0 %1194  ;;  %v3044_v34 = vmul.f32 -1.442695, %v5590_v45  ;;  %v5619_v20 = vadd.f32 %v3158_v36, %v5581_v50 }
 0x264   :  { %v1299_v44 = vpop.permute.xlu1 %1298  ;;  %v1758_v57 = vsel %vm1726_vm7, %v1693_v62, %v1195_v61  ;;  %v5593_v61 = vadd.f32 %v3186_v30, %v5581_v50  ;;  %v2148_v13 = vpop.f32.mrf.mxu0 }
 0x265   :  { %v1853_v5 = vsel %vm1791_vm8, %v1788_v9, %v1299_v44  ;;  %v3043_v44 = vmul.f32 -1.442695, %v5584_v35  ;;  %v5625_v9 = vadd.f32 %v5581_v50, %v2148_v13  ;;  %v3047_v12 = vmul.f32 -1.442695, %v5619_v20 }
 0x267   :  { %v1267_v21 = vpop.permute.xlu0 %1266  ;;  %3314 = vpow2.f32 %v3043_v44  ;;  %v3045_v14 = vmul.f32 -1.442695, %v5625_v9 }
 0x268   :  { %v1301_v4 = vpop.permute.xlu1 %1300  ;;  %v1821_v28 = vsel %vm1791_vm8, %v1756_v31, %v1267_v21  ;;  %v5597_v21 = vadd.f32 %v5581_v50, %v2135_v54 }
 0x269   :  { %v1855_v27 = vsel %vm1791_vm8, %v1790_v56, %v1301_v4  ;;  %v2263_v4 = vpop.f32.mrf.mxu1 }
 0x26a   :  { %v5609_v53 = vadd.f32 %v5581_v50, %v2263_v4  ;;  %v3042_v32 = vmul.f32 -1.442695, %v5597_v21 }
 0x26b   :  { %v1269_v51 = vpop.permute.xlu0 %1268  ;;  %v3190_v25 = vpop.f32.mrf.mxu1 }
 0x26c   :  { %v1393_v55 = vpop.permute.xlu1 %1392  ;;  %v1823_v18 = vsel %vm1791_vm8, %v1758_v57, %v1269_v51  ;;  %v3041_v51 = vmul.f32 -1.442695, %v5587_v47  ;;  %v3074_v48 = vmul.f32 -1.442695, %v5609_v53  ;;  %v5616_v3 = vadd.f32 %v3190_v25, %v5581_v50 }
 0x26d   :  { %v1918_v26 = vsel %vm1856_vm9, %v1853_v5, %v1393_v55  ;;  %v5601_v55 = vadd.f32 %v5581_v50, %v2260_v24  ;;  %v2276_v60 = vpop.f32.mrf.mxu1  ;;  %v3159_v5 = vpop.f32.mrf.mxu0 }
 0x26e   :  { %3316 = vpow2.f32 %v3041_v51  ;;  %v5622_v38 = vadd.f32 %v5581_v50, %v2276_v60 }
 0x26f   :  { %v1361_v19 = vpop.permute.xlu0 %1360  ;;  %v3073_v59 = vmul.f32 -1.442695, %v5601_v55  ;;  %3318 = vpow2.f32 %v3044_v34  ;;  %v3191_v6 = vpop.f32.mrf.mxu1 }
 0x270   :  { %v1395_v49 = vpop.permute.xlu1 %1394  ;;  %v1886_v1 = vsel %vm1856_vm9, %v1821_v28, %v1361_v19  ;;  %v3075_v19 = vmul.f32 -1.442695, %v5593_v61  ;;  %v3077_v2 = vmul.f32 -1.442695, %v5622_v38 }
 0x271   :  { %v1920_v33 = vsel %vm1856_vm9, %v1855_v27, %v1395_v49  ;;  %v3076_v49 = vmul.f32 -1.442695, %v5605_v42  ;;  %v2279_v16 = vpop.f32.mrf.mxu1 }
 0x272   :  { %3320 = vpow2.f32 %v3075_v19 }
 0x273   :  { %v1363_v52 = vpop.permute.xlu0 %1362  ;;  %3322 = vpow2.f32 %v3042_v32  ;;  %v3194_v63 = vpop.f32.mrf.mxu1 }
 0x274   :  { %v1463_v43 = vpop.permute.xlu1 %1462  ;;  %v1888_v11 = vsel %vm1856_vm9, %v1823_v18, %v1363_v52  ;;  %3324 = vpow2.f32 %v3073_v59  ;;  %v3079_v52 = vmul.f32 -1.442695, %v5616_v3  ;;  %v3315_v58 = vpop.eup %3314  ;;  %v5648_v32 = vadd.f32 %v3194_v63, %v5581_v50 }
 0x275   :  { %v1983_v37 = vsel %vm1921_vm10, %v1918_v26, %v1463_v43  ;;  %3326 = vpow2.f32 %v3076_v49  ;;  %v2151_v26 = vpop.f32.mrf.mxu0  ;;  %v2581_v15 = vadd.f32 1.0, %v3315_v58  ;;  %v2292_v27 = vpop.f32.mrf.mxu1 }
 0x276   :  { %3212 = vmatprep.mubr.msk.bf16.mxu1 %vm2029_vm11, %v1983_v37  ;;  %3328 = vpow2.f32 %v3074_v48  ;;  %v5641_v7 = vadd.f32 %v5581_v50, %v2151_v26  ;;  %v5654_v13 = vadd.f32 %v5581_v50, %v2292_v27 }
 0x277   :  { %v1431_v22 = vpop.permute.xlu0 %1430  ;;  %3330 = vpow2.f32 %v3079_v52  ;;  %v3162_v28 = vpop.f32.mrf.mxu0 }
 0x278   :  { %v1951_v17 = vsel %vm1921_vm10, %v1886_v1, %v1431_v22  ;;  %v1465_v23 = vpop.permute.xlu1 %1464  ;;  %3332 = vpow2.f32 %v3047_v12  ;;  %v3195_v30 = vpop.f32.mrf.mxu1  ;;  %v3046_v51 = vmul.f32 -1.442695, %v5641_v7  ;;  %v5651_v49 = vadd.f32 %v3162_v28, %v5581_v50 }
 0x279   :  { %3180 = vmatprep.mubr.msk.bf16.mxu0 %vm2029_vm11, %v1951_v17  ;;  %v1985_v41 = vsel %vm1921_vm10, %v1920_v33, %v1465_v23  ;;  %3334 = vpow2.f32 %v3077_v2  ;;  %v5632_v33 = vadd.f32 %v3191_v6, %v5581_v50  ;;  %v2164_v23 = vpop.f32.mrf.mxu0  ;;  %v3083_v2 = vmul.f32 -1.442695, %v5648_v32 }
 0x27a   :  { %3213 = vmatmul.mubr.msk.bf16.gmra.mxu1 %vm2029_vm11, %v1985_v41  ;;  %3336 = vpow2.f32 %v3045_v14  ;;  %v5635_v41 = vadd.f32 %v3159_v5, %v5581_v50  ;;  %v2295_v34 = vpop.f32.mrf.mxu1  ;;  %v5657_v6 = vadd.f32 %v5581_v50, %v2164_v23  ;;  %v5661_v5 = vadd.f32 %v3195_v30, %v5581_v50 }
 0x27b   :  { %v1433_v0 = vpop.permute.xlu0 %1432  ;;  %v3317_v31 = vpop.eup %3316  ;;  %3338 = vrcp.f32 %v2581_v15  ;;  %v3080_v40 = vmul.f32 -1.442695, %v5632_v33  ;;  %v3051_v58 = vmul.f32 -1.442695, %v5651_v49  ;;  %v5673_v63 = vadd.f32 %v5581_v50, %v2295_v34 }
 0x27c   :  { %v1953_v39 = vsel %vm1921_vm10, %v1888_v11, %v1433_v0  ;;  %v3319_v43 = vpop.eup %3318  ;;  %v2579_v46 = vadd.f32 1.0, %v3317_v31  ;;  %v5638_v0 = vadd.f32 %v5581_v50, %v2279_v16  ;;  %v3163_v24 = vpop.f32.mrf.mxu0  ;;  %v3048_v29 = vmul.f32 -1.442695, %v5635_v41 }
 0x27d   :  { %3181 = vmatmul.mubr.msk.bf16.gmra.mxu0 %vm2029_vm11, %v1953_v39  ;;  %v2582_v1 = vadd.f32 1.0, %v3319_v43  ;;  %v3198_v48 = vpop.f32.mrf.mxu1  ;;  %v5667_v16 = vadd.f32 %v3163_v24, %v5581_v50  ;;  %v3081_v43 = vmul.f32 -1.442695, %v5654_v13  ;;  %v3049_v28 = vmul.f32 -1.442695, %v5657_v6 }
 0x27e   :  { %3340 = vrcp.f32 %v2579_v46  ;;  %v3078_v44 = vmul.f32 -1.442695, %v5638_v0  ;;  %v2167_v36 = vpop.f32.mrf.mxu0  ;;  %v3082_v23 = vmul.f32 -1.442695, %v5673_v63 }
 0x27f   :  { %v3321_v8 = vpop.eup %3320  ;;  %3342 = vrcp.f32 %v2582_v1  ;;  %v2308_v31 = vpop.f32.mrf.mxu1  ;;  %v5685_v1 = vadd.f32 %v3198_v48, %v5581_v50 }
 0x280   :  { %v3323_v37 = vpop.eup %3322  ;;  %v2613_v62 = vadd.f32 1.0, %v3321_v8  ;;  %v3166_v52 = vpop.f32.mrf.mxu0 }
 0x281   :  { %v3325_v56 = vpop.eup %3324  ;;  %v2580_v57 = vadd.f32 1.0, %v3323_v37  ;;  %v5679_v37 = vadd.f32 %v5581_v50, %v2167_v36  ;;  %6356 = vst [vmem:[#allocation30_spill] sm:$0xff] %v5685_v1  ;;  %v5691_v27 = vadd.f32 %v3166_v52, %v5581_v50 }
 0x282   :  { %v3327_v22 = vpop.eup %3326  ;;  %v2611_v18 = vadd.f32 1.0, %v3325_v56  ;;  %3344 = vrcp.f32 %v2613_v62  ;;  %v2180_v8 = vpop.f32.mrf.mxu0  ;;  %v3084_v56 = vmul.f32 -1.442695, %v5661_v5  ;;  %v3052_v62 = vmul.f32 -1.442695, %v5667_v16 }
 0x283   :  { %v3329_v17 = vpop.eup %3328  ;;  %v2614_v11 = vadd.f32 1.0, %v3327_v22  ;;  %3346 = vrcp.f32 %v2580_v57  ;;  %6357 = vst [vmem:[#allocation10_spill] sm:$0xff] %v5691_v27  ;;  %v3050_v30 = vmul.f32 -1.442695, %v5679_v37 }
 0x284   :  { %v2612_v39 = vadd.f32 1.0, %v3329_v17  ;;  %v3331_v10 = vpop.eup %3330  ;;  %3348 = vrcp.f32 %v2611_v18  ;;  %v3199_v17 = vpop.f32.mrf.mxu1  ;;  %v5697_v18 = vadd.f32 %v5581_v50, %v2308_v31 }
 0x285   :  { %v3333_v54 = vpop.eup %3332  ;;  %3350 = vrcp.f32 %v2614_v11  ;;  %v2617_v25 = vadd.f32 1.0, %v3331_v10  ;;  %v3167_v11 = vpop.f32.mrf.mxu0  ;;  %v3087_v10 = vmul.f32 -1.442695, %v5685_v1 }
 0x286   :  { %v3335_v4 = vpop.eup %3334  ;;  %3352 = vrcp.f32 %v2612_v39  ;;  %v2585_v59 = vadd.f32 1.0, %v3333_v54  ;;  %v3055_v54 = vmul.f32 -1.442695, %v5691_v27 }
 0x287   :  { %v3337_v19 = vpop.eup %3336  ;;  %3354 = vpow2.f32 %v3080_v40  ;;  %v2615_v60 = vadd.f32 1.0, %v3335_v4  ;;  %v5703_v40 = vadd.f32 %v5581_v50, %v2180_v8  ;;  %v2183_v34 = vpop.f32.mrf.mxu0 }
 0x288   :  { %3356 = vpow2.f32 %v3048_v29  ;;  %v2583_v12 = vadd.f32 1.0, %v3337_v19  ;;  %v5663_v14 = vpop.eup %3338 }
 0x289   :  { %3358 = vpow2.f32 %v3078_v44  ;;  %v2311_v44 = vpop.f32.mrf.mxu1 }
 0x28a   :  { %3360 = vpow2.f32 %v3046_v51  ;;  %v3085_v51 = vmul.f32 -1.442695, %v5697_v18  ;;  %v5724_v8 = vadd.f32 %v5581_v50, %v2311_v44 }
 0x28b   :  { %3362 = vrcp.f32 %v2617_v25  ;;  %v5669_v26 = vpop.eup %3340  ;;  %v3053_v25 = vmul.f32 -1.442695, %v5703_v40 }
 0x28c   :  { %3364 = vrcp.f32 %v2585_v59  ;;  %v5675_v15 = vpop.eup %3342  ;;  %6360 = vst [vmem:[#allocation37_spill] sm:$0xff] %v5724_v8  ;;  %v3086_v44 = vmul.f32 -1.442695, %v5724_v8 }
 0x28d   :  { %3366 = vrcp.f32 %v2615_v60  ;;  %v5712_v60 = vadd.f32 %v3199_v17, %v5581_v50 }
 0x28e   :  { %3368 = vrcp.f32 %v2583_v12 }
 0x28f   :  { %v5681_v46 = vpop.eup %3344  ;;  %3370 = vpow2.f32 %v3083_v2  ;;  %6358 = vst [vmem:[#allocation39_spill] sm:$0xff] %v5712_v60 }
 0x290   :  { %v5687_v22 = vpop.eup %3346  ;;  %3372 = vpow2.f32 %v3051_v58  ;;  %v5719_v58 = vadd.f32 %v3167_v11, %v5581_v50  ;;  %v3088_v11 = vmul.f32 -1.442695, %v5712_v60 }
 0x291   :  { %v5693_v57 = vpop.eup %3348  ;;  %3374 = vpow2.f32 %v3081_v43 }
 0x292   :  { %v5699_v39 = vpop.eup %3350  ;;  %3376 = vpow2.f32 %v3049_v28  ;;  %6359 = vst [vmem:[#allocation13_spill] sm:$0xff] %v5719_v58 }
 0x293   :  { %v3353_v24 = vpop.eup %3352  ;;  %3378 = vpow2.f32 %v3084_v56 }
 0x294   :  { %v3355_v29 = vpop.eup %3354  ;;  %3380 = vpow2.f32 %v3052_v62  ;;  %v5729_v62 = vadd.f32 %v5581_v50, %v2183_v34 }
 0x295   :  { %v3357_v4 = vpop.eup %3356  ;;  %3382 = vpow2.f32 %v3082_v23  ;;  %v2618_v48 = vadd.f32 1.0, %v3355_v29  ;;  %v3056_v29 = vmul.f32 -1.442695, %v5719_v58 }
 0x296   :  { %v3359_v19 = vpop.eup %3358  ;;  %3384 = vpow2.f32 %v3050_v30  ;;  %v2586_v2 = vadd.f32 1.0, %v3357_v4  ;;  %6361 = vst [vmem:[#allocation12_spill] sm:$0xff] %v5729_v62 }
 0x297   :  { %v3361_v59 = vpop.eup %3360  ;;  %3386 = vpow2.f32 %v3087_v10  ;;  %v2616_v43 = vadd.f32 1.0, %v3359_v19 }
 0x298   :  { %v5716_v12 = vpop.eup %3362  ;;  %3388 = vpow2.f32 %v3055_v54  ;;  %v2584_v56 = vadd.f32 1.0, %v3361_v59 }
 0x299   :  { %v5721_v31 = vpop.eup %3364  ;;  %3390 = vpow2.f32 %v3085_v51  ;;  %v3054_v51 = vmul.f32 -1.442695, %v5729_v62 }
 0x29a   :  { %v5726_v28 = vpop.eup %3366  ;;  %3392 = vpow2.f32 %v3053_v25 }
 0x29b   :  { %v5733_v23 = vpop.eup %3368  ;;  %3394 = vrcp.f32 %v2618_v48 }
 0x29c   :  { %v3371_v10 = vpop.eup %3370  ;;  %3396 = vrcp.f32 %v2586_v2 }
 0x29d   :  { %v3373_v54 = vpop.eup %3372  ;;  %3398 = vrcp.f32 %v2616_v43  ;;  %v2621_v25 = vadd.f32 1.0, %v3371_v10  ;;  %v2772_v43 = vmul.f32 %v5687_v22, %v5597_v21  ;;  %v2803_v21 = vmul.f32 %v5693_v57, %v5601_v55 }
 0x29e   :  { %v3375_v4 = vpop.eup %3374  ;;  %3400 = vrcp.f32 %v2584_v56  ;;  %v2589_v60 = vadd.f32 1.0, %v3373_v54  ;;  %v2804_v56 = vmul.f32 %v3353_v24, %v5609_v53 }
 0x29f   :  { %v3377_v19 = vpop.eup %3376  ;;  %3402 = vpow2.f32 %v3088_v11  ;;  %v2619_v58 = vadd.f32 1.0, %v3375_v4  ;;  %v2771_v11 = vmul.f32 %v5669_v26, %v5587_v47 }
 0x2a0   :  { %v3379_v48 = vpop.eup %3378  ;;  %3404 = vpow2.f32 %v3056_v29  ;;  %v2587_v1 = vadd.f32 1.0, %v3377_v19  ;;  %v2872_v47 = vadd.f32 %v2804_v56, %v2803_v21  ;;  %v2774_v21 = vmul.f32 %v5675_v15, %v5590_v45 }
 0x2a1   :  { %v3381_v2 = vpop.eup %3380  ;;  %3406 = vpow2.f32 %v3086_v44  ;;  %v2622_v54 = vadd.f32 1.0, %v3379_v48  ;;  %v2835_v24 = vadd.f32 %v2772_v43, %v2771_v11  ;;  %v2773_v48 = vmul.f32 %v5663_v14, %v5584_v35 }
 0x2a2   :  { %v3383_v27 = vpop.eup %3382  ;;  %3408 = vpow2.f32 %v3054_v51  ;;  %v2590_v22 = vadd.f32 1.0, %v3381_v2  ;;  %v2807_v45 = vmul.f32 %v5726_v28, %v5622_v38 }
 0x2a3   :  { %v3385_v10 = vpop.eup %3384  ;;  %3410 = vrcp.f32 %v2621_v25  ;;  %v2620_v4 = vadd.f32 1.0, %v3383_v27  ;;  %v2805_v27 = vmul.f32 %v5681_v46, %v5593_v61  ;;  %v2836_v14 = vadd.f32 %v2835_v24, %v2773_v48 }
 0x2a4   :  { %v3387_v8 = vpop.eup %3386  ;;  %3412 = vrcp.f32 %v2589_v60  ;;  %v2588_v26 = vadd.f32 1.0, %v3385_v10 }
 0x2a5   :  { %v3389_v53 = vpop.eup %3388  ;;  %3414 = vrcp.f32 %v2619_v58  ;;  %v2625_v55 = vadd.f32 1.0, %v3387_v8  ;;  %v2873_v46 = vadd.f32 %v2872_v47, %v2805_v27  ;;  %v2837_v47 = vadd.f32 %v2836_v14, %v2774_v21 }
 0x2a6   :  { %v3391_v19 = vpop.eup %3390  ;;  %3416 = vrcp.f32 %v2587_v1  ;;  %v2593_v58 = vadd.f32 1.0, %v3389_v53 }
 0x2a7   :  { %v3393_v25 = vpop.eup %3392  ;;  %3418 = vrcp.f32 %v2622_v54  ;;  %v2623_v8 = vadd.f32 1.0, %v3391_v19 }
 0x2a8   :  { %v5766_v60 = vpop.eup %3394  ;;  %3420 = vrcp.f32 %v2590_v22  ;;  %v2591_v56 = vadd.f32 1.0, %v3393_v25 }
 0x2a9   :  { %v5776_v35 = vpop.eup %3396  ;;  %3422 = vrcp.f32 %v2620_v4 }
 0x2aa   :  { %v5709_v36 = vpop.f32.mrf.mxu1  ;;  %v3399_v61 = vpop.eup %3398  ;;  %3424 = vrcp.f32 %v2588_v26 }
 0x2ab   :  { %v5764_v57 = vadd.f32 %v5709_v36, %v5581_v50  ;;  %v3401_v10 = vpop.eup %3400  ;;  %3426 = vrcp.f32 %v2625_v55  ;;  %v2775_v55 = vmul.f32 %v5733_v23, %v5625_v9  ;;  %v2808_v38 = vmul.f32 %v3399_v61, %v5638_v0 }
 0x2ac   :  { %v5731_v17 = vpop.f32.mrf.mxu1  ;;  %v3403_v54 = vpop.eup %3402  ;;  %3428 = vrcp.f32 %v2593_v58  ;;  %v2776_v9 = vmul.f32 %v3401_v10, %v5641_v7 }
 0x2ad   :  { %v5714_v52 = vpop.f32.mrf.mxu0  ;;  %v5780_v36 = vadd.f32 %v5581_v50, %v5731_v17  ;;  %v3091_v11 = vmul.f32 -1.442695, %v5764_v57  ;;  %v2806_v17 = vmul.f32 %v5699_v39, %v5605_v42  ;;  %v3405_v24 = vpop.eup %3404  ;;  %3430 = vrcp.f32 %v2623_v8 }
 0x2ae   :  { %v5741_v34 = vpop.f32.mrf.mxu1  ;;  %v5772_v1 = vadd.f32 %v5714_v52, %v5581_v50  ;;  %v3407_v19 = vpop.eup %3406  ;;  %3432 = vrcp.f32 %v2591_v56  ;;  %v2626_v42 = vadd.f32 1.0, %v3403_v54  ;;  %v2594_v27 = vadd.f32 1.0, %v3405_v24 }
 0x2af   :  { %v5736_v30 = vpop.f32.mrf.mxu0  ;;  %v2874_v26 = vadd.f32 %v2873_v46, %v2806_v17  ;;  %v3409_v48 = vpop.eup %3408  ;;  %3434 = vpow2.f32 %v3091_v11  ;;  %v5800_v15 = vadd.f32 %v5741_v34, %v5581_v50  ;;  %v2624_v28 = vadd.f32 1.0, %v3407_v19 }
 0x2b0   :  { %v5748_v62 = vpop.f32.mrf.mxu1  ;;  %v5786_v52 = vadd.f32 %v5581_v50, %v5736_v30  ;;  %v3059_v22 = vmul.f32 -1.442695, %v5772_v1  ;;  %v3089_v30 = vmul.f32 -1.442695, %v5780_v36  ;;  %v5802_v39 = vpop.eup %3410  ;;  %v2592_v23 = vadd.f32 1.0, %v3409_v48 }
 0x2b1   :  { %v5743_v59 = vpop.f32.mrf.mxu0  ;;  %v5808_v58 = vadd.f32 %v5581_v50, %v5748_v62  ;;  %v5810_v8 = vpop.eup %3412  ;;  %v2875_v61 = vadd.f32 %v2874_v26, %v2807_v45  ;;  %v2838_v10 = vadd.f32 %v2837_v47, %v2775_v55  ;;  %v2809_v45 = vmul.f32 %v5716_v12, %v5616_v3 }
 0x2b2   :  { %v3057_v25 = vmul.f32 -1.442695, %v5786_v52  ;;  %3436 = vpow2.f32 %v3059_v22  ;;  %v5817_v56 = vpop.eup %3414  ;;  %v5822_v62 = vadd.f32 %v5743_v59, %v5581_v50 }
 0x2b3   :  { %v5752_v29 = vpop.f32.mrf.mxu0  ;;  %3438 = vpow2.f32 %v3089_v30  ;;  %v5826_v0 = vpop.eup %3416  ;;  %v3090_v59 = vmul.f32 -1.442695, %v5808_v58  ;;  %v2876_v24 = vadd.f32 %v2875_v61, %v2808_v38  ;;  %v2839_v26 = vadd.f32 %v2838_v10, %v2776_v9 }
 0x2b4   :  { %v5815_v34 = vadd.f32 %v5581_v50, %v5752_v29  ;;  %3440 = vpow2.f32 %v3057_v25  ;;  %v3092_v29 = vmul.f32 -1.442695, %v5800_v15  ;;  %v5835_v7 = vpop.eup %3418  ;;  %v3060_v47 = vmul.f32 -1.442695, %v5822_v62 }
 0x2b5   :  { %3442 = vrcp.f32 %v2626_v42  ;;  %v5842_v22 = vpop.eup %3420  ;;  %v2777_v38 = vmul.f32 %v5721_v31, %v5619_v20  ;;  %v2877_v3 = vadd.f32 %v2876_v24, %v2809_v45  ;;  %v2778_v24 = vmul.f32 %v5776_v35, %v5635_v41 }
 0x2b6   :  { %3444 = vrcp.f32 %v2594_v27  ;;  %v3058_v30 = vmul.f32 -1.442695, %v5815_v34  ;;  %v3423_v19 = vpop.eup %3422  ;;  %v2811_v41 = vmul.f32 %v5817_v56, %v5654_v13 }
 0x2b7   :  { %3446 = vrcp.f32 %v2624_v28  ;;  %v3425_v48 = vpop.eup %3424  ;;  %v2840_v61 = vadd.f32 %v2839_v26, %v2777_v38  ;;  %v2812_v13 = vmul.f32 %v3423_v19, %v5673_v63 }
 0x2b8   :  { %3448 = vrcp.f32 %v2592_v23  ;;  %v5860_v27 = vpop.eup %3426 }
 0x2b9   :  { %3450 = vpow2.f32 %v3092_v29  ;;  %v5868_v9 = vpop.eup %3428 }
 0x2ba   :  { %3452 = vpow2.f32 %v3090_v59  ;;  %v5874_v23 = vpop.eup %3430 }
 0x2bb   :  { %3454 = vpow2.f32 %v3058_v30  ;;  %v5882_v29 = vpop.eup %3432  ;;  %v2810_v30 = vmul.f32 %v5766_v60, %v5632_v33 }
 0x2bc   :  { %3456 = vpow2.f32 %v3060_v47 }
 0x2bd   :  { %v2878_v38 = vadd.f32 %v2877_v3, %v2810_v30 }
 0x2da   :  { %v5756_v44 = vpop.f32.mrf.mxu1 }
 0x2db   :  { %v5831_v54 = vadd.f32 %v5756_v44, %v5581_v50 }
 0x2dc   :  { %v5774_v2 = vpop.f32.mrf.mxu1 }
 0x2dd   :  { %v5758_v51 = vpop.f32.mrf.mxu0  ;;  %6362 = vst [vmem:[#allocation45_spill] sm:$0xff] %v5831_v54  ;;  %v5847_v44 = vadd.f32 %v5581_v50, %v5774_v2  ;;  %v3095_v42 = vmul.f32 -1.442695, %v5831_v54 }
 0x2de   :  { %v3207_v53 = vpop.f32.mrf.mxu1  ;;  %v5840_v17 = vadd.f32 %v5758_v51, %v5581_v50 }
 0x2df   :  { %v5782_v43 = vpop.f32.mrf.mxu0  ;;  %v5858_v2 = vadd.f32 %v3207_v53, %v5581_v50  ;;  %v3093_v12 = vmul.f32 -1.442695, %v5847_v44  ;;  %3458 = vpow2.f32 %v3095_v42  ;;  %v2841_v42 = vadd.f32 %v2840_v61, %v2778_v24 }
 0x2e0   :  { %v2343_v14 = vpop.f32.mrf.mxu1  ;;  %6363 = vst [vmem:[#allocation15_spill] sm:$0xff] %v5840_v17  ;;  %v5852_v25 = vadd.f32 %v5581_v50, %v5782_v43  ;;  %v3063_v43 = vmul.f32 -1.442695, %v5840_v17 }
 0x2e1   :  { %v3175_v4 = vpop.f32.mrf.mxu0  ;;  %6364 = vst [vmem:[#allocation41_spill] sm:$0xff] %v5858_v2  ;;  %v5872_v53 = vadd.f32 %v5581_v50, %v2343_v14  ;;  %v3096_v10 = vmul.f32 -1.442695, %v5858_v2  ;;  %v3435_v14 = vpop.eup %3434 }
 0x2e2   :  { %v5866_v28 = vadd.f32 %v3175_v4, %v5581_v50  ;;  %v3061_v20 = vmul.f32 -1.442695, %v5852_v25  ;;  %3460 = vpow2.f32 %v3063_v43  ;;  %v3437_v26 = vpop.eup %3436  ;;  %v2629_v35 = vadd.f32 1.0, %v3435_v14 }
 0x2e3   :  { %v2215_v46 = vpop.f32.mrf.mxu0  ;;  %3462 = vpow2.f32 %v3093_v12  ;;  %v3094_v47 = vmul.f32 -1.442695, %v5872_v53  ;;  %v3439_v45 = vpop.eup %3438  ;;  %v2779_v12 = vmul.f32 %v5826_v0, %v5657_v6  ;;  %v2597_v3 = vadd.f32 1.0, %v3437_v26 }
 0x2e4   :  { %v5878_v31 = vadd.f32 %v5581_v50, %v2215_v46  ;;  %v3064_v46 = vmul.f32 -1.442695, %v5866_v28  ;;  %3464 = vpow2.f32 %v3061_v20  ;;  %v3441_v54 = vpop.eup %3440  ;;  %v2627_v56 = vadd.f32 1.0, %v3439_v45 }
 0x2e5   :  { %3466 = vpow2.f32 %v3096_v10  ;;  %v5899_v43 = vpop.eup %3442  ;;  %v2780_v14 = vmul.f32 %v3425_v48, %v5679_v37  ;;  %v2595_v24 = vadd.f32 1.0, %v3441_v54  ;;  %v2842_v63 = vadd.f32 %v2841_v42, %v2779_v12 }
 0x2e6   :  { %v3062_v2 = vmul.f32 -1.442695, %v5878_v31  ;;  %3468 = vpow2.f32 %v3064_v46  ;;  %v5906_v20 = vpop.eup %3444  ;;  %v2813_v45 = vmul.f32 %v5802_v39, %v5648_v32  ;;  %v2814_v32 = vmul.f32 %v5835_v7, %v5661_v5 }
 0x2e7   :  { %3470 = vpow2.f32 %v3094_v47  ;;  %v3447_v10 = vpop.eup %3446  ;;  %v2843_v48 = vadd.f32 %v2842_v63, %v2780_v14 }
 0x2e8   :  { %3472 = vpow2.f32 %v3062_v2  ;;  %v3449_v0 = vpop.eup %3448 }
 0x2e9   :  { %3474 = vrcp.f32 %v2629_v35  ;;  %v3451_v46 = vpop.eup %3450 }
 0x2ea   :  { %3476 = vrcp.f32 %v2597_v3 }
 0x2eb   :  { %3478 = vrcp.f32 %v2627_v56 }
 0x2ec   :  { %3480 = vrcp.f32 %v2595_v24 }
 0x30a   :  { %v5824_v11 = vpop.f32.mrf.mxu1 }
 0x30c   :  { %v2356_v51 = vpop.f32.mrf.mxu1 }
 0x30d   :  { %v5833_v21 = vpop.f32.mrf.mxu0  ;;  %v5897_v33 = vadd.f32 %v5581_v50, %v2356_v51 }
 0x30e   :  { %v5880_v4 = vpop.f32.mrf.mxu1 }
 0x30f   :  { %v2228_v55 = vpop.f32.mrf.mxu0  ;;  %v3097_v30 = vmul.f32 -1.442695, %v5897_v33 }
 0x310   :  { %v2359_v17 = vpop.f32.mrf.mxu1  ;;  %v5904_v61 = vadd.f32 %v5581_v50, %v2228_v55  ;;  %v2879_v55 = vadd.f32 %v2878_v38, %v2811_v41  ;;  %v2630_v38 = vadd.f32 1.0, %v3451_v46  ;;  %v2781_v41 = vmul.f32 %v5810_v8, %v5651_v49 }
 0x311   :  { %v5885_v59 = vpop.f32.mrf.mxu0  ;;  %v5910_v51 = vadd.f32 %v5581_v50, %v2359_v17  ;;  %v3453_v17 = vpop.eup %3452  ;;  %3482 = vpow2.f32 %v3097_v30  ;;  %v2782_v49 = vmul.f32 %v5842_v22, %v5667_v16  ;;  %v2815_v8 = vmul.f32 %v5874_v23, %v5697_v18 }
 0x312   :  { %v3065_v19 = vmul.f32 -1.442695, %v5904_v61  ;;  %v2880_v26 = vadd.f32 %v2879_v55, %v2812_v13  ;;  %v3455_v54 = vpop.eup %3454  ;;  %v2628_v35 = vadd.f32 1.0, %v3453_v17  ;;  %v2844_v56 = vadd.f32 %v2843_v48, %v2781_v41 }
 0x313   :  { %v2231_v60 = vpop.f32.mrf.mxu0  ;;  %v3098_v37 = vmul.f32 -1.442695, %v5910_v51  ;;  %v3457_v47 = vpop.eup %3456  ;;  %v2596_v3 = vadd.f32 1.0, %v3455_v54  ;;  %v6365_v54 = vld [vmem:[#allocation37_spill] sm:$0xff]  ;;  %v5935_v18 = vadd.f32 %v5824_v11, %v5581_v50  ;;  %v5952_v41 = vadd.f32 %v5885_v59, %v5581_v50 }
 0x314   :  { %v5914_v6 = vadd.f32 %v5581_v50, %v2231_v60  ;;  %v3459_v42 = vpop.eup %3458  ;;  %3484 = vpow2.f32 %v3065_v19  ;;  %v2881_v12 = vadd.f32 %v2880_v26, %v2813_v45  ;;  %v2598_v14 = vadd.f32 1.0, %v3457_v47  ;;  %v6366_v47 = vld [vmem:[#allocation12_spill] sm:$0xff] }
 0x315   :  { %v3461_v60 = vpop.eup %3460  ;;  %3486 = vpow2.f32 %v3098_v37  ;;  %v2633_v39 = vadd.f32 1.0, %v3459_v42  ;;  %v2783_v26 = vmul.f32 %v5882_v29, %v5703_v40  ;;  %v2845_v5 = vadd.f32 %v2844_v56, %v2782_v49 }
 0x316   :  { %v3066_v2 = vmul.f32 -1.442695, %v5914_v6  ;;  %v3463_v13 = vpop.eup %3462  ;;  %v2601_v30 = vadd.f32 1.0, %v3461_v60  ;;  %v2882_v63 = vadd.f32 %v2881_v12, %v2814_v32  ;;  %v2816_v48 = vmul.f32 %v3447_v10, %v6365_v54  ;;  %v6370_v54 = vld [vmem:[#allocation13_spill] sm:$0xff] }
 0x317   :  { %v3465_v24 = vpop.eup %3464  ;;  %v2631_v19 = vadd.f32 1.0, %v3463_v13  ;;  %v5941_v40 = vadd.f32 %v5833_v21, %v5581_v50  ;;  %v2784_v45 = vmul.f32 %v3449_v0, %v6366_v47  ;;  %v2846_v21 = vadd.f32 %v2845_v5, %v2783_v26 }
 0x318   :  { %3488 = vpow2.f32 %v3066_v2  ;;  %v3467_v55 = vpop.eup %3466  ;;  %v2599_v7 = vadd.f32 1.0, %v3465_v24  ;;  %v2883_v23 = vadd.f32 %v2882_v63, %v2815_v8  ;;  %v3099_v12 = vmul.f32 -1.442695, %v5935_v18 }
 0x319   :  { %3490 = vrcp.f32 %v2630_v38  ;;  %v3469_v46 = vpop.eup %3468  ;;  %v2634_v16 = vadd.f32 1.0, %v3467_v55  ;;  %v5948_v38 = vadd.f32 %v5880_v4, %v5581_v50  ;;  %v6367_v4 = vld [vmem:[#allocation30_spill] sm:$0xff]  ;;  %v3068_v32 = vmul.f32 -1.442695, %v5952_v41 }
 0x31a   :  { %3492 = vrcp.f32 %v2628_v35  ;;  %v3471_v17 = vpop.eup %3470  ;;  %v2602_v2 = vadd.f32 1.0, %v3469_v46  ;;  %v2884_v60 = vadd.f32 %v2883_v23, %v2816_v48  ;;  %v2817_v56 = vmul.f32 %v5860_v27, %v6367_v4  ;;  %v6368_v55 = vld [vmem:[#allocation10_spill] sm:$0xff] }
 0x31b   :  { %3494 = vrcp.f32 %v2596_v3  ;;  %v3473_v37 = vpop.eup %3472  ;;  %v2632_v10 = vadd.f32 1.0, %v3471_v17  ;;  %v3067_v3 = vmul.f32 -1.442695, %v5941_v40  ;;  %v3100_v24 = vmul.f32 -1.442695, %v5948_v38 }
 0x31c   :  { %3496 = vrcp.f32 %v2598_v14  ;;  %v5937_v22 = vpop.eup %3474  ;;  %v2600_v42 = vadd.f32 1.0, %v3473_v37  ;;  %v2847_v14 = vadd.f32 %v2846_v21, %v2784_v45  ;;  %v2785_v49 = vmul.f32 %v5868_v9, %v6368_v55 }
 0x31d   :  { %3498 = vrcp.f32 %v2633_v39  ;;  %v5943_v29 = vpop.eup %3476  ;;  %v2885_v8 = vadd.f32 %v2884_v60, %v2817_v56  ;;  %v2786_v48 = vmul.f32 %v5906_v20, %v6370_v54 }
 0x31e   :  { %3500 = vrcp.f32 %v2601_v30  ;;  %v3479_v11 = vpop.eup %3478  ;;  %v2848_v26 = vadd.f32 %v2847_v14, %v2785_v49 }
 0x31f   :  { %3502 = vrcp.f32 %v2631_v19  ;;  %v3481_v35 = vpop.eup %3480  ;;  %v6369_v19 = vld [vmem:[#allocation39_spill] sm:$0xff]  ;;  %v2819_v47 = vmul.f32 %v3479_v11, %v5780_v36 }
 0x320   :  { %3504 = vrcp.f32 %v2599_v7  ;;  %v3483_v0 = vpop.eup %3482  ;;  %v2818_v17 = vmul.f32 %v5899_v43, %v6369_v19 }
 0x321   :  { %3506 = vrcp.f32 %v2634_v16  ;;  %v3485_v13 = vpop.eup %3484  ;;  %v2635_v30 = vadd.f32 1.0, %v3483_v0 }
 0x322   :  { %3508 = vrcp.f32 %v2602_v2  ;;  %v3487_v59 = vpop.eup %3486  ;;  %v2603_v63 = vadd.f32 1.0, %v3485_v13  ;;  %v2787_v2 = vmul.f32 %v3481_v35, %v5786_v52  ;;  %v2886_v43 = vadd.f32 %v2885_v8, %v2818_v17 }
 0x323   :  { %3510 = vrcp.f32 %v2632_v10  ;;  %v2636_v5 = vadd.f32 1.0, %v3487_v59  ;;  %v2849_v52 = vadd.f32 %v2848_v26, %v2786_v48  ;;  %v2821_v48 = vmul.f32 %v5937_v22, %v5764_v57 }
 0x324   :  { %3512 = vrcp.f32 %v2600_v42  ;;  %v2887_v59 = vadd.f32 %v2886_v43, %v2819_v47 }
 0x325   :  { %v3489_v39 = vpop.eup %3488  ;;  %3514 = vpow2.f32 %v3099_v12 }
 0x326   :  { %v5962_v46 = vpop.eup %3490  ;;  %3516 = vpow2.f32 %v3067_v3  ;;  %v2604_v9 = vadd.f32 1.0, %v3489_v39 }
 0x327   :  { %v3493_v27 = vpop.eup %3492  ;;  %3518 = vpow2.f32 %v3100_v24  ;;  %v2850_v24 = vadd.f32 %v2849_v52, %v2787_v2  ;;  %v2789_v2 = vmul.f32 %v5943_v29, %v5772_v1 }
 0x328   :  { %v3495_v37 = vpop.eup %3494  ;;  %3520 = vpow2.f32 %v3068_v32  ;;  %v2820_v11 = vmul.f32 %v3493_v27, %v5808_v58 }
 0x329   :  { %v5971_v23 = vpop.eup %3496  ;;  %3522 = vrcp.f32 %v2635_v30  ;;  %v2788_v36 = vmul.f32 %v3495_v37, %v5815_v34 }
 0x32a   :  { %v5975_v42 = vpop.eup %3498  ;;  %3524 = vrcp.f32 %v2603_v63  ;;  %v2888_v27 = vadd.f32 %v2887_v59, %v2820_v11  ;;  %v2790_v1 = vmul.f32 %v5971_v23, %v5822_v62 }
 0x32b   :  { %v5984_v12 = vpop.eup %3500  ;;  %3526 = vrcp.f32 %v2636_v5  ;;  %v2851_v63 = vadd.f32 %v2850_v24, %v2788_v36  ;;  %v2822_v36 = vmul.f32 %v5962_v46, %v5800_v15 }
 0x32c   :  { %v3503_v3 = vpop.eup %3502  ;;  %3528 = vrcp.f32 %v2604_v9 }
 0x32d   :  { %v3505_v14 = vpop.eup %3504  ;;  %v2823_v57 = vmul.f32 %v3503_v3, %v5847_v44 }
 0x32e   :  { %v5996_v39 = vpop.eup %3506  ;;  %v2791_v29 = vmul.f32 %v3505_v14, %v5852_v25 }
 0x32f   :  { %v6005_v30 = vpop.eup %3508 }
 0x330   :  { %v3511_v26 = vpop.eup %3510 }
 0x331   :  { %v3513_v54 = vpop.eup %3512 }
 0x332   :  { %v3515_v9 = vpop.eup %3514 }
 0x333   :  { %v3517_v43 = vpop.eup %3516  ;;  %v2637_v22 = vadd.f32 1.0, %v3515_v9 }
 0x33a   :  { %v3214_v7 = vpop.f32.mrf.mxu1 }
 0x33b   :  { %v5969_v16 = vadd.f32 %v3214_v7, %v5581_v50  ;;  %v3602_v7 = vld [vmem:[%s6057_s2] ss:$0 sm:$0xff]  ;;  %s3633_s2 = smov [#allocation2]  }
 0x33c   :  { %v2372_v10 = vpop.f32.mrf.mxu1  ;;  %s2923_s1 = sshll.u32 %s3633_s2, 4  ;;  %s2924_s1 = int_to_ptr.vmem [resolvable:$true] %s2923_s1 }
 0x33d   :  { %v3182_v45 = vpop.f32.mrf.mxu0  ;;  %v3103_v21 = vmul.f32 -1.442695, %v5969_v16  ;;  %v5982_v60 = vadd.f32 %v5581_v50, %v2372_v10  ;;  %v3519_v10 = vpop.eup %3518  ;;  %s3603_s30 = scalar_lea.vmem %s2924_s1, 32  ;;  %p3608_p1 = scmp.lt.s32.totalorder %s2924_s1, %s2924_s1 }
 0x33e   :  { %v5978_v20 = vadd.f32 %v3182_v45, %v5581_v50  ;;  %v3215_v0 = vpop.f32.mrf.mxu1  ;;  %v2889_v45 = vadd.f32 %v2888_v27, %v2821_v48  ;;  %v3521_v52 = vpop.eup %3520  ;;  %v2638_v44 = vadd.f32 1.0, %v3519_v10  ;;  %v6371_v27 = vld [vmem:[#allocation45_spill] sm:$0xff]  ;;  %p3604_p0 = scmp.ne.s32.totalorder %s2924_s1, %s3603_s30  ;;  %p3609_p2 = scmp.lt.s32.totalorder %s3603_s30, %s3603_s30 }
 0x33f   :  { %v2244_v35 = vpop.f32.mrf.mxu0  ;;  %v3101_v56 = vmul.f32 -1.442695, %v5982_v60  ;;  %3530 = vpow2.f32 %v3103_v21  ;;  %v5994_v34 = vadd.f32 %v3215_v0, %v5581_v50  ;;  %v2852_v21 = vadd.f32 %v2851_v63, %v2789_v2  ;;  %v3523_v11 = vpop.eup %3522 }
 0x340   :  { %v3071_v13 = vmul.f32 -1.442695, %v5978_v20  ;;  %v5990_v4 = vadd.f32 %v5581_v50, %v2244_v35  ;;  %v2375_v58 = vpop.f32.mrf.mxu1  ;;  %v2605_v35 = vadd.f32 1.0, %v3517_v43  ;;  %v3525_v0 = vpop.eup %3524  ;;  %v2794_v2 = vmul.f32 %v6005_v30, %v5866_v28  ;;  %p3610_p3 = por %p3609_p2, %p3608_p1 }
 0x341   :  { %v3183_v32 = vpop.f32.mrf.mxu0  ;;  %v6003_v8 = vadd.f32 %v5581_v50, %v2375_v58  ;;  %v3104_v19 = vmul.f32 -1.442695, %v5994_v34  ;;  %v3527_v24 = vpop.eup %3526  ;;  %v2853_v59 = vadd.f32 %v2852_v21, %v2790_v1  ;;  %v2827_v10 = vmul.f32 %v3523_v11, %v5897_v33 }
 0x342   :  { %3532 = vpow2.f32 %v3071_v13  ;;  %v3069_v55 = vmul.f32 -1.442695, %v5990_v4  ;;  %v6000_v49 = vadd.f32 %v3183_v32, %v5581_v50  ;;  %v2890_v13 = vadd.f32 %v2889_v45, %v2822_v36  ;;  %v3529_v58 = vpop.eup %3528  ;;  %p3611_p4 = pnand %p3610_p3, %p3604_p0 }
 0x343   :  { %3534 = vpow2.f32 %v3101_v56  ;;  %v2247_v17 = vpop.f32.mrf.mxu0  ;;  %v3102_v50 = vmul.f32 -1.442695, %v6003_v8  ;;  %v2824_v56 = vmul.f32 %v3511_v26, %v5872_v53  ;;  %v2792_v32 = vmul.f32 %v3513_v54, %v5878_v31  ;;  %v6372_v26 = vld [vmem:[#allocation15_spill] sm:$0xff] }
 0x344   :  { %3536 = vpow2.f32 %v3069_v55  ;;  %v3072_v5 = vmul.f32 -1.442695, %v6000_v49  ;;  %v6012_v37 = vadd.f32 %v3602_v7, %v2247_v17  ;;  %v2891_v15 = vadd.f32 %v2890_v13, %v2823_v57 }
 0x345   :  { %3538 = vpow2.f32 %v3104_v19  ;;  %v2854_v3 = vadd.f32 %v2853_v59, %v2791_v29  ;;  %v2606_v55 = vadd.f32 1.0, %v3521_v52  ;;  %v2825_v53 = vmul.f32 %v5975_v42, %v6371_v27 }
 0x346   :  { %3540 = vpow2.f32 %v3072_v5  ;;  %v3070_v47 = vmul.f32 -1.442695, %v6012_v37  ;;  %v2892_v23 = vadd.f32 %v2891_v15, %v2824_v56  ;;  %v2793_v5 = vmul.f32 %v5984_v12, %v6372_v26 }
 0x347   :  { %3542 = vpow2.f32 %v3102_v50  ;;  %v2855_v14 = vadd.f32 %v2854_v3, %v2792_v32  ;;  %v2795_v52 = vmul.f32 %v3525_v0, %v5904_v61  ;;  %v2828_v1 = vmul.f32 %v3527_v24, %v5910_v51 }
 0x348   :  { %3544 = vpow2.f32 %v3070_v47  ;;  %v2893_v48 = vadd.f32 %v2892_v23, %v2825_v53  ;;  %v6373_v47 = vld [vmem:[#allocation41_spill] sm:$0xff] }
 0x349   :  { %3546 = vrcp.f32 %v2637_v22  ;;  %v2826_v42 = vmul.f32 %v5996_v39, %v6373_v47  ;;  %v2856_v43 = vadd.f32 %v2855_v14, %v2793_v5  ;;  %v2796_v39 = vmul.f32 %v3529_v58, %v5914_v6 }
 0x34a   :  { %3548 = vrcp.f32 %v2605_v35 }
 0x34b   :  { %3550 = vrcp.f32 %v2638_v44  ;;  %v2894_v22 = vadd.f32 %v2893_v48, %v2826_v42  ;;  %v2857_v28 = vadd.f32 %v2856_v43, %v2794_v2 }
 0x34c   :  { %v3531_v46 = vpop.eup %3530  ;;  %3552 = vrcp.f32 %v2606_v55 }
 0x34d   :  { %v2641_v19 = vadd.f32 1.0, %v3531_v46  ;;  %v2895_v30 = vadd.f32 %v2894_v22, %v2827_v10  ;;  %v2858_v33 = vadd.f32 %v2857_v28, %v2795_v52 }
 0x34f   :  { %v3533_v62 = vpop.eup %3532  ;;  %v2896_v35 = vadd.f32 %v2895_v30, %v2828_v1  ;;  %v2859_v13 = vadd.f32 %v2858_v33, %v2796_v39 }
 0x350   :  { %v3535_v25 = vpop.eup %3534  ;;  %v2609_v7 = vadd.f32 1.0, %v3533_v62 }
 0x351   :  { %v3537_v63 = vpop.eup %3536  ;;  %v2639_v17 = vadd.f32 1.0, %v3535_v25 }
 0x352   :  { %v3539_v31 = vpop.eup %3538  ;;  %v2607_v50 = vadd.f32 1.0, %v3537_v63 }
 0x353   :  { %v3541_v54 = vpop.eup %3540  ;;  %3554 = vrcp.f32 %v2639_v17  ;;  %v2642_v12 = vadd.f32 1.0, %v3539_v31 }
 0x354   :  { %v3543_v9 = vpop.eup %3542  ;;  %3556 = vrcp.f32 %v2607_v50  ;;  %v2610_v36 = vadd.f32 1.0, %v3541_v54 }
 0x355   :  { %v3545_v45 = vpop.eup %3544  ;;  %3558 = vrcp.f32 %v2641_v19  ;;  %v2640_v21 = vadd.f32 1.0, %v3543_v9 }
 0x356   :  { %3560 = vrcp.f32 %v2609_v7  ;;  %v2608_v57 = vadd.f32 1.0, %v3545_v45  ;;  %v3547_v29 = vpop.eup %3546 }
 0x357   :  { %3562 = vrcp.f32 %v2640_v21  ;;  %v3549_v11 = vpop.eup %3548  ;;  %v2829_v61 = vmul.f32 %v3547_v29, %v5935_v18 }
 0x358   :  { %3564 = vrcp.f32 %v2608_v57  ;;  %v3551_v0 = vpop.eup %3550  ;;  %v2797_v56 = vmul.f32 %v3549_v11, %v5941_v40 }
 0x359   :  { %3566 = vrcp.f32 %v2642_v12  ;;  %v3553_v59 = vpop.eup %3552  ;;  %v2897_v51 = vadd.f32 %v2896_v35, %v2829_v61  ;;  %v2830_v6 = vmul.f32 %v3551_v0, %v5948_v38 }
 0x35a   :  { %3568 = vrcp.f32 %v2610_v36  ;;  %v2860_v32 = vadd.f32 %v2859_v13, %v2797_v56  ;;  %v2798_v46 = vmul.f32 %v3553_v59, %v5952_v41 }
 0x35b   :  { %v2898_v62 = vadd.f32 %v2897_v51, %v2830_v6 }
 0x35c   :  { %v2861_v23 = vadd.f32 %v2860_v32, %v2798_v46 }
 0x360   :  { %v3555_v24 = vpop.eup %3554 }
 0x361   :  { %v3557_v15 = vpop.eup %3556  ;;  %v2831_v58 = vmul.f32 %v3555_v24, %v5982_v60 }
 0x362   :  { %v3559_v44 = vpop.eup %3558  ;;  %v2799_v3 = vmul.f32 %v3557_v15, %v5990_v4 }
 0x363   :  { %v3561_v55 = vpop.eup %3560  ;;  %v2899_v40 = vadd.f32 %v2898_v62, %v2831_v58  ;;  %v2833_v60 = vmul.f32 %v3559_v44, %v5969_v16 }
 0x364   :  { %v3563_v18 = vpop.eup %3562  ;;  %v2862_v27 = vadd.f32 %v2861_v23, %v2799_v3  ;;  %v2801_v41 = vmul.f32 %v3561_v55, %v5978_v20 }
 0x365   :  { %v3565_v25 = vpop.eup %3564  ;;  %v2832_v14 = vmul.f32 %v3563_v18, %v6003_v8 }
 0x366   :  { %v3567_v63 = vpop.eup %3566  ;;  %v2800_v53 = vmul.f32 %v3565_v25, %v6012_v37 }
 0x367   :  { %v3569_v38 = vpop.eup %3568  ;;  %v2900_v19 = vadd.f32 %v2899_v40, %v2832_v14  ;;  %v2834_v4 = vmul.f32 %v3567_v63, %v5994_v34 }
 0x368   :  { %v2863_v17 = vadd.f32 %v2862_v27, %v2800_v53  ;;  %v2802_v26 = vmul.f32 %v3569_v38, %v6000_v49 }
 0x369   :  { %v2901_v31 = vadd.f32 %v2900_v19, %v2833_v60 }
 0x36a   :  { %v2864_v5 = vadd.f32 %v2863_v17, %v2801_v41 }
 0x36b   :  { %v2902_v7 = vadd.f32 %v2901_v31, %v2834_v4 }
 0x36c   :  { %v2865_v50 = vadd.f32 %v2864_v5, %v2802_v26 }
 0x36d   :  { %v2903_v8 = vrot.slane %v2902_v7, 4 }
 0x36e   :  { %v2866_v54 = vrot.slane %v2865_v50, 4 }
 0x36f   :  { %v2904_v48 = vadd.f32 %v2903_v8, %v2902_v7 }
 0x370   :  { %v2867_v9 = vadd.f32 %v2866_v54, %v2865_v50 }
 0x371   :  { %v2905_v37 = vrot.slane %v2904_v48, 2 }
 0x372   :  { %v2868_v2 = vrot.slane %v2867_v9, 2 }
 0x373   :  { %v2906_v47 = vadd.f32 %v2905_v37, %v2904_v48 }
 0x374   :  { %v2869_v16 = vadd.f32 %v2868_v2, %v2867_v9 }
 0x375   :  { %v2907_v42 = vrot.slane %v2906_v47, 1 }
 0x376   :  { %v2870_v43 = vrot.slane %v2869_v16, 1 }
 0x377   :  { %v2908_v20 = vadd.f32 %v2907_v42, %v2906_v47 }
 0x378   :  { %v2871_v45 = vadd.f32 %v2870_v43, %v2869_v16 }
 0x379   :  { %v2910_v34 = vmul.f32 0.00390625, %v2908_v20 }
 0x37a   :  { %v2909_v49 = vmul.f32 0.00390625, %v2871_v45 }
 0x37c   :  { %v2914_v10 = vsel %vm2913_vm12, %v2910_v34, %v2909_v49 }
 0x37d   :  { %2916 = vst [vmem:[#allocation2] sm:$0x3] %v2914_v10 }
 0x37e   :  { %3614 = shalt.err (!%p3611_p4)
}
 0x37f   :  { %2926 = dma.vmem_to_hbm [thread:$0]  %s2924_s1, 32, %s6058_s3, [#allocation3]  }
 0x380   :  { %3623 = dma.done.wait [#allocation3], 32  }
 0x381   :  { %3624 = vsyncadd [#allocation3], 4294967264 }
 0x382   :  { %2930 = vsyncpa [#allocation3], 1 }

</bundles_post_ra>
